<compile_context>
chip_gen: v6e
topology: v6e:2x2x1
jax: 0.10.0
libtpu: 0.0.40
codegen_flags: <defaults>
</compile_context>

<pallas_src>
import functools

import jax
import jax.numpy as jnp
from jax import lax
from jax.experimental import pallas as pl
from jax.experimental.pallas import tpu as pltpu


_PAD = 16  # channel padding granularity (bf16 sublane packing)


def _round_up(x, m):
    return (x + m - 1) // m * m


def _bilinear_up_matrix(n):
    """(2n, n) matrix M so that M @ v == 2x bilinear upsample of v
    (align_corners=False, edge clamped), matching nn.Upsample(scale_factor=2)."""
    rows = []
    for i in range(2 * n):
        k, parity = divmod(i, 2)
        row = [0.0] * n
        if parity == 0:                      # src coord k - 0.25
            row[max(k - 1, 0)] += 0.25
            row[k] += 0.75
        else:                                # src coord k + 0.25
            row[k] += 0.75
            row[min(k + 1, n - 1)] += 0.25
        rows.append(row)
    return jnp.asarray(rows, jnp.float32)


def _pack_conv3x3_taps(w, cout_pad, cin_pad, scale=None):
    """PyTorch conv weight (cout, cin, 3, 3) -> (9, cout_pad, cin_pad) bf16,
    tap-major ((dy, dx) row-major) so w_packed[t] matches the kernel's t-th
    rolled slab.  Optionally folds a per-output-channel BN scale."""
    cout, cin = w.shape[0], w.shape[1]
    if scale is not None:
        w = w * scale[:, None, None, None]
    w = jnp.transpose(w, (2, 3, 0, 1)).reshape(9, cout, cin)
    w = jnp.pad(w, ((0, 0), (0, cout_pad - cout), (0, cin_pad - cin)))
    return w.astype(jnp.bfloat16)


def _tap_masks(H, W, b_tile):
    """(9, b_tile*H*W) f32 {0,1} validity mask per 3x3 tap (zero padding of a
    'same' conv), repeated per lane-packed image.  Precomputed once so the
    kernel never re-runs iota / div / mod per grid step.  The same masks also
    zero any roll that leaks across lane-packed image boundaries."""
    yy, xx = jnp.meshgrid(jnp.arange(H), jnp.arange(W), indexing="ij")
    yy = yy.reshape(1, H * W)
    xx = xx.reshape(1, H * W)
    rows = []
    for dy in (-1, 0, 1):
        for dx in (-1, 0, 1):
            rows.append((yy + dy >= 0) & (yy + dy < H)
                        & (xx + dx >= 0) & (xx + dx < W))
    m = jnp.concatenate(rows, axis=0).astype(jnp.float32)     # (9, H*W)
    return jnp.tile(m, (1, b_tile))                           # (9, b_tile*H*W)


def _conv_gru_kernel(x_ref, up_ref, mask_ref, w_up_ref, w_xrz_ref, w_srz_ref,
                     w_xh_ref, w_hs_ref, bshift_ref, out_ref, new_state_ref,
                     *, img_w, out_pad):
    f32, bf16 = jnp.float32, jnp.bfloat16
    x = x_ref[0].astype(f32)             # (in_pad, L)
    up = up_ref[0].astype(f32)           # (cup_pad, L)
    masks = mask_ref[...]                # (9, L) f32 {0, 1}
    L = x.shape[-1]
    taps = [(dy, dx) for dy in (-1, 0, 1) for dx in (-1, 0, 1)]

    def conv3x3(pairs, rows):
        """Tap-accumulated 3x3 'same' conv of several (activation, weight-ref)
        pairs sharing one f32 accumulator: per tap, one lane roll (XLU) + mask
        (VPU) + one small bf16 MXU matmul.  No im2col buffer is materialized."""
        acc = jnp.zeros((rows, L), f32)
        for t, (dy, dx) in enumerate(taps):
            shift = (-(dy * img_w + dx)) % L      # slab[p] = act[p + dy*W + dx]
            m_t = masks[t:t + 1]                  # (1, L); all ones for center
            for act, w_ref in pairs:
                if dy == 0 and dx == 0:
                    slab = act
                else:
                    slab = pltpu.roll(act, shift, axis=1) * m_t
                acc = acc + jnp.dot(w_ref[t], slab.astype(bf16),
                                    preferred_element_type=f32)
        return acc

    op = out_pad
    bsh = bshift_ref[...]                         # (3*out_pad, 1) f32: [r | z | h]

    # state_hat = Conv3x3(Upsample2x(cat(old_state, attr)))  (bias-free, no BN;
    # the reference module uses bias=False everywhere).
    state_hat = conv3x3([(up, w_up_ref)], op)                      # (op, L) f32

    # r / z pre-activations: conv(x) + conv(state_hat), both gates fused.
    rz = conv3x3([(x, w_xrz_ref), (state_hat, w_srz_ref)], 2 * op)
    r = jax.nn.sigmoid(rz[:op] + bsh[:op])
    z = jax.nn.sigmoid(rz[op:] + bsh[op:2 * op])

    new_state = r * state_hat

    # hidden pre-activation: conv(x) + conv(new_state).  The x contribution of
    # the hidden gate is issued here (right before the tanh) instead of up
    # front, so only 2*out_pad gate rows are live during the heavy section.
    hp = conv3x3([(x, w_xh_ref), (new_state, w_hs_ref)], op)
    hidden = jnp.tanh(hp + bsh[2 * op:])

    out = (1.0 - z) * state_hat + z * hidden
    out_ref[0] = out.astype(out_ref.dtype)
    new_state_ref[0] = new_state.astype(new_state_ref.dtype)


def _choose_batch_tile(n, HW, target_lanes=1024):
    """Pick a divisor of n to lane-pack per grid step (wide MXU N for small
    images) while keeping >= 2 grid steps when possible (megacore / 2 TCs)."""
    bt = max(1, min(n, target_lanes // max(HW, 1)))
    while n % bt:
        bt -= 1
    if bt == n and n > 1:
        bt = max(1, bt // 2)
        while n % bt:
            bt -= 1
    return bt


def _pack_batch(a, bt):
    """(n, C, HW) -> (n//bt, C, bt*HW): lane-pack bt images per grid step."""
    n, c, hw = a.shape
    return (a.reshape(n // bt, bt, c, hw).transpose(0, 2, 1, 3)
             .reshape(n // bt, c, bt * hw))


def _unpack_batch(a, bt):
    g, c, l = a.shape
    hw = l // bt
    return (a.reshape(g, c, bt, hw).transpose(0, 2, 1, 3)
             .reshape(g * bt, c, hw))


def conv_gru_cell(inp_nchw, old_state_nchw, attr, params):
    """Forward of ConvGRUCell (deconv=False).  NCHW in / NCHW out like PyTorch."""
    inp = inp_nchw.astype(jnp.float32)
    old_state = old_state_nchw.astype(jnp.float32)
    attr = attr.astype(jnp.float32)

    n, in_dim, H, W = inp.shape
    _, sdim, h, w = old_state.shape            # sdim == 2 * in_dim
    n_attrs = attr.shape[1]
    out_dim = params["w_r"].shape[0]
    HW = H * W
    assert (H, W) == (2 * h, 2 * w)
    # Lane-dense layout needs the flattened spatial axis to be a 128 multiple.
    assert HW % 128 == 0, "H*W must be a multiple of 128 (pad spatially otherwise)"

    in_pad = _round_up(in_dim, _PAD)
    out_pad = _round_up(out_dim, _PAD)
    cup = sdim + n_attrs
    cup_pad = _round_up(cup, _PAD)

    bt = _choose_batch_tile(n, HW)
    L = bt * HW
    G = n // bt

    # ---- separable 2x bilinear upsample (XLA side; replaces the kron matrix) --
    # Two tiny (2n, n) contractions; attr is constant over space so it is
    # broadcast directly at high resolution (bilinear upsample of a constant
    # is the identity).
    uh = _bilinear_up_matrix(h)
    uw = _bilinear_up_matrix(w)
    up = jnp.einsum("Hh,nchw->ncHw", uh, old_state)
    up = jnp.einsum("Ww,nchw->nchW", uw, up)                       # (n, sdim, H, W)
    attr_map = jnp.broadcast_to(attr[:, :, None, None], (n, n_attrs, H, W))
    up = jnp.concatenate([up, attr_map], axis=1)                   # (n, cup, H, W)
    up = jnp.pad(up, ((0, 0), (0, cup_pad - cup), (0, 0), (0, 0)))
    up = up.reshape(n, cup_pad, HW).astype(jnp.bfloat16)

    x_flat = jnp.pad(inp.reshape(n, in_dim, HW),
                     ((0, 0), (0, in_pad - in_dim), (0, 0))).astype(jnp.bfloat16)

    x_pk = _pack_batch(x_flat, bt)             # (G, in_pad, L)  bf16
    up_pk = _pack_batch(up, bt)                # (G, cup_pad, L) bf16
    masks = _tap_masks(H, W, bt)               # (9, L)          f32

    # ---- fold inference-mode BatchNorm into the gate conv weights -------------
    # All convs in the reference module are bias=False, so the only additive
    # term per gate is the folded BN shift.
    eps = 1e-5
    bn_scale = params["bn_gamma"] * lax.rsqrt(params["bn_var"] + eps)   # (3, out_dim)
    bn_shift = params["bn_beta"] - params["bn_mean"] * bn_scale         # (3, out_dim)
    s_r, s_z, s_h = bn_scale[0], bn_scale[1], bn_scale[2]

    w_r, w_z, w_h = params["w_r"], params["w_z"], params["w_h"]
    w_up_t = _pack_conv3x3_taps(params["w_up"], out_pad, cup_pad)            # (9, op, cup_pad)
    w_xrz = jnp.concatenate([
        _pack_conv3x3_taps(w_r[:, :in_dim], out_pad, in_pad, s_r),
        _pack_conv3x3_taps(w_z[:, :in_dim], out_pad, in_pad, s_z)], axis=1)  # (9, 2op, in_pad)
    w_srz = jnp.concatenate([
        _pack_conv3x3_taps(w_r[:, in_dim:], out_pad, out_pad, s_r),
        _pack_conv3x3_taps(w_z[:, in_dim:], out_pad, out_pad, s_z)], axis=1) # (9, 2op, op)
    w_xh = _pack_conv3x3_taps(w_h[:, :in_dim], out_pad, in_pad, s_h)         # (9, op, in_pad)
    w_hs = _pack_conv3x3_taps(w_h[:, in_dim:], out_pad, out_pad, s_h)        # (9, op, op)

    def _pad_shift(v):
        return jnp.pad(v, (0, out_pad - out_dim))[:, None]
    bshift = jnp.concatenate([_pad_shift(bn_shift[0]), _pad_shift(bn_shift[1]),
                              _pad_shift(bn_shift[2])], axis=0)              # (3op, 1) f32

    kernel = functools.partial(_conv_gru_kernel, img_w=W, out_pad=out_pad)

    batch_spec = lambda c: pl.BlockSpec((1, c, L), lambda g: (g, 0, 0))
    const3 = lambda s: pl.BlockSpec(s, lambda g: (0, 0, 0))
    const2 = lambda s: pl.BlockSpec(s, lambda g: (0, 0))

    # Explicit VMEM budget: double-buffered activation/output blocks + resident
    # weights + f32 temporaries, with generous headroom (capped at v7x's 64 MiB).
    bf2, f4 = 2, 4
    w_bytes = sum(int(a.size) * bf2 for a in (w_up_t, w_xrz, w_srz, w_xh, w_hs))
    block_bytes = ((in_pad + cup_pad) * L * bf2 + 9 * L * f4
                   + 3 * out_pad * f4 + 2 * out_pad * L * f4)
    temp_bytes = 12 * out_pad * L * f4 + 2 * (in_pad + cup_pad) * L * f4
    est = 2 * (block_bytes + w_bytes) + temp_bytes
    vmem_limit = int(min(max(4 * est, 16 << 20), 64 << 20))

    out_struct = jax.ShapeDtypeStruct((G, out_pad, L), jnp.float32)
    out, new_state = pl.pallas_call(
        kernel,
        out_shape=(out_struct, out_struct),
        grid=(G,),
        in_specs=[
            batch_spec(in_pad),                      # x (bf16)
            batch_spec(cup_pad),                     # upsampled cat(state, attr) (bf16)
            const2((9, L)),                          # precomputed tap masks
            const3((9, out_pad, cup_pad)),           # upsample-conv weight
            const3((9, 2 * out_pad, in_pad)),        # x -> (r, z) weights (BN folded)
            const3((9, 2 * out_pad, out_pad)),       # state_hat -> (r, z) weights
            const3((9, out_pad, in_pad)),            # x -> h weight (BN folded)
            const3((9, out_pad, out_pad)),           # new_state -> h weight
            const2((3 * out_pad, 1)),                # BN shifts [r | z | h]
        ],
        out_specs=(batch_spec(out_pad), batch_spec(out_pad)),
        compiler_params=pltpu.CompilerParams(
            dimension_semantics=("parallel",),
            vmem_limit_bytes=vmem_limit),
    )(x_pk, up_pk, masks, w_up_t, w_xrz, w_srz, w_xh, w_hs, bshift)

    out = _unpack_batch(out, bt)[:, :out_dim].reshape(n, out_dim, H, W)
    new_state = _unpack_batch(new_state, bt)[:, :out_dim].reshape(n, out_dim, H, W)
    return out, new_state


def init_params(key, n_attrs, in_dim, out_dim, kernel_size=3):
    assert kernel_size == 3
    ks = jax.random.split(key, 6)
    cup = in_dim * 2 + n_attrs
    cg = in_dim + out_dim

    def conv_w(k, cin):
        fan_in = 9 * cin
        return jax.random.normal(k, (out_dim, cin, 3, 3), jnp.float32) / jnp.sqrt(fan_in)

    # TODO(synk): BatchNorm2d is reproduced in inference mode only (running
    # stats folded into the conv weights); training-mode batch statistics and
    # running-stat updates are not computed.
    # TODO(synk): only the deconv=False branch is implemented; the deconv=True
    # nn.ConvTranspose2d upsample path is not.
    gamma = 1.0 + 0.1 * jax.random.normal(ks[4], (3, out_dim), jnp.float32)
    beta = 0.1 * jax.random.normal(ks[5], (3, out_dim), jnp.float32)
    return dict(
        w_up=conv_w(ks[0], cup),      # upsample conv: (out_dim, 2*in_dim+n_attrs, 3, 3)
        w_r=conv_w(ks[1], cg),        # reset gate conv
        w_z=conv_w(ks[2], cg),        # update gate conv
        w_h=conv_w(ks[3], cg),        # hidden conv
        bn_gamma=gamma, bn_beta=beta,
        bn_mean=jnp.zeros((3, out_dim), jnp.float32),
        bn_var=jnp.ones((3, out_dim), jnp.float32),
    )


def _reference(inp, old_state, attr, params):
    """Pure-JAX (XLA) reference of the PyTorch forward, for a tolerance check."""
    n, in_dim, H, W = inp.shape
    _, _, h, w = old_state.shape
    n_attrs = attr.shape[1]
    uh = _bilinear_up_matrix(h)
    uw = _bilinear_up_matrix(w)
    up = jnp.einsum("Hh,nchw->ncHw", uh, old_state)
    up = jnp.einsum("Ww,nchw->nchW", uw, up)
    attr_map = jnp.broadcast_to(attr[:, :, None, None], (n, n_attrs, H, W))
    cat = jnp.concatenate([up, attr_map], axis=1)

    def conv(x, wgt):
        return lax.conv_general_dilated(x, wgt, (1, 1), "SAME",
                                        dimension_numbers=("NCHW", "OIHW", "NCHW"))

    def bn(x, i):
        eps = 1e-5
        g = params["bn_gamma"][i][None, :, None, None]
        b = params["bn_beta"][i][None, :, None, None]
        m = params["bn_mean"][i][None, :, None, None]
        v = params["bn_var"][i][None, :, None, None]
        return (x - m) * lax.rsqrt(v + eps) * g + b

    state_hat = conv(cat, params["w_up"])
    xs = jnp.concatenate([inp, state_hat], axis=1)
    r = jax.nn.sigmoid(bn(conv(xs, params["w_r"]), 0))
    z = jax.nn.sigmoid(bn(conv(xs, params["w_z"]), 1))
    new_state = r * state_hat
    xn = jnp.concatenate([inp, new_state], axis=1)
    hidden = jnp.tanh(bn(conv(xn, params["w_h"]), 2))
    out = (1.0 - z) * state_hat + z * hidden
    return out, new_state


if __name__ == "__main__":
    key = jax.random.PRNGKey(0)
    n_attrs, in_dim, out_dim = 3, 4, 8
    N, h, w = 2, 8, 8
    H, W = 2 * h, 2 * w

    k1, k2, k3, kp = jax.random.split(key, 4)
    # PyTorch NCHW conventions:
    x = jax.random.normal(k1, (N, in_dim, H, W), jnp.float32)            # "input"
    old_state = jax.random.normal(k2, (N, 2 * in_dim, h, w), jnp.float32)
    attr = jax.random.normal(k3, (N, n_attrs), jnp.float32)
    params = init_params(kp, n_attrs, in_dim, out_dim)

    fn = jax.jit(functools.partial(conv_gru_cell, params=params))
    out, new_state = fn(x, old_state, attr)
    jax.block_until_ready((out, new_state))

    assert out.shape == (N, out_dim, H, W)
    assert new_state.shape == (N, out_dim, H, W)
    assert out.dtype == jnp.float32 and new_state.dtype == jnp.float32
    assert bool(jnp.all(jnp.isfinite(out))) and bool(jnp.all(jnp.isfinite(new_state)))

    # Tolerance check against a pure-JAX reference (bf16 matmul operands in the
    # kernel, f32 accumulation -> loose absolute tolerance).
    ref_out, ref_ns = jax.jit(functools.partial(_reference, params=params))(
        x, old_state, attr)
    err = max(float(jnp.max(jnp.abs(out - ref_out))),
              float(jnp.max(jnp.abs(new_state - ref_ns))))
    assert err < 0.25, f"max abs error vs reference too large: {err}"

    print("KERNEL_OK")
</pallas_src>

<mosaic_0001>
module attributes {stable_mosaic.version = 11 : i64} {
  func.func @_conv_gru_kernel(%arg0: i32, %arg1: memref<1x16x256xbf16, #tpu.memory_space<vmem>>, %arg2: memref<1x16x256xbf16, #tpu.memory_space<vmem>>, %arg3: memref<9x256xf32, #tpu.memory_space<vmem>>, %arg4: memref<9x16x16xbf16, #tpu.memory_space<vmem>>, %arg5: memref<9x32x16xbf16, #tpu.memory_space<vmem>>, %arg6: memref<9x32x16xbf16, #tpu.memory_space<vmem>>, %arg7: memref<9x16x16xbf16, #tpu.memory_space<vmem>>, %arg8: memref<9x16x16xbf16, #tpu.memory_space<vmem>>, %arg9: memref<48x1xf32, #tpu.memory_space<vmem>>, %arg10: memref<1x16x256xf32, #tpu.memory_space<vmem>>, %arg11: memref<1x16x256xf32, #tpu.memory_space<vmem>>) attributes {dimension_semantics = [#tpu.dimension_semantics<parallel>], iteration_bounds = array<i64: 2>, scalar_prefetch = 0 : i64, scratch_operands = 0 : i64, tpu.core_type = #tpu.core_type<tc>, window_params = [{transform_indices = @transform_0, window_bounds = array<i64: 1, 16, 256>}, {transform_indices = @transform_1, window_bounds = array<i64: 1, 16, 256>}, {pipeline_mode = #tpu.pipeline_mode<synchronous>, transform_indices = @transform_2, window_bounds = array<i64: 9, 256>}, {pipeline_mode = #tpu.pipeline_mode<synchronous>, transform_indices = @transform_3, window_bounds = array<i64: 9, 16, 16>}, {pipeline_mode = #tpu.pipeline_mode<synchronous>, transform_indices = @transform_4, window_bounds = array<i64: 9, 32, 16>}, {pipeline_mode = #tpu.pipeline_mode<synchronous>, transform_indices = @transform_5, window_bounds = array<i64: 9, 32, 16>}, {pipeline_mode = #tpu.pipeline_mode<synchronous>, transform_indices = @transform_6, window_bounds = array<i64: 9, 16, 16>}, {pipeline_mode = #tpu.pipeline_mode<synchronous>, transform_indices = @transform_7, window_bounds = array<i64: 9, 16, 16>}, {pipeline_mode = #tpu.pipeline_mode<synchronous>, transform_indices = @transform_8, window_bounds = array<i64: 48, 1>}, {transform_indices = @transform_9, window_bounds = array<i64: 1, 16, 256>}, {transform_indices = @transform_10, window_bounds = array<i64: 1, 16, 256>}]} {
    %c0 = arith.constant 0 : index
    %c0_0 = arith.constant 0 : index
    %c0_1 = arith.constant 0 : index
    %0 = vector.load %arg1[%c0, %c0_0, %c0_1] : memref<1x16x256xbf16, #tpu.memory_space<vmem>>, vector<1x16x256xbf16>
    %1 = vector.shape_cast %0 : vector<1x16x256xbf16> to vector<16x256xbf16>
    %2 = arith.extf %1 : vector<16x256xbf16> to vector<16x256xf32>
    %c0_2 = arith.constant 0 : index
    %c0_3 = arith.constant 0 : index
    %c0_4 = arith.constant 0 : index
    %3 = vector.load %arg2[%c0_2, %c0_3, %c0_4] : memref<1x16x256xbf16, #tpu.memory_space<vmem>>, vector<1x16x256xbf16>
    %4 = vector.shape_cast %3 : vector<1x16x256xbf16> to vector<16x256xbf16>
    %5 = arith.extf %4 : vector<16x256xbf16> to vector<16x256xf32>
    %c0_5 = arith.constant 0 : index
    %c0_6 = arith.constant 0 : index
    %6 = vector.load %arg3[%c0_5, %c0_6] : memref<9x256xf32, #tpu.memory_space<vmem>>, vector<9x256xf32>
    %c0_7 = arith.constant 0 : index
    %c0_8 = arith.constant 0 : index
    %7 = vector.load %arg9[%c0_7, %c0_8] : memref<48x1xf32, #tpu.memory_space<vmem>>, vector<48x1xf32>
    %cst = arith.constant 0.000000e+00 : f32
    %8 = vector.broadcast %cst : f32 to vector<16x256xf32>
    %9 = vector.extract_strided_slice %6 {offsets = [0, 0], sizes = [1, 256], strides = [1, 1]} : vector<9x256xf32> to vector<1x256xf32>
    %c17_i32 = arith.constant 17 : i32
    %10 = tpu.dynamic_rotate %5 by %c17_i32 dim 1 : vector<16x256xf32>, i32 -> vector<16x256xf32>
    %11 = vector.broadcast %9 : vector<1x256xf32> to vector<16x256xf32>
    %12 = arith.mulf %10, %11 : vector<16x256xf32>
    %c0_9 = arith.constant 0 : index
    %c0_10 = arith.constant 0 : index
    %c0_11 = arith.constant 0 : index
    %13 = vector.load %arg4[%c0_9, %c0_10, %c0_11] : memref<9x16x16xbf16, #tpu.memory_space<vmem>>, vector<1x16x16xbf16>
    %14 = vector.shape_cast %13 : vector<1x16x16xbf16> to vector<16x16xbf16>
    %15 = arith.truncf %12 : vector<16x256xf32> to vector<16x256xbf16>
    %cst_12 = arith.constant dense<0.000000e+00> : vector<16x256xf32>
    %16 = tpu.matmul %14, %15, %cst_12 {dimension_numbers = #tpu.dot_dimension_numbers<[1], [0], [0], [1], [0, 0, 1, 1], [], []>} : vector<16x16xbf16>, vector<16x256xbf16>, vector<16x256xf32> -> vector<16x256xf32>
    %17 = arith.addf %8, %16 : vector<16x256xf32>
    %18 = vector.extract_strided_slice %6 {offsets = [1, 0], sizes = [1, 256], strides = [1, 1]} : vector<9x256xf32> to vector<1x256xf32>
    %c16_i32 = arith.constant 16 : i32
    %19 = tpu.dynamic_rotate %5 by %c16_i32 dim 1 : vector<16x256xf32>, i32 -> vector<16x256xf32>
    %20 = vector.broadcast %18 : vector<1x256xf32> to vector<16x256xf32>
    %21 = arith.mulf %19, %20 : vector<16x256xf32>
    %c1 = arith.constant 1 : index
    %c0_13 = arith.constant 0 : index
    %c0_14 = arith.constant 0 : index
    %22 = vector.load %arg4[%c1, %c0_13, %c0_14] : memref<9x16x16xbf16, #tpu.memory_space<vmem>>, vector<1x16x16xbf16>
    %23 = vector.shape_cast %22 : vector<1x16x16xbf16> to vector<16x16xbf16>
    %24 = arith.truncf %21 : vector<16x256xf32> to vector<16x256xbf16>
    %cst_15 = arith.constant dense<0.000000e+00> : vector<16x256xf32>
    %25 = tpu.matmul %23, %24, %cst_15 {dimension_numbers = #tpu.dot_dimension_numbers<[1], [0], [0], [1], [0, 0, 1, 1], [], []>} : vector<16x16xbf16>, vector<16x256xbf16>, vector<16x256xf32> -> vector<16x256xf32>
    %26 = arith.addf %17, %25 : vector<16x256xf32>
    %27 = vector.extract_strided_slice %6 {offsets = [2, 0], sizes = [1, 256], strides = [1, 1]} : vector<9x256xf32> to vector<1x256xf32>
    %c15_i32 = arith.constant 15 : i32
    %28 = tpu.dynamic_rotate %5 by %c15_i32 dim 1 : vector<16x256xf32>, i32 -> vector<16x256xf32>
    %29 = vector.broadcast %27 : vector<1x256xf32> to vector<16x256xf32>
    %30 = arith.mulf %28, %29 : vector<16x256xf32>
    %c2 = arith.constant 2 : index
    %c0_16 = arith.constant 0 : index
    %c0_17 = arith.constant 0 : index
    %31 = vector.load %arg4[%c2, %c0_16, %c0_17] : memref<9x16x16xbf16, #tpu.memory_space<vmem>>, vector<1x16x16xbf16>
    %32 = vector.shape_cast %31 : vector<1x16x16xbf16> to vector<16x16xbf16>
    %33 = arith.truncf %30 : vector<16x256xf32> to vector<16x256xbf16>
    %cst_18 = arith.constant dense<0.000000e+00> : vector<16x256xf32>
    %34 = tpu.matmul %32, %33, %cst_18 {dimension_numbers = #tpu.dot_dimension_numbers<[1], [0], [0], [1], [0, 0, 1, 1], [], []>} : vector<16x16xbf16>, vector<16x256xbf16>, vector<16x256xf32> -> vector<16x256xf32>
    %35 = arith.addf %26, %34 : vector<16x256xf32>
    %36 = vector.extract_strided_slice %6 {offsets = [3, 0], sizes = [1, 256], strides = [1, 1]} : vector<9x256xf32> to vector<1x256xf32>
    %c1_i32 = arith.constant 1 : i32
    %37 = tpu.dynamic_rotate %5 by %c1_i32 dim 1 : vector<16x256xf32>, i32 -> vector<16x256xf32>
    %38 = vector.broadcast %36 : vector<1x256xf32> to vector<16x256xf32>
    %39 = arith.mulf %37, %38 : vector<16x256xf32>
    %c3 = arith.constant 3 : index
    %c0_19 = arith.constant 0 : index
    %c0_20 = arith.constant 0 : index
    %40 = vector.load %arg4[%c3, %c0_19, %c0_20] : memref<9x16x16xbf16, #tpu.memory_space<vmem>>, vector<1x16x16xbf16>
    %41 = vector.shape_cast %40 : vector<1x16x16xbf16> to vector<16x16xbf16>
    %42 = arith.truncf %39 : vector<16x256xf32> to vector<16x256xbf16>
    %cst_21 = arith.constant dense<0.000000e+00> : vector<16x256xf32>
    %43 = tpu.matmul %41, %42, %cst_21 {dimension_numbers = #tpu.dot_dimension_numbers<[1], [0], [0], [1], [0, 0, 1, 1], [], []>} : vector<16x16xbf16>, vector<16x256xbf16>, vector<16x256xf32> -> vector<16x256xf32>
    %44 = arith.addf %35, %43 : vector<16x256xf32>
    %c4 = arith.constant 4 : index
    %c0_22 = arith.constant 0 : index
    %c0_23 = arith.constant 0 : index
    %45 = vector.load %arg4[%c4, %c0_22, %c0_23] : memref<9x16x16xbf16, #tpu.memory_space<vmem>>, vector<1x16x16xbf16>
    %46 = vector.shape_cast %45 : vector<1x16x16xbf16> to vector<16x16xbf16>
    %47 = arith.truncf %5 : vector<16x256xf32> to vector<16x256xbf16>
    %cst_24 = arith.constant dense<0.000000e+00> : vector<16x256xf32>
    %48 = tpu.matmul %46, %47, %cst_24 {dimension_numbers = #tpu.dot_dimension_numbers<[1], [0], [0], [1], [0, 0, 1, 1], [], []>} : vector<16x16xbf16>, vector<16x256xbf16>, vector<16x256xf32> -> vector<16x256xf32>
    %49 = arith.addf %44, %48 : vector<16x256xf32>
    %50 = vector.extract_strided_slice %6 {offsets = [5, 0], sizes = [1, 256], strides = [1, 1]} : vector<9x256xf32> to vector<1x256xf32>
    %c255_i32 = arith.constant 255 : i32
    %51 = tpu.dynamic_rotate %5 by %c255_i32 dim 1 : vector<16x256xf32>, i32 -> vector<16x256xf32>
    %52 = vector.broadcast %50 : vector<1x256xf32> to vector<16x256xf32>
    %53 = arith.mulf %51, %52 : vector<16x256xf32>
    %c5 = arith.constant 5 : index
    %c0_25 = arith.constant 0 : index
    %c0_26 = arith.constant 0 : index
    %54 = vector.load %arg4[%c5, %c0_25, %c0_26] : memref<9x16x16xbf16, #tpu.memory_space<vmem>>, vector<1x16x16xbf16>
    %55 = vector.shape_cast %54 : vector<1x16x16xbf16> to vector<16x16xbf16>
    %56 = arith.truncf %53 : vector<16x256xf32> to vector<16x256xbf16>
    %cst_27 = arith.constant dense<0.000000e+00> : vector<16x256xf32>
    %57 = tpu.matmul %55, %56, %cst_27 {dimension_numbers = #tpu.dot_dimension_numbers<[1], [0], [0], [1], [0, 0, 1, 1], [], []>} : vector<16x16xbf16>, vector<16x256xbf16>, vector<16x256xf32> -> vector<16x256xf32>
    %58 = arith.addf %49, %57 : vector<16x256xf32>
    %59 = vector.extract_strided_slice %6 {offsets = [6, 0], sizes = [1, 256], strides = [1, 1]} : vector<9x256xf32> to vector<1x256xf32>
    %c241_i32 = arith.constant 241 : i32
    %60 = tpu.dynamic_rotate %5 by %c241_i32 dim 1 : vector<16x256xf32>, i32 -> vector<16x256xf32>
    %61 = vector.broadcast %59 : vector<1x256xf32> to vector<16x256xf32>
    %62 = arith.mulf %60, %61 : vector<16x256xf32>
    %c6 = arith.constant 6 : index
    %c0_28 = arith.constant 0 : index
    %c0_29 = arith.constant 0 : index
    %63 = vector.load %arg4[%c6, %c0_28, %c0_29] : memref<9x16x16xbf16, #tpu.memory_space<vmem>>, vector<1x16x16xbf16>
    %64 = vector.shape_cast %63 : vector<1x16x16xbf16> to vector<16x16xbf16>
    %65 = arith.truncf %62 : vector<16x256xf32> to vector<16x256xbf16>
    %cst_30 = arith.constant dense<0.000000e+00> : vector<16x256xf32>
    %66 = tpu.matmul %64, %65, %cst_30 {dimension_numbers = #tpu.dot_dimension_numbers<[1], [0], [0], [1], [0, 0, 1, 1], [], []>} : vector<16x16xbf16>, vector<16x256xbf16>, vector<16x256xf32> -> vector<16x256xf32>
    %67 = arith.addf %58, %66 : vector<16x256xf32>
    %68 = vector.extract_strided_slice %6 {offsets = [7, 0], sizes = [1, 256], strides = [1, 1]} : vector<9x256xf32> to vector<1x256xf32>
    %c240_i32 = arith.constant 240 : i32
    %69 = tpu.dynamic_rotate %5 by %c240_i32 dim 1 : vector<16x256xf32>, i32 -> vector<16x256xf32>
    %70 = vector.broadcast %68 : vector<1x256xf32> to vector<16x256xf32>
    %71 = arith.mulf %69, %70 : vector<16x256xf32>
    %c7 = arith.constant 7 : index
    %c0_31 = arith.constant 0 : index
    %c0_32 = arith.constant 0 : index
    %72 = vector.load %arg4[%c7, %c0_31, %c0_32] : memref<9x16x16xbf16, #tpu.memory_space<vmem>>, vector<1x16x16xbf16>
    %73 = vector.shape_cast %72 : vector<1x16x16xbf16> to vector<16x16xbf16>
    %74 = arith.truncf %71 : vector<16x256xf32> to vector<16x256xbf16>
    %cst_33 = arith.constant dense<0.000000e+00> : vector<16x256xf32>
    %75 = tpu.matmul %73, %74, %cst_33 {dimension_numbers = #tpu.dot_dimension_numbers<[1], [0], [0], [1], [0, 0, 1, 1], [], []>} : vector<16x16xbf16>, vector<16x256xbf16>, vector<16x256xf32> -> vector<16x256xf32>
    %76 = arith.addf %67, %75 : vector<16x256xf32>
    %77 = vector.extract_strided_slice %6 {offsets = [8, 0], sizes = [1, 256], strides = [1, 1]} : vector<9x256xf32> to vector<1x256xf32>
    %c239_i32 = arith.constant 239 : i32
    %78 = tpu.dynamic_rotate %5 by %c239_i32 dim 1 : vector<16x256xf32>, i32 -> vector<16x256xf32>
    %79 = vector.broadcast %77 : vector<1x256xf32> to vector<16x256xf32>
    %80 = arith.mulf %78, %79 : vector<16x256xf32>
    %c8 = arith.constant 8 : index
    %c0_34 = arith.constant 0 : index
    %c0_35 = arith.constant 0 : index
    %81 = vector.load %arg4[%c8, %c0_34, %c0_35] : memref<9x16x16xbf16, #tpu.memory_space<vmem>>, vector<1x16x16xbf16>
    %82 = vector.shape_cast %81 : vector<1x16x16xbf16> to vector<16x16xbf16>
    %83 = arith.truncf %80 : vector<16x256xf32> to vector<16x256xbf16>
    %cst_36 = arith.constant dense<0.000000e+00> : vector<16x256xf32>
    %84 = tpu.matmul %82, %83, %cst_36 {dimension_numbers = #tpu.dot_dimension_numbers<[1], [0], [0], [1], [0, 0, 1, 1], [], []>} : vector<16x16xbf16>, vector<16x256xbf16>, vector<16x256xf32> -> vector<16x256xf32>
    %85 = arith.addf %76, %84 : vector<16x256xf32>
    %cst_37 = arith.constant 0.000000e+00 : f32
    %86 = vector.broadcast %cst_37 : f32 to vector<32x256xf32>
    %87 = vector.extract_strided_slice %6 {offsets = [0, 0], sizes = [1, 256], strides = [1, 1]} : vector<9x256xf32> to vector<1x256xf32>
    %c17_i32_38 = arith.constant 17 : i32
    %88 = tpu.dynamic_rotate %2 by %c17_i32_38 dim 1 : vector<16x256xf32>, i32 -> vector<16x256xf32>
    %89 = vector.broadcast %87 : vector<1x256xf32> to vector<16x256xf32>
    %90 = arith.mulf %88, %89 : vector<16x256xf32>
    %c0_39 = arith.constant 0 : index
    %c0_40 = arith.constant 0 : index
    %c0_41 = arith.constant 0 : index
    %91 = vector.load %arg5[%c0_39, %c0_40, %c0_41] : memref<9x32x16xbf16, #tpu.memory_space<vmem>>, vector<1x32x16xbf16>
    %92 = vector.shape_cast %91 : vector<1x32x16xbf16> to vector<32x16xbf16>
    %93 = arith.truncf %90 : vector<16x256xf32> to vector<16x256xbf16>
    %cst_42 = arith.constant dense<0.000000e+00> : vector<32x256xf32>
    %94 = tpu.matmul %92, %93, %cst_42 {dimension_numbers = #tpu.dot_dimension_numbers<[1], [0], [0], [1], [0, 0, 1, 1], [], []>} : vector<32x16xbf16>, vector<16x256xbf16>, vector<32x256xf32> -> vector<32x256xf32>
    %95 = arith.addf %86, %94 : vector<32x256xf32>
    %c17_i32_43 = arith.constant 17 : i32
    %96 = tpu.dynamic_rotate %85 by %c17_i32_43 dim 1 : vector<16x256xf32>, i32 -> vector<16x256xf32>
    %97 = vector.broadcast %87 : vector<1x256xf32> to vector<16x256xf32>
    %98 = arith.mulf %96, %97 : vector<16x256xf32>
    %c0_44 = arith.constant 0 : index
    %c0_45 = arith.constant 0 : index
    %c0_46 = arith.constant 0 : index
    %99 = vector.load %arg6[%c0_44, %c0_45, %c0_46] : memref<9x32x16xbf16, #tpu.memory_space<vmem>>, vector<1x32x16xbf16>
    %100 = vector.shape_cast %99 : vector<1x32x16xbf16> to vector<32x16xbf16>
    %101 = arith.truncf %98 : vector<16x256xf32> to vector<16x256xbf16>
    %cst_47 = arith.constant dense<0.000000e+00> : vector<32x256xf32>
    %102 = tpu.matmul %100, %101, %cst_47 {dimension_numbers = #tpu.dot_dimension_numbers<[1], [0], [0], [1], [0, 0, 1, 1], [], []>} : vector<32x16xbf16>, vector<16x256xbf16>, vector<32x256xf32> -> vector<32x256xf32>
    %103 = arith.addf %95, %102 : vector<32x256xf32>
    %104 = vector.extract_strided_slice %6 {offsets = [1, 0], sizes = [1, 256], strides = [1, 1]} : vector<9x256xf32> to vector<1x256xf32>
    %c16_i32_48 = arith.constant 16 : i32
    %105 = tpu.dynamic_rotate %2 by %c16_i32_48 dim 1 : vector<16x256xf32>, i32 -> vector<16x256xf32>
    %106 = vector.broadcast %104 : vector<1x256xf32> to vector<16x256xf32>
    %107 = arith.mulf %105, %106 : vector<16x256xf32>
    %c1_49 = arith.constant 1 : index
    %c0_50 = arith.constant 0 : index
    %c0_51 = arith.constant 0 : index
    %108 = vector.load %arg5[%c1_49, %c0_50, %c0_51] : memref<9x32x16xbf16, #tpu.memory_space<vmem>>, vector<1x32x16xbf16>
    %109 = vector.shape_cast %108 : vector<1x32x16xbf16> to vector<32x16xbf16>
    %110 = arith.truncf %107 : vector<16x256xf32> to vector<16x256xbf16>
    %cst_52 = arith.constant dense<0.000000e+00> : vector<32x256xf32>
    %111 = tpu.matmul %109, %110, %cst_52 {dimension_numbers = #tpu.dot_dimension_numbers<[1], [0], [0], [1], [0, 0, 1, 1], [], []>} : vector<32x16xbf16>, vector<16x256xbf16>, vector<32x256xf32> -> vector<32x256xf32>
    %112 = arith.addf %103, %111 : vector<32x256xf32>
    %c16_i32_53 = arith.constant 16 : i32
    %113 = tpu.dynamic_rotate %85 by %c16_i32_53 dim 1 : vector<16x256xf32>, i32 -> vector<16x256xf32>
    %114 = vector.broadcast %104 : vector<1x256xf32> to vector<16x256xf32>
    %115 = arith.mulf %113, %114 : vector<16x256xf32>
    %c1_54 = arith.constant 1 : index
    %c0_55 = arith.constant 0 : index
    %c0_56 = arith.constant 0 : index
    %116 = vector.load %arg6[%c1_54, %c0_55, %c0_56] : memref<9x32x16xbf16, #tpu.memory_space<vmem>>, vector<1x32x16xbf16>
    %117 = vector.shape_cast %116 : vector<1x32x16xbf16> to vector<32x16xbf16>
    %118 = arith.truncf %115 : vector<16x256xf32> to vector<16x256xbf16>
    %cst_57 = arith.constant dense<0.000000e+00> : vector<32x256xf32>
    %119 = tpu.matmul %117, %118, %cst_57 {dimension_numbers = #tpu.dot_dimension_numbers<[1], [0], [0], [1], [0, 0, 1, 1], [], []>} : vector<32x16xbf16>, vector<16x256xbf16>, vector<32x256xf32> -> vector<32x256xf32>
    %120 = arith.addf %112, %119 : vector<32x256xf32>
    %121 = vector.extract_strided_slice %6 {offsets = [2, 0], sizes = [1, 256], strides = [1, 1]} : vector<9x256xf32> to vector<1x256xf32>
    %c15_i32_58 = arith.constant 15 : i32
    %122 = tpu.dynamic_rotate %2 by %c15_i32_58 dim 1 : vector<16x256xf32>, i32 -> vector<16x256xf32>
    %123 = vector.broadcast %121 : vector<1x256xf32> to vector<16x256xf32>
    %124 = arith.mulf %122, %123 : vector<16x256xf32>
    %c2_59 = arith.constant 2 : index
    %c0_60 = arith.constant 0 : index
    %c0_61 = arith.constant 0 : index
    %125 = vector.load %arg5[%c2_59, %c0_60, %c0_61] : memref<9x32x16xbf16, #tpu.memory_space<vmem>>, vector<1x32x16xbf16>
    %126 = vector.shape_cast %125 : vector<1x32x16xbf16> to vector<32x16xbf16>
    %127 = arith.truncf %124 : vector<16x256xf32> to vector<16x256xbf16>
    %cst_62 = arith.constant dense<0.000000e+00> : vector<32x256xf32>
    %128 = tpu.matmul %126, %127, %cst_62 {dimension_numbers = #tpu.dot_dimension_numbers<[1], [0], [0], [1], [0, 0, 1, 1], [], []>} : vector<32x16xbf16>, vector<16x256xbf16>, vector<32x256xf32> -> vector<32x256xf32>
    %129 = arith.addf %120, %128 : vector<32x256xf32>
    %c15_i32_63 = arith.constant 15 : i32
    %130 = tpu.dynamic_rotate %85 by %c15_i32_63 dim 1 : vector<16x256xf32>, i32 -> vector<16x256xf32>
    %131 = vector.broadcast %121 : vector<1x256xf32> to vector<16x256xf32>
    %132 = arith.mulf %130, %131 : vector<16x256xf32>
    %c2_64 = arith.constant 2 : index
    %c0_65 = arith.constant 0 : index
    %c0_66 = arith.constant 0 : index
    %133 = vector.load %arg6[%c2_64, %c0_65, %c0_66] : memref<9x32x16xbf16, #tpu.memory_space<vmem>>, vector<1x32x16xbf16>
    %134 = vector.shape_cast %133 : vector<1x32x16xbf16> to vector<32x16xbf16>
    %135 = arith.truncf %132 : vector<16x256xf32> to vector<16x256xbf16>
    %cst_67 = arith.constant dense<0.000000e+00> : vector<32x256xf32>
    %136 = tpu.matmul %134, %135, %cst_67 {dimension_numbers = #tpu.dot_dimension_numbers<[1], [0], [0], [1], [0, 0, 1, 1], [], []>} : vector<32x16xbf16>, vector<16x256xbf16>, vector<32x256xf32> -> vector<32x256xf32>
    %137 = arith.addf %129, %136 : vector<32x256xf32>
    %138 = vector.extract_strided_slice %6 {offsets = [3, 0], sizes = [1, 256], strides = [1, 1]} : vector<9x256xf32> to vector<1x256xf32>
    %c1_i32_68 = arith.constant 1 : i32
    %139 = tpu.dynamic_rotate %2 by %c1_i32_68 dim 1 : vector<16x256xf32>, i32 -> vector<16x256xf32>
    %140 = vector.broadcast %138 : vector<1x256xf32> to vector<16x256xf32>
    %141 = arith.mulf %139, %140 : vector<16x256xf32>
    %c3_69 = arith.constant 3 : index
    %c0_70 = arith.constant 0 : index
    %c0_71 = arith.constant 0 : index
    %142 = vector.load %arg5[%c3_69, %c0_70, %c0_71] : memref<9x32x16xbf16, #tpu.memory_space<vmem>>, vector<1x32x16xbf16>
    %143 = vector.shape_cast %142 : vector<1x32x16xbf16> to vector<32x16xbf16>
    %144 = arith.truncf %141 : vector<16x256xf32> to vector<16x256xbf16>
    %cst_72 = arith.constant dense<0.000000e+00> : vector<32x256xf32>
    %145 = tpu.matmul %143, %144, %cst_72 {dimension_numbers = #tpu.dot_dimension_numbers<[1], [0], [0], [1], [0, 0, 1, 1], [], []>} : vector<32x16xbf16>, vector<16x256xbf16>, vector<32x256xf32> -> vector<32x256xf32>
    %146 = arith.addf %137, %145 : vector<32x256xf32>
    %c1_i32_73 = arith.constant 1 : i32
    %147 = tpu.dynamic_rotate %85 by %c1_i32_73 dim 1 : vector<16x256xf32>, i32 -> vector<16x256xf32>
    %148 = vector.broadcast %138 : vector<1x256xf32> to vector<16x256xf32>
    %149 = arith.mulf %147, %148 : vector<16x256xf32>
    %c3_74 = arith.constant 3 : index
    %c0_75 = arith.constant 0 : index
    %c0_76 = arith.constant 0 : index
    %150 = vector.load %arg6[%c3_74, %c0_75, %c0_76] : memref<9x32x16xbf16, #tpu.memory_space<vmem>>, vector<1x32x16xbf16>
    %151 = vector.shape_cast %150 : vector<1x32x16xbf16> to vector<32x16xbf16>
    %152 = arith.truncf %149 : vector<16x256xf32> to vector<16x256xbf16>
    %cst_77 = arith.constant dense<0.000000e+00> : vector<32x256xf32>
    %153 = tpu.matmul %151, %152, %cst_77 {dimension_numbers = #tpu.dot_dimension_numbers<[1], [0], [0], [1], [0, 0, 1, 1], [], []>} : vector<32x16xbf16>, vector<16x256xbf16>, vector<32x256xf32> -> vector<32x256xf32>
    %154 = arith.addf %146, %153 : vector<32x256xf32>
    %c4_78 = arith.constant 4 : index
    %c0_79 = arith.constant 0 : index
    %c0_80 = arith.constant 0 : index
    %155 = vector.load %arg5[%c4_78, %c0_79, %c0_80] : memref<9x32x16xbf16, #tpu.memory_space<vmem>>, vector<1x32x16xbf16>
    %156 = vector.shape_cast %155 : vector<1x32x16xbf16> to vector<32x16xbf16>
    %157 = arith.truncf %2 : vector<16x256xf32> to vector<16x256xbf16>
    %cst_81 = arith.constant dense<0.000000e+00> : vector<32x256xf32>
    %158 = tpu.matmul %156, %157, %cst_81 {dimension_numbers = #tpu.dot_dimension_numbers<[1], [0], [0], [1], [0, 0, 1, 1], [], []>} : vector<32x16xbf16>, vector<16x256xbf16>, vector<32x256xf32> -> vector<32x256xf32>
    %159 = arith.addf %154, %158 : vector<32x256xf32>
    %c4_82 = arith.constant 4 : index
    %c0_83 = arith.constant 0 : index
    %c0_84 = arith.constant 0 : index
    %160 = vector.load %arg6[%c4_82, %c0_83, %c0_84] : memref<9x32x16xbf16, #tpu.memory_space<vmem>>, vector<1x32x16xbf16>
    %161 = vector.shape_cast %160 : vector<1x32x16xbf16> to vector<32x16xbf16>
    %162 = arith.truncf %85 : vector<16x256xf32> to vector<16x256xbf16>
    %cst_85 = arith.constant dense<0.000000e+00> : vector<32x256xf32>
    %163 = tpu.matmul %161, %162, %cst_85 {dimension_numbers = #tpu.dot_dimension_numbers<[1], [0], [0], [1], [0, 0, 1, 1], [], []>} : vector<32x16xbf16>, vector<16x256xbf16>, vector<32x256xf32> -> vector<32x256xf32>
    %164 = arith.addf %159, %163 : vector<32x256xf32>
    %165 = vector.extract_strided_slice %6 {offsets = [5, 0], sizes = [1, 256], strides = [1, 1]} : vector<9x256xf32> to vector<1x256xf32>
    %c255_i32_86 = arith.constant 255 : i32
    %166 = tpu.dynamic_rotate %2 by %c255_i32_86 dim 1 : vector<16x256xf32>, i32 -> vector<16x256xf32>
    %167 = vector.broadcast %165 : vector<1x256xf32> to vector<16x256xf32>
    %168 = arith.mulf %166, %167 : vector<16x256xf32>
    %c5_87 = arith.constant 5 : index
    %c0_88 = arith.constant 0 : index
    %c0_89 = arith.constant 0 : index
    %169 = vector.load %arg5[%c5_87, %c0_88, %c0_89] : memref<9x32x16xbf16, #tpu.memory_space<vmem>>, vector<1x32x16xbf16>
    %170 = vector.shape_cast %169 : vector<1x32x16xbf16> to vector<32x16xbf16>
    %171 = arith.truncf %168 : vector<16x256xf32> to vector<16x256xbf16>
    %cst_90 = arith.constant dense<0.000000e+00> : vector<32x256xf32>
    %172 = tpu.matmul %170, %171, %cst_90 {dimension_numbers = #tpu.dot_dimension_numbers<[1], [0], [0], [1], [0, 0, 1, 1], [], []>} : vector<32x16xbf16>, vector<16x256xbf16>, vector<32x256xf32> -> vector<32x256xf32>
    %173 = arith.addf %164, %172 : vector<32x256xf32>
    %c255_i32_91 = arith.constant 255 : i32
    %174 = tpu.dynamic_rotate %85 by %c255_i32_91 dim 1 : vector<16x256xf32>, i32 -> vector<16x256xf32>
    %175 = vector.broadcast %165 : vector<1x256xf32> to vector<16x256xf32>
    %176 = arith.mulf %174, %175 : vector<16x256xf32>
    %c5_92 = arith.constant 5 : index
    %c0_93 = arith.constant 0 : index
    %c0_94 = arith.constant 0 : index
    %177 = vector.load %arg6[%c5_92, %c0_93, %c0_94] : memref<9x32x16xbf16, #tpu.memory_space<vmem>>, vector<1x32x16xbf16>
    %178 = vector.shape_cast %177 : vector<1x32x16xbf16> to vector<32x16xbf16>
    %179 = arith.truncf %176 : vector<16x256xf32> to vector<16x256xbf16>
    %cst_95 = arith.constant dense<0.000000e+00> : vector<32x256xf32>
    %180 = tpu.matmul %178, %179, %cst_95 {dimension_numbers = #tpu.dot_dimension_numbers<[1], [0], [0], [1], [0, 0, 1, 1], [], []>} : vector<32x16xbf16>, vector<16x256xbf16>, vector<32x256xf32> -> vector<32x256xf32>
    %181 = arith.addf %173, %180 : vector<32x256xf32>
    %182 = vector.extract_strided_slice %6 {offsets = [6, 0], sizes = [1, 256], strides = [1, 1]} : vector<9x256xf32> to vector<1x256xf32>
    %c241_i32_96 = arith.constant 241 : i32
    %183 = tpu.dynamic_rotate %2 by %c241_i32_96 dim 1 : vector<16x256xf32>, i32 -> vector<16x256xf32>
    %184 = vector.broadcast %182 : vector<1x256xf32> to vector<16x256xf32>
    %185 = arith.mulf %183, %184 : vector<16x256xf32>
    %c6_97 = arith.constant 6 : index
    %c0_98 = arith.constant 0 : index
    %c0_99 = arith.constant 0 : index
    %186 = vector.load %arg5[%c6_97, %c0_98, %c0_99] : memref<9x32x16xbf16, #tpu.memory_space<vmem>>, vector<1x32x16xbf16>
    %187 = vector.shape_cast %186 : vector<1x32x16xbf16> to vector<32x16xbf16>
    %188 = arith.truncf %185 : vector<16x256xf32> to vector<16x256xbf16>
    %cst_100 = arith.constant dense<0.000000e+00> : vector<32x256xf32>
    %189 = tpu.matmul %187, %188, %cst_100 {dimension_numbers = #tpu.dot_dimension_numbers<[1], [0], [0], [1], [0, 0, 1, 1], [], []>} : vector<32x16xbf16>, vector<16x256xbf16>, vector<32x256xf32> -> vector<32x256xf32>
    %190 = arith.addf %181, %189 : vector<32x256xf32>
    %c241_i32_101 = arith.constant 241 : i32
    %191 = tpu.dynamic_rotate %85 by %c241_i32_101 dim 1 : vector<16x256xf32>, i32 -> vector<16x256xf32>
    %192 = vector.broadcast %182 : vector<1x256xf32> to vector<16x256xf32>
    %193 = arith.mulf %191, %192 : vector<16x256xf32>
    %c6_102 = arith.constant 6 : index
    %c0_103 = arith.constant 0 : index
    %c0_104 = arith.constant 0 : index
    %194 = vector.load %arg6[%c6_102, %c0_103, %c0_104] : memref<9x32x16xbf16, #tpu.memory_space<vmem>>, vector<1x32x16xbf16>
    %195 = vector.shape_cast %194 : vector<1x32x16xbf16> to vector<32x16xbf16>
    %196 = arith.truncf %193 : vector<16x256xf32> to vector<16x256xbf16>
    %cst_105 = arith.constant dense<0.000000e+00> : vector<32x256xf32>
    %197 = tpu.matmul %195, %196, %cst_105 {dimension_numbers = #tpu.dot_dimension_numbers<[1], [0], [0], [1], [0, 0, 1, 1], [], []>} : vector<32x16xbf16>, vector<16x256xbf16>, vector<32x256xf32> -> vector<32x256xf32>
    %198 = arith.addf %190, %197 : vector<32x256xf32>
    %199 = vector.extract_strided_slice %6 {offsets = [7, 0], sizes = [1, 256], strides = [1, 1]} : vector<9x256xf32> to vector<1x256xf32>
    %c240_i32_106 = arith.constant 240 : i32
    %200 = tpu.dynamic_rotate %2 by %c240_i32_106 dim 1 : vector<16x256xf32>, i32 -> vector<16x256xf32>
    %201 = vector.broadcast %199 : vector<1x256xf32> to vector<16x256xf32>
    %202 = arith.mulf %200, %201 : vector<16x256xf32>
    %c7_107 = arith.constant 7 : index
    %c0_108 = arith.constant 0 : index
    %c0_109 = arith.constant 0 : index
    %203 = vector.load %arg5[%c7_107, %c0_108, %c0_109] : memref<9x32x16xbf16, #tpu.memory_space<vmem>>, vector<1x32x16xbf16>
    %204 = vector.shape_cast %203 : vector<1x32x16xbf16> to vector<32x16xbf16>
    %205 = arith.truncf %202 : vector<16x256xf32> to vector<16x256xbf16>
    %cst_110 = arith.constant dense<0.000000e+00> : vector<32x256xf32>
    %206 = tpu.matmul %204, %205, %cst_110 {dimension_numbers = #tpu.dot_dimension_numbers<[1], [0], [0], [1], [0, 0, 1, 1], [], []>} : vector<32x16xbf16>, vector<16x256xbf16>, vector<32x256xf32> -> vector<32x256xf32>
    %207 = arith.addf %198, %206 : vector<32x256xf32>
    %c240_i32_111 = arith.constant 240 : i32
    %208 = tpu.dynamic_rotate %85 by %c240_i32_111 dim 1 : vector<16x256xf32>, i32 -> vector<16x256xf32>
    %209 = vector.broadcast %199 : vector<1x256xf32> to vector<16x256xf32>
    %210 = arith.mulf %208, %209 : vector<16x256xf32>
    %c7_112 = arith.constant 7 : index
    %c0_113 = arith.constant 0 : index
    %c0_114 = arith.constant 0 : index
    %211 = vector.load %arg6[%c7_112, %c0_113, %c0_114] : memref<9x32x16xbf16, #tpu.memory_space<vmem>>, vector<1x32x16xbf16>
    %212 = vector.shape_cast %211 : vector<1x32x16xbf16> to vector<32x16xbf16>
    %213 = arith.truncf %210 : vector<16x256xf32> to vector<16x256xbf16>
    %cst_115 = arith.constant dense<0.000000e+00> : vector<32x256xf32>
    %214 = tpu.matmul %212, %213, %cst_115 {dimension_numbers = #tpu.dot_dimension_numbers<[1], [0], [0], [1], [0, 0, 1, 1], [], []>} : vector<32x16xbf16>, vector<16x256xbf16>, vector<32x256xf32> -> vector<32x256xf32>
    %215 = arith.addf %207, %214 : vector<32x256xf32>
    %216 = vector.extract_strided_slice %6 {offsets = [8, 0], sizes = [1, 256], strides = [1, 1]} : vector<9x256xf32> to vector<1x256xf32>
    %c239_i32_116 = arith.constant 239 : i32
    %217 = tpu.dynamic_rotate %2 by %c239_i32_116 dim 1 : vector<16x256xf32>, i32 -> vector<16x256xf32>
    %218 = vector.broadcast %216 : vector<1x256xf32> to vector<16x256xf32>
    %219 = arith.mulf %217, %218 : vector<16x256xf32>
    %c8_117 = arith.constant 8 : index
    %c0_118 = arith.constant 0 : index
    %c0_119 = arith.constant 0 : index
    %220 = vector.load %arg5[%c8_117, %c0_118, %c0_119] : memref<9x32x16xbf16, #tpu.memory_space<vmem>>, vector<1x32x16xbf16>
    %221 = vector.shape_cast %220 : vector<1x32x16xbf16> to vector<32x16xbf16>
    %222 = arith.truncf %219 : vector<16x256xf32> to vector<16x256xbf16>
    %cst_120 = arith.constant dense<0.000000e+00> : vector<32x256xf32>
    %223 = tpu.matmul %221, %222, %cst_120 {dimension_numbers = #tpu.dot_dimension_numbers<[1], [0], [0], [1], [0, 0, 1, 1], [], []>} : vector<32x16xbf16>, vector<16x256xbf16>, vector<32x256xf32> -> vector<32x256xf32>
    %224 = arith.addf %215, %223 : vector<32x256xf32>
    %c239_i32_121 = arith.constant 239 : i32
    %225 = tpu.dynamic_rotate %85 by %c239_i32_121 dim 1 : vector<16x256xf32>, i32 -> vector<16x256xf32>
    %226 = vector.broadcast %216 : vector<1x256xf32> to vector<16x256xf32>
    %227 = arith.mulf %225, %226 : vector<16x256xf32>
    %c8_122 = arith.constant 8 : index
    %c0_123 = arith.constant 0 : index
    %c0_124 = arith.constant 0 : index
    %228 = vector.load %arg6[%c8_122, %c0_123, %c0_124] : memref<9x32x16xbf16, #tpu.memory_space<vmem>>, vector<1x32x16xbf16>
    %229 = vector.shape_cast %228 : vector<1x32x16xbf16> to vector<32x16xbf16>
    %230 = arith.truncf %227 : vector<16x256xf32> to vector<16x256xbf16>
    %cst_125 = arith.constant dense<0.000000e+00> : vector<32x256xf32>
    %231 = tpu.matmul %229, %230, %cst_125 {dimension_numbers = #tpu.dot_dimension_numbers<[1], [0], [0], [1], [0, 0, 1, 1], [], []>} : vector<32x16xbf16>, vector<16x256xbf16>, vector<32x256xf32> -> vector<32x256xf32>
    %232 = arith.addf %224, %231 : vector<32x256xf32>
    %233 = vector.extract_strided_slice %232 {offsets = [0, 0], sizes = [16, 256], strides = [1, 1]} : vector<32x256xf32> to vector<16x256xf32>
    %234 = vector.extract_strided_slice %7 {offsets = [0, 0], sizes = [16, 1], strides = [1, 1]} : vector<48x1xf32> to vector<16x1xf32>
    %235 = vector.broadcast %234 : vector<16x1xf32> to vector<16x256xf32>
    %236 = arith.addf %233, %235 : vector<16x256xf32>
    %237 = arith.negf %236 : vector<16x256xf32>
    %238 = math.exp %237 : vector<16x256xf32>
    %cst_126 = arith.constant 1.000000e+00 : f32
    %239 = vector.broadcast %cst_126 : f32 to vector<16x256xf32>
    %240 = arith.addf %239, %238 : vector<16x256xf32>
    %241 = arith.divf %239, %240 : vector<16x256xf32>
    %242 = vector.extract_strided_slice %232 {offsets = [16, 0], sizes = [16, 256], strides = [1, 1]} : vector<32x256xf32> to vector<16x256xf32>
    %243 = vector.extract_strided_slice %7 {offsets = [16, 0], sizes = [16, 1], strides = [1, 1]} : vector<48x1xf32> to vector<16x1xf32>
    %244 = vector.broadcast %243 : vector<16x1xf32> to vector<16x256xf32>
    %245 = arith.addf %242, %244 : vector<16x256xf32>
    %246 = arith.negf %245 : vector<16x256xf32>
    %247 = math.exp %246 : vector<16x256xf32>
    %cst_127 = arith.constant 1.000000e+00 : f32
    %248 = vector.broadcast %cst_127 : f32 to vector<16x256xf32>
    %249 = arith.addf %248, %247 : vector<16x256xf32>
    %250 = arith.divf %248, %249 : vector<16x256xf32>
    %251 = arith.mulf %241, %85 : vector<16x256xf32>
    %cst_128 = arith.constant 0.000000e+00 : f32
    %252 = vector.broadcast %cst_128 : f32 to vector<16x256xf32>
    %253 = vector.extract_strided_slice %6 {offsets = [0, 0], sizes = [1, 256], strides = [1, 1]} : vector<9x256xf32> to vector<1x256xf32>
    %c17_i32_129 = arith.constant 17 : i32
    %254 = tpu.dynamic_rotate %2 by %c17_i32_129 dim 1 : vector<16x256xf32>, i32 -> vector<16x256xf32>
    %255 = vector.broadcast %253 : vector<1x256xf32> to vector<16x256xf32>
    %256 = arith.mulf %254, %255 : vector<16x256xf32>
    %c0_130 = arith.constant 0 : index
    %c0_131 = arith.constant 0 : index
    %c0_132 = arith.constant 0 : index
    %257 = vector.load %arg7[%c0_130, %c0_131, %c0_132] : memref<9x16x16xbf16, #tpu.memory_space<vmem>>, vector<1x16x16xbf16>
    %258 = vector.shape_cast %257 : vector<1x16x16xbf16> to vector<16x16xbf16>
    %259 = arith.truncf %256 : vector<16x256xf32> to vector<16x256xbf16>
    %cst_133 = arith.constant dense<0.000000e+00> : vector<16x256xf32>
    %260 = tpu.matmul %258, %259, %cst_133 {dimension_numbers = #tpu.dot_dimension_numbers<[1], [0], [0], [1], [0, 0, 1, 1], [], []>} : vector<16x16xbf16>, vector<16x256xbf16>, vector<16x256xf32> -> vector<16x256xf32>
    %261 = arith.addf %252, %260 : vector<16x256xf32>
    %c17_i32_134 = arith.constant 17 : i32
    %262 = tpu.dynamic_rotate %251 by %c17_i32_134 dim 1 : vector<16x256xf32>, i32 -> vector<16x256xf32>
    %263 = vector.broadcast %253 : vector<1x256xf32> to vector<16x256xf32>
    %264 = arith.mulf %262, %263 : vector<16x256xf32>
    %c0_135 = arith.constant 0 : index
    %c0_136 = arith.constant 0 : index
    %c0_137 = arith.constant 0 : index
    %265 = vector.load %arg8[%c0_135, %c0_136, %c0_137] : memref<9x16x16xbf16, #tpu.memory_space<vmem>>, vector<1x16x16xbf16>
    %266 = vector.shape_cast %265 : vector<1x16x16xbf16> to vector<16x16xbf16>
    %267 = arith.truncf %264 : vector<16x256xf32> to vector<16x256xbf16>
    %cst_138 = arith.constant dense<0.000000e+00> : vector<16x256xf32>
    %268 = tpu.matmul %266, %267, %cst_138 {dimension_numbers = #tpu.dot_dimension_numbers<[1], [0], [0], [1], [0, 0, 1, 1], [], []>} : vector<16x16xbf16>, vector<16x256xbf16>, vector<16x256xf32> -> vector<16x256xf32>
    %269 = arith.addf %261, %268 : vector<16x256xf32>
    %270 = vector.extract_strided_slice %6 {offsets = [1, 0], sizes = [1, 256], strides = [1, 1]} : vector<9x256xf32> to vector<1x256xf32>
    %c16_i32_139 = arith.constant 16 : i32
    %271 = tpu.dynamic_rotate %2 by %c16_i32_139 dim 1 : vector<16x256xf32>, i32 -> vector<16x256xf32>
    %272 = vector.broadcast %270 : vector<1x256xf32> to vector<16x256xf32>
    %273 = arith.mulf %271, %272 : vector<16x256xf32>
    %c1_140 = arith.constant 1 : index
    %c0_141 = arith.constant 0 : index
    %c0_142 = arith.constant 0 : index
    %274 = vector.load %arg7[%c1_140, %c0_141, %c0_142] : memref<9x16x16xbf16, #tpu.memory_space<vmem>>, vector<1x16x16xbf16>
    %275 = vector.shape_cast %274 : vector<1x16x16xbf16> to vector<16x16xbf16>
    %276 = arith.truncf %273 : vector<16x256xf32> to vector<16x256xbf16>
    %cst_143 = arith.constant dense<0.000000e+00> : vector<16x256xf32>
    %277 = tpu.matmul %275, %276, %cst_143 {dimension_numbers = #tpu.dot_dimension_numbers<[1], [0], [0], [1], [0, 0, 1, 1], [], []>} : vector<16x16xbf16>, vector<16x256xbf16>, vector<16x256xf32> -> vector<16x256xf32>
    %278 = arith.addf %269, %277 : vector<16x256xf32>
    %c16_i32_144 = arith.constant 16 : i32
    %279 = tpu.dynamic_rotate %251 by %c16_i32_144 dim 1 : vector<16x256xf32>, i32 -> vector<16x256xf32>
    %280 = vector.broadcast %270 : vector<1x256xf32> to vector<16x256xf32>
    %281 = arith.mulf %279, %280 : vector<16x256xf32>
    %c1_145 = arith.constant 1 : index
    %c0_146 = arith.constant 0 : index
    %c0_147 = arith.constant 0 : index
    %282 = vector.load %arg8[%c1_145, %c0_146, %c0_147] : memref<9x16x16xbf16, #tpu.memory_space<vmem>>, vector<1x16x16xbf16>
    %283 = vector.shape_cast %282 : vector<1x16x16xbf16> to vector<16x16xbf16>
    %284 = arith.truncf %281 : vector<16x256xf32> to vector<16x256xbf16>
    %cst_148 = arith.constant dense<0.000000e+00> : vector<16x256xf32>
    %285 = tpu.matmul %283, %284, %cst_148 {dimension_numbers = #tpu.dot_dimension_numbers<[1], [0], [0], [1], [0, 0, 1, 1], [], []>} : vector<16x16xbf16>, vector<16x256xbf16>, vector<16x256xf32> -> vector<16x256xf32>
    %286 = arith.addf %278, %285 : vector<16x256xf32>
    %287 = vector.extract_strided_slice %6 {offsets = [2, 0], sizes = [1, 256], strides = [1, 1]} : vector<9x256xf32> to vector<1x256xf32>
    %c15_i32_149 = arith.constant 15 : i32
    %288 = tpu.dynamic_rotate %2 by %c15_i32_149 dim 1 : vector<16x256xf32>, i32 -> vector<16x256xf32>
    %289 = vector.broadcast %287 : vector<1x256xf32> to vector<16x256xf32>
    %290 = arith.mulf %288, %289 : vector<16x256xf32>
    %c2_150 = arith.constant 2 : index
    %c0_151 = arith.constant 0 : index
    %c0_152 = arith.constant 0 : index
    %291 = vector.load %arg7[%c2_150, %c0_151, %c0_152] : memref<9x16x16xbf16, #tpu.memory_space<vmem>>, vector<1x16x16xbf16>
    %292 = vector.shape_cast %291 : vector<1x16x16xbf16> to vector<16x16xbf16>
    %293 = arith.truncf %290 : vector<16x256xf32> to vector<16x256xbf16>
    %cst_153 = arith.constant dense<0.000000e+00> : vector<16x256xf32>
    %294 = tpu.matmul %292, %293, %cst_153 {dimension_numbers = #tpu.dot_dimension_numbers<[1], [0], [0], [1], [0, 0, 1, 1], [], []>} : vector<16x16xbf16>, vector<16x256xbf16>, vector<16x256xf32> -> vector<16x256xf32>
    %295 = arith.addf %286, %294 : vector<16x256xf32>
    %c15_i32_154 = arith.constant 15 : i32
    %296 = tpu.dynamic_rotate %251 by %c15_i32_154 dim 1 : vector<16x256xf32>, i32 -> vector<16x256xf32>
    %297 = vector.broadcast %287 : vector<1x256xf32> to vector<16x256xf32>
    %298 = arith.mulf %296, %297 : vector<16x256xf32>
    %c2_155 = arith.constant 2 : index
    %c0_156 = arith.constant 0 : index
    %c0_157 = arith.constant 0 : index
    %299 = vector.load %arg8[%c2_155, %c0_156, %c0_157] : memref<9x16x16xbf16, #tpu.memory_space<vmem>>, vector<1x16x16xbf16>
    %300 = vector.shape_cast %299 : vector<1x16x16xbf16> to vector<16x16xbf16>
    %301 = arith.truncf %298 : vector<16x256xf32> to vector<16x256xbf16>
    %cst_158 = arith.constant dense<0.000000e+00> : vector<16x256xf32>
    %302 = tpu.matmul %300, %301, %cst_158 {dimension_numbers = #tpu.dot_dimension_numbers<[1], [0], [0], [1], [0, 0, 1, 1], [], []>} : vector<16x16xbf16>, vector<16x256xbf16>, vector<16x256xf32> -> vector<16x256xf32>
    %303 = arith.addf %295, %302 : vector<16x256xf32>
    %304 = vector.extract_strided_slice %6 {offsets = [3, 0], sizes = [1, 256], strides = [1, 1]} : vector<9x256xf32> to vector<1x256xf32>
    %c1_i32_159 = arith.constant 1 : i32
    %305 = tpu.dynamic_rotate %2 by %c1_i32_159 dim 1 : vector<16x256xf32>, i32 -> vector<16x256xf32>
    %306 = vector.broadcast %304 : vector<1x256xf32> to vector<16x256xf32>
    %307 = arith.mulf %305, %306 : vector<16x256xf32>
    %c3_160 = arith.constant 3 : index
    %c0_161 = arith.constant 0 : index
    %c0_162 = arith.constant 0 : index
    %308 = vector.load %arg7[%c3_160, %c0_161, %c0_162] : memref<9x16x16xbf16, #tpu.memory_space<vmem>>, vector<1x16x16xbf16>
    %309 = vector.shape_cast %308 : vector<1x16x16xbf16> to vector<16x16xbf16>
    %310 = arith.truncf %307 : vector<16x256xf32> to vector<16x256xbf16>
    %cst_163 = arith.constant dense<0.000000e+00> : vector<16x256xf32>
    %311 = tpu.matmul %309, %310, %cst_163 {dimension_numbers = #tpu.dot_dimension_numbers<[1], [0], [0], [1], [0, 0, 1, 1], [], []>} : vector<16x16xbf16>, vector<16x256xbf16>, vector<16x256xf32> -> vector<16x256xf32>
    %312 = arith.addf %303, %311 : vector<16x256xf32>
    %c1_i32_164 = arith.constant 1 : i32
    %313 = tpu.dynamic_rotate %251 by %c1_i32_164 dim 1 : vector<16x256xf32>, i32 -> vector<16x256xf32>
    %314 = vector.broadcast %304 : vector<1x256xf32> to vector<16x256xf32>
    %315 = arith.mulf %313, %314 : vector<16x256xf32>
    %c3_165 = arith.constant 3 : index
    %c0_166 = arith.constant 0 : index
    %c0_167 = arith.constant 0 : index
    %316 = vector.load %arg8[%c3_165, %c0_166, %c0_167] : memref<9x16x16xbf16, #tpu.memory_space<vmem>>, vector<1x16x16xbf16>
    %317 = vector.shape_cast %316 : vector<1x16x16xbf16> to vector<16x16xbf16>
    %318 = arith.truncf %315 : vector<16x256xf32> to vector<16x256xbf16>
    %cst_168 = arith.constant dense<0.000000e+00> : vector<16x256xf32>
    %319 = tpu.matmul %317, %318, %cst_168 {dimension_numbers = #tpu.dot_dimension_numbers<[1], [0], [0], [1], [0, 0, 1, 1], [], []>} : vector<16x16xbf16>, vector<16x256xbf16>, vector<16x256xf32> -> vector<16x256xf32>
    %320 = arith.addf %312, %319 : vector<16x256xf32>
    %c4_169 = arith.constant 4 : index
    %c0_170 = arith.constant 0 : index
    %c0_171 = arith.constant 0 : index
    %321 = vector.load %arg7[%c4_169, %c0_170, %c0_171] : memref<9x16x16xbf16, #tpu.memory_space<vmem>>, vector<1x16x16xbf16>
    %322 = vector.shape_cast %321 : vector<1x16x16xbf16> to vector<16x16xbf16>
    %323 = arith.truncf %2 : vector<16x256xf32> to vector<16x256xbf16>
    %cst_172 = arith.constant dense<0.000000e+00> : vector<16x256xf32>
    %324 = tpu.matmul %322, %323, %cst_172 {dimension_numbers = #tpu.dot_dimension_numbers<[1], [0], [0], [1], [0, 0, 1, 1], [], []>} : vector<16x16xbf16>, vector<16x256xbf16>, vector<16x256xf32> -> vector<16x256xf32>
    %325 = arith.addf %320, %324 : vector<16x256xf32>
    %c4_173 = arith.constant 4 : index
    %c0_174 = arith.constant 0 : index
    %c0_175 = arith.constant 0 : index
    %326 = vector.load %arg8[%c4_173, %c0_174, %c0_175] : memref<9x16x16xbf16, #tpu.memory_space<vmem>>, vector<1x16x16xbf16>
    %327 = vector.shape_cast %326 : vector<1x16x16xbf16> to vector<16x16xbf16>
    %328 = arith.truncf %251 : vector<16x256xf32> to vector<16x256xbf16>
    %cst_176 = arith.constant dense<0.000000e+00> : vector<16x256xf32>
    %329 = tpu.matmul %327, %328, %cst_176 {dimension_numbers = #tpu.dot_dimension_numbers<[1], [0], [0], [1], [0, 0, 1, 1], [], []>} : vector<16x16xbf16>, vector<16x256xbf16>, vector<16x256xf32> -> vector<16x256xf32>
    %330 = arith.addf %325, %329 : vector<16x256xf32>
    %331 = vector.extract_strided_slice %6 {offsets = [5, 0], sizes = [1, 256], strides = [1, 1]} : vector<9x256xf32> to vector<1x256xf32>
    %c255_i32_177 = arith.constant 255 : i32
    %332 = tpu.dynamic_rotate %2 by %c255_i32_177 dim 1 : vector<16x256xf32>, i32 -> vector<16x256xf32>
    %333 = vector.broadcast %331 : vector<1x256xf32> to vector<16x256xf32>
    %334 = arith.mulf %332, %333 : vector<16x256xf32>
    %c5_178 = arith.constant 5 : index
    %c0_179 = arith.constant 0 : index
    %c0_180 = arith.constant 0 : index
    %335 = vector.load %arg7[%c5_178, %c0_179, %c0_180] : memref<9x16x16xbf16, #tpu.memory_space<vmem>>, vector<1x16x16xbf16>
    %336 = vector.shape_cast %335 : vector<1x16x16xbf16> to vector<16x16xbf16>
    %337 = arith.truncf %334 : vector<16x256xf32> to vector<16x256xbf16>
    %cst_181 = arith.constant dense<0.000000e+00> : vector<16x256xf32>
    %338 = tpu.matmul %336, %337, %cst_181 {dimension_numbers = #tpu.dot_dimension_numbers<[1], [0], [0], [1], [0, 0, 1, 1], [], []>} : vector<16x16xbf16>, vector<16x256xbf16>, vector<16x256xf32> -> vector<16x256xf32>
    %339 = arith.addf %330, %338 : vector<16x256xf32>
    %c255_i32_182 = arith.constant 255 : i32
    %340 = tpu.dynamic_rotate %251 by %c255_i32_182 dim 1 : vector<16x256xf32>, i32 -> vector<16x256xf32>
    %341 = vector.broadcast %331 : vector<1x256xf32> to vector<16x256xf32>
    %342 = arith.mulf %340, %341 : vector<16x256xf32>
    %c5_183 = arith.constant 5 : index
    %c0_184 = arith.constant 0 : index
    %c0_185 = arith.constant 0 : index
    %343 = vector.load %arg8[%c5_183, %c0_184, %c0_185] : memref<9x16x16xbf16, #tpu.memory_space<vmem>>, vector<1x16x16xbf16>
    %344 = vector.shape_cast %343 : vector<1x16x16xbf16> to vector<16x16xbf16>
    %345 = arith.truncf %342 : vector<16x256xf32> to vector<16x256xbf16>
    %cst_186 = arith.constant dense<0.000000e+00> : vector<16x256xf32>
    %346 = tpu.matmul %344, %345, %cst_186 {dimension_numbers = #tpu.dot_dimension_numbers<[1], [0], [0], [1], [0, 0, 1, 1], [], []>} : vector<16x16xbf16>, vector<16x256xbf16>, vector<16x256xf32> -> vector<16x256xf32>
    %347 = arith.addf %339, %346 : vector<16x256xf32>
    %348 = vector.extract_strided_slice %6 {offsets = [6, 0], sizes = [1, 256], strides = [1, 1]} : vector<9x256xf32> to vector<1x256xf32>
    %c241_i32_187 = arith.constant 241 : i32
    %349 = tpu.dynamic_rotate %2 by %c241_i32_187 dim 1 : vector<16x256xf32>, i32 -> vector<16x256xf32>
    %350 = vector.broadcast %348 : vector<1x256xf32> to vector<16x256xf32>
    %351 = arith.mulf %349, %350 : vector<16x256xf32>
    %c6_188 = arith.constant 6 : index
    %c0_189 = arith.constant 0 : index
    %c0_190 = arith.constant 0 : index
    %352 = vector.load %arg7[%c6_188, %c0_189, %c0_190] : memref<9x16x16xbf16, #tpu.memory_space<vmem>>, vector<1x16x16xbf16>
    %353 = vector.shape_cast %352 : vector<1x16x16xbf16> to vector<16x16xbf16>
    %354 = arith.truncf %351 : vector<16x256xf32> to vector<16x256xbf16>
    %cst_191 = arith.constant dense<0.000000e+00> : vector<16x256xf32>
    %355 = tpu.matmul %353, %354, %cst_191 {dimension_numbers = #tpu.dot_dimension_numbers<[1], [0], [0], [1], [0, 0, 1, 1], [], []>} : vector<16x16xbf16>, vector<16x256xbf16>, vector<16x256xf32> -> vector<16x256xf32>
    %356 = arith.addf %347, %355 : vector<16x256xf32>
    %c241_i32_192 = arith.constant 241 : i32
    %357 = tpu.dynamic_rotate %251 by %c241_i32_192 dim 1 : vector<16x256xf32>, i32 -> vector<16x256xf32>
    %358 = vector.broadcast %348 : vector<1x256xf32> to vector<16x256xf32>
    %359 = arith.mulf %357, %358 : vector<16x256xf32>
    %c6_193 = arith.constant 6 : index
    %c0_194 = arith.constant 0 : index
    %c0_195 = arith.constant 0 : index
    %360 = vector.load %arg8[%c6_193, %c0_194, %c0_195] : memref<9x16x16xbf16, #tpu.memory_space<vmem>>, vector<1x16x16xbf16>
    %361 = vector.shape_cast %360 : vector<1x16x16xbf16> to vector<16x16xbf16>
    %362 = arith.truncf %359 : vector<16x256xf32> to vector<16x256xbf16>
    %cst_196 = arith.constant dense<0.000000e+00> : vector<16x256xf32>
    %363 = tpu.matmul %361, %362, %cst_196 {dimension_numbers = #tpu.dot_dimension_numbers<[1], [0], [0], [1], [0, 0, 1, 1], [], []>} : vector<16x16xbf16>, vector<16x256xbf16>, vector<16x256xf32> -> vector<16x256xf32>
    %364 = arith.addf %356, %363 : vector<16x256xf32>
    %365 = vector.extract_strided_slice %6 {offsets = [7, 0], sizes = [1, 256], strides = [1, 1]} : vector<9x256xf32> to vector<1x256xf32>
    %c240_i32_197 = arith.constant 240 : i32
    %366 = tpu.dynamic_rotate %2 by %c240_i32_197 dim 1 : vector<16x256xf32>, i32 -> vector<16x256xf32>
    %367 = vector.broadcast %365 : vector<1x256xf32> to vector<16x256xf32>
    %368 = arith.mulf %366, %367 : vector<16x256xf32>
    %c7_198 = arith.constant 7 : index
    %c0_199 = arith.constant 0 : index
    %c0_200 = arith.constant 0 : index
    %369 = vector.load %arg7[%c7_198, %c0_199, %c0_200] : memref<9x16x16xbf16, #tpu.memory_space<vmem>>, vector<1x16x16xbf16>
    %370 = vector.shape_cast %369 : vector<1x16x16xbf16> to vector<16x16xbf16>
    %371 = arith.truncf %368 : vector<16x256xf32> to vector<16x256xbf16>
    %cst_201 = arith.constant dense<0.000000e+00> : vector<16x256xf32>
    %372 = tpu.matmul %370, %371, %cst_201 {dimension_numbers = #tpu.dot_dimension_numbers<[1], [0], [0], [1], [0, 0, 1, 1], [], []>} : vector<16x16xbf16>, vector<16x256xbf16>, vector<16x256xf32> -> vector<16x256xf32>
    %373 = arith.addf %364, %372 : vector<16x256xf32>
    %c240_i32_202 = arith.constant 240 : i32
    %374 = tpu.dynamic_rotate %251 by %c240_i32_202 dim 1 : vector<16x256xf32>, i32 -> vector<16x256xf32>
    %375 = vector.broadcast %365 : vector<1x256xf32> to vector<16x256xf32>
    %376 = arith.mulf %374, %375 : vector<16x256xf32>
    %c7_203 = arith.constant 7 : index
    %c0_204 = arith.constant 0 : index
    %c0_205 = arith.constant 0 : index
    %377 = vector.load %arg8[%c7_203, %c0_204, %c0_205] : memref<9x16x16xbf16, #tpu.memory_space<vmem>>, vector<1x16x16xbf16>
    %378 = vector.shape_cast %377 : vector<1x16x16xbf16> to vector<16x16xbf16>
    %379 = arith.truncf %376 : vector<16x256xf32> to vector<16x256xbf16>
    %cst_206 = arith.constant dense<0.000000e+00> : vector<16x256xf32>
    %380 = tpu.matmul %378, %379, %cst_206 {dimension_numbers = #tpu.dot_dimension_numbers<[1], [0], [0], [1], [0, 0, 1, 1], [], []>} : vector<16x16xbf16>, vector<16x256xbf16>, vector<16x256xf32> -> vector<16x256xf32>
    %381 = arith.addf %373, %380 : vector<16x256xf32>
    %382 = vector.extract_strided_slice %6 {offsets = [8, 0], sizes = [1, 256], strides = [1, 1]} : vector<9x256xf32> to vector<1x256xf32>
    %c239_i32_207 = arith.constant 239 : i32
    %383 = tpu.dynamic_rotate %2 by %c239_i32_207 dim 1 : vector<16x256xf32>, i32 -> vector<16x256xf32>
    %384 = vector.broadcast %382 : vector<1x256xf32> to vector<16x256xf32>
    %385 = arith.mulf %383, %384 : vector<16x256xf32>
    %c8_208 = arith.constant 8 : index
    %c0_209 = arith.constant 0 : index
    %c0_210 = arith.constant 0 : index
    %386 = vector.load %arg7[%c8_208, %c0_209, %c0_210] : memref<9x16x16xbf16, #tpu.memory_space<vmem>>, vector<1x16x16xbf16>
    %387 = vector.shape_cast %386 : vector<1x16x16xbf16> to vector<16x16xbf16>
    %388 = arith.truncf %385 : vector<16x256xf32> to vector<16x256xbf16>
    %cst_211 = arith.constant dense<0.000000e+00> : vector<16x256xf32>
    %389 = tpu.matmul %387, %388, %cst_211 {dimension_numbers = #tpu.dot_dimension_numbers<[1], [0], [0], [1], [0, 0, 1, 1], [], []>} : vector<16x16xbf16>, vector<16x256xbf16>, vector<16x256xf32> -> vector<16x256xf32>
    %390 = arith.addf %381, %389 : vector<16x256xf32>
    %c239_i32_212 = arith.constant 239 : i32
    %391 = tpu.dynamic_rotate %251 by %c239_i32_212 dim 1 : vector<16x256xf32>, i32 -> vector<16x256xf32>
    %392 = vector.broadcast %382 : vector<1x256xf32> to vector<16x256xf32>
    %393 = arith.mulf %391, %392 : vector<16x256xf32>
    %c8_213 = arith.constant 8 : index
    %c0_214 = arith.constant 0 : index
    %c0_215 = arith.constant 0 : index
    %394 = vector.load %arg8[%c8_213, %c0_214, %c0_215] : memref<9x16x16xbf16, #tpu.memory_space<vmem>>, vector<1x16x16xbf16>
    %395 = vector.shape_cast %394 : vector<1x16x16xbf16> to vector<16x16xbf16>
    %396 = arith.truncf %393 : vector<16x256xf32> to vector<16x256xbf16>
    %cst_216 = arith.constant dense<0.000000e+00> : vector<16x256xf32>
    %397 = tpu.matmul %395, %396, %cst_216 {dimension_numbers = #tpu.dot_dimension_numbers<[1], [0], [0], [1], [0, 0, 1, 1], [], []>} : vector<16x16xbf16>, vector<16x256xbf16>, vector<16x256xf32> -> vector<16x256xf32>
    %398 = arith.addf %390, %397 : vector<16x256xf32>
    %399 = vector.extract_strided_slice %7 {offsets = [32, 0], sizes = [16, 1], strides = [1, 1]} : vector<48x1xf32> to vector<16x1xf32>
    %400 = vector.broadcast %399 : vector<16x1xf32> to vector<16x256xf32>
    %401 = arith.addf %398, %400 : vector<16x256xf32>
    %402 = math.tanh %401 : vector<16x256xf32>
    %cst_217 = arith.constant 1.000000e+00 : f32
    %403 = vector.broadcast %cst_217 : f32 to vector<16x256xf32>
    %404 = arith.subf %403, %250 : vector<16x256xf32>
    %405 = arith.mulf %404, %85 : vector<16x256xf32>
    %406 = arith.mulf %250, %402 : vector<16x256xf32>
    %407 = arith.addf %405, %406 : vector<16x256xf32>
    %c0_218 = arith.constant 0 : index
    %c0_219 = arith.constant 0 : index
    %c0_220 = arith.constant 0 : index
    %408 = vector.load %arg10[%c0_218, %c0_219, %c0_220] : memref<1x16x256xf32, #tpu.memory_space<vmem>>, vector<1x16x256xf32>
    %409 = vector.shape_cast %408 : vector<1x16x256xf32> to vector<16x256xf32>
    %410 = vector.shape_cast %407 : vector<16x256xf32> to vector<1x16x256xf32>
    tpu.vector_store %arg10[%c0_218, %c0_219, %c0_220], %410 {strides = array<i32>} : memref<1x16x256xf32, #tpu.memory_space<vmem>>, vector<1x16x256xf32>,
    %c0_221 = arith.constant 0 : index
    %c0_222 = arith.constant 0 : index
    %c0_223 = arith.constant 0 : index
    %411 = vector.load %arg11[%c0_221, %c0_222, %c0_223] : memref<1x16x256xf32, #tpu.memory_space<vmem>>, vector<1x16x256xf32>
    %412 = vector.shape_cast %411 : vector<1x16x256xf32> to vector<16x256xf32>
    %413 = vector.shape_cast %251 : vector<16x256xf32> to vector<1x16x256xf32>
    tpu.vector_store %arg11[%c0_221, %c0_222, %c0_223], %413 {strides = array<i32>} : memref<1x16x256xf32, #tpu.memory_space<vmem>>, vector<1x16x256xf32>,
    return
  }
  func.func @transform_0(%arg0: i32) -> (i32, i32, i32) {
    %c0_i32 = arith.constant 0 : i32
    %c0_i32_0 = arith.constant 0 : i32
    %c0_i32_1 = arith.constant 0 : i32
    return %arg0, %c0_i32, %c0_i32_0 : i32, i32, i32
  }
  func.func @transform_1(%arg0: i32) -> (i32, i32, i32) {
    %c0_i32 = arith.constant 0 : i32
    %c0_i32_0 = arith.constant 0 : i32
    %c0_i32_1 = arith.constant 0 : i32
    return %arg0, %c0_i32, %c0_i32_0 : i32, i32, i32
  }
  func.func @transform_2(%arg0: i32) -> (i32, i32) {
    %c0_i32 = arith.constant 0 : i32
    %c0_i32_0 = arith.constant 0 : i32
    %c0_i32_1 = arith.constant 0 : i32
    return %c0_i32, %c0_i32_0 : i32, i32
  }
  func.func @transform_3(%arg0: i32) -> (i32, i32, i32) {
    %c0_i32 = arith.constant 0 : i32
    %c0_i32_0 = arith.constant 0 : i32
    %c0_i32_1 = arith.constant 0 : i32
    %c0_i32_2 = arith.constant 0 : i32
    return %c0_i32, %c0_i32_0, %c0_i32_1 : i32, i32, i32
  }
  func.func @transform_4(%arg0: i32) -> (i32, i32, i32) {
    %c0_i32 = arith.constant 0 : i32
    %c0_i32_0 = arith.constant 0 : i32
    %c0_i32_1 = arith.constant 0 : i32
    %c0_i32_2 = arith.constant 0 : i32
    return %c0_i32, %c0_i32_0, %c0_i32_1 : i32, i32, i32
  }
  func.func @transform_5(%arg0: i32) -> (i32, i32, i32) {
    %c0_i32 = arith.constant 0 : i32
    %c0_i32_0 = arith.constant 0 : i32
    %c0_i32_1 = arith.constant 0 : i32
    %c0_i32_2 = arith.constant 0 : i32
    return %c0_i32, %c0_i32_0, %c0_i32_1 : i32, i32, i32
  }
  func.func @transform_6(%arg0: i32) -> (i32, i32, i32) {
    %c0_i32 = arith.constant 0 : i32
    %c0_i32_0 = arith.constant 0 : i32
    %c0_i32_1 = arith.constant 0 : i32
    %c0_i32_2 = arith.constant 0 : i32
    return %c0_i32, %c0_i32_0, %c0_i32_1 : i32, i32, i32
  }
  func.func @transform_7(%arg0: i32) -> (i32, i32, i32) {
    %c0_i32 = arith.constant 0 : i32
    %c0_i32_0 = arith.constant 0 : i32
    %c0_i32_1 = arith.constant 0 : i32
    %c0_i32_2 = arith.constant 0 : i32
    return %c0_i32, %c0_i32_0, %c0_i32_1 : i32, i32, i32
  }
  func.func @transform_8(%arg0: i32) -> (i32, i32) {
    %c0_i32 = arith.constant 0 : i32
    %c0_i32_0 = arith.constant 0 : i32
    %c0_i32_1 = arith.constant 0 : i32
    return %c0_i32, %c0_i32_0 : i32, i32
  }
  func.func @transform_9(%arg0: i32) -> (i32, i32, i32) {
    %c0_i32 = arith.constant 0 : i32
    %c0_i32_0 = arith.constant 0 : i32
    %c0_i32_1 = arith.constant 0 : i32
    return %arg0, %c0_i32, %c0_i32_0 : i32, i32, i32
  }
  func.func @transform_10(%arg0: i32) -> (i32, i32, i32) {
    %c0_i32 = arith.constant 0 : i32
    %c0_i32_0 = arith.constant 0 : i32
    %c0_i32_1 = arith.constant 0 : i32
    return %arg0, %c0_i32, %c0_i32_0 : i32, i32, i32
  }
}

</mosaic_0001>

<bundles_post_ra>
// kernel: conv_gru_cell.1
= control target key start
LH: loop header
LB: loop body
LE: loop exit
PB: predicated region body
PF: predicated region fallthrough
CT: control target
= control target key end

     0   :  { %s4951_s13 = smov 0   ;;  %s6269_s0 = inlined_call_operand.vmem [shape: bf16[2,16,256], index: 0, kind: input, shape index: {}]   ;;  %s6270_s1 = inlined_call_operand.vmem [shape: bf16[2,16,256], index: 1, kind: input, shape index: {}]   ;;  %s6271_s2 = inlined_call_operand.vmem [shape: f32[9,256], index: 2, kind: input, shape index: {}]   ;;  %s6272_s3 = inlined_call_operand.vmem [shape: bf16[9,16,16], index: 3, kind: input, shape index: {}]   ;;  %s6273_s4 = inlined_call_operand.vmem [shape: bf16[9,32,16], index: 4, kind: input, shape index: {}]   ;;  %s6274_s5 = inlined_call_operand.vmem [shape: bf16[9,32,16], index: 5, kind: input, shape index: {}]   ;;  %s6275_s6 = inlined_call_operand.vmem [shape: bf16[9,16,16], index: 6, kind: input, shape index: {}]   ;;  %s6276_s7 = inlined_call_operand.vmem [shape: bf16[9,16,16], index: 7, kind: input, shape index: {}]   ;;  %s6277_s8 = inlined_call_operand.vmem [shape: f32[48,1], index: 8, kind: input, shape index: {}]   ;;  %s6278_s9 = inlined_call_operand.vmem [shape: f32[2,16,256], index: 9, kind: output, shape index: {0}]   ;;  %s6279_s10 = inlined_call_operand.vmem [shape: f32[2,16,256], index: 10, kind: output, shape index: {1}]  }
   0x1 LB: > { %s4318_s14 = sadd.s32 4294967295, %s4885_s13   ;;  %p4322_p0 = scmp.ge.s32.totalorder %s4885_s13, 1  ;;  %s4885_s13 = sphi %s4951_s13, %s21_s13  }
   0x2   : > { %p325_p1 = scmp.lt.s32.totalorder %s4885_s13, 3 }
   0x4   : > { %p326_p2 = pnand %p4322_p0, %p325_p1 }
   0x6   : > { %329 = sbr.rel (%p326_p2) target bundleno = 1300 (0x514), region = 56 }
   0xb   : > { %p373_p3 = scmp.lt.s32.totalorder %s4318_s14, 1  ;;  %s4887_s19 = smov 17   ;;  %v6280_v8 = vmov 0   ;;  %v424_v11 = vlaneseq  ;;  %v5008_v16 = vld [vmem:[%s6271_s2 + $0x8] sm:$0xff]  ;;  %v5016_v20 = vld [vmem:[%s6271_s2] sm:$0xff]  ;;  %vm482_vm4 = vcmask 130048  }
   0xc   : > { %s4888_s20 = smov 16   ;;  %s4889_s21 = smov 15   ;;  %518 = vmatprep.mubr.bf16.mxu0 %v6280_v8  ;;  %569 = vmatprep.mubr.bf16.mxu1 %v6280_v8 }
   0xd   : > { %s6373_s14 = smov (!%p373_p3, %s4318_s14), 1  ;;  %4766 = vset.pattern.permute.xlu0 %v6280_v8  ;;  %4767 = vset.pattern.permute.xlu1 %v6280_v8  ;;  %s4891_s22 = smov 1   ;;  %v4999_v12 = vshrl.u32 %v424_v11, 7  ;;  %v5001_v13 = vand.u32 127, %v424_v11 }
   0xe   : > { %s4585_s15 = sshll.u32 %s6373_s14, 4  ;;  %s4892_s23 = smov 127  }
   0xf   : > { %s382_s18 = scalar_lea.vmem %s6270_s1, %s4585_s15  ;;  %s4893_s24 = smov 113   ;;  %v433_v14 = vsub.s32 0, %v4999_v12  ;;  %v595_v15 = vsub.s32 2, %v4999_v12  ;;  %v462_v17 = vsub.s32 1, %v4999_v12  ;;  %v680_v21 = vsub.s32 3, %v4999_v12 }
  0x10   : > { %v4967_v0 = vld [vmem:[%s382_s18] sm:$0xff]  ;;  %v4969_v1 = vld [vmem:[%s382_s18 + $0x8] sm:$0xff]  ;;  %s4894_s25 = smov 112   ;;  %s4895_s26 = smov 111   ;;  %vm588_vm0 = vcmp.lt.s32.totalorder %v5001_v13, 15  ;;  %vm426_vm1 = vcmp.lt.s32.totalorder %v5001_v13, 17 }
  0x11   : > { %v402_v2 = vunpack.c.l.bf16 %v4967_v0  ;;  %v404_v3 = vunpack.c.l.bf16 %v4969_v1  ;;  %v403_v4 = vunpack.c.h.bf16 %v4967_v0  ;;  %v405_v5 = vunpack.c.h.bf16 %v4969_v1  ;;  %s377_s28 = scalar_lea.vmem %s6269_s0, %s4585_s15  ;;  %s4587_s15 = sshll.u32 %s6373_s14, 5 }
  0x12   : > { %v4349_v9 = vcombine.high %v4967_v0, %v4969_v1  ;;  %v4348_v10 = vcombine.low %v4967_v0, %v4969_v1  ;;  %v5022_v22 = vrot.slane %v5008_v16, %v433_v14  ;;  %vm455_vm2 = vcmp.lt.s32.totalorder %v5001_v13, 16  ;;  %s392_s11 = scalar_lea.vmem %s6279_s10, %s4587_s15 }
  0x13   : > { %v4616_v6 = vpack.i.bf16 %v404_v3, %v402_v2  ;;  %v4621_v7 = vpack.i.bf16 %v405_v5, %v403_v4  ;;  %v5026_v23 = vrot.slane %v5016_v20, %v595_v15  ;;  %v5029_v24 = vrot.slane %v5008_v16, %v462_v17 }
  0x14   : > { %v833_v25 = vsub.s32 5, %v4999_v12  ;;  %v918_v26 = vsub.s32 6, %v4999_v12  ;;  %v5036_v29 = vrot.slane %v5016_v20, %v462_v17  ;;  %v5039_v30 = vrot.slane %v5016_v20, %v433_v14 }
  0x15   : > { %4617 = vrot.lane.b32.xlu1 %v4616_v6, %s4887_s19  ;;  %4607 = vrot.lane.b32.xlu0 %v4616_v6, %s4888_s20  ;;  %6319 = vst [vmem:[#allocation2_spill] sm:$0xff] %v5026_v23  ;;  %6320 = vst [vmem:[#allocation3_spill] sm:$0xff] %v5029_v24  ;;  %vm673_vm3 = vcmp.lt.s32.totalorder %v5001_v13, 1  ;;  %v5043_v35 = vrot.slane %v5016_v20, %v680_v21  ;;  %v5046_v36 = vrot.slane %v5008_v16, %v595_v15 }
  0x16   : > { %v5049_v41 = vrot.slane %v5016_v20, %v833_v25  ;;  %v5052_v42 = vrot.slane %v5008_v16, %v680_v21  ;;  %v5057_v43 = vrot.slane %v5016_v20, %v918_v26  ;;  %v5060_v44 = vrot.slane %v5008_v16, %v833_v25 }
  0x17   : > { %6321 = vst [vmem:[#allocation4_spill] sm:$0xff] %v5043_v35  ;;  %6322 = vst [vmem:[#allocation5_spill] sm:$0xff] %v5046_v36  ;;  %vm826_vm5 = vcmp.lt.s32.totalorder %v5001_v13, 127  ;;  %vm911_vm6 = vcmp.lt.s32.totalorder %v5001_v13, 113  ;;  %vm996_vm7 = vcmp.lt.s32.totalorder %v5001_v13, 112  ;;  %vm1081_vm8 = vcmp.lt.s32.totalorder %v5001_v13, 111 }
  0x18   : > { %6323 = vst [vmem:[#allocation6_spill] sm:$0xff] %v5049_v41  ;;  %6324 = vst [vmem:[#allocation7_spill] sm:$0xff] %v5052_v42  ;;  %v4832_v13 = vld [vmem:[%s6276_s7 + $0x38] sm:$0xff]  }
  0x19   : > { %4622 = vrot.lane.b32.xlu1 %v4621_v7, %s4887_s19  ;;  %4612 = vrot.lane.b32.xlu0 %v4621_v7, %s4888_s20  ;;  %6325 = vst [vmem:[#allocation8_spill] sm:$0xff] %v5057_v43  ;;  %6326 = vst [vmem:[#allocation9_spill] sm:$0xff] %v5060_v44 }
  0x1d   : > { %4632 = vrot.lane.b32.xlu1 %v4621_v7, %s4889_s21  ;;  %4627 = vrot.lane.b32.xlu0 %v4616_v6, %s4889_s21 }
  0x21   : > { %4642 = vrot.lane.b32.xlu1 %v4621_v7, %s4891_s22  ;;  %4637 = vrot.lane.b32.xlu0 %v4616_v6, %s4891_s22 }
  0x25   : > { %4652 = vrot.lane.b32.xlu1 %v4621_v7, %s4892_s23  ;;  %4647 = vrot.lane.b32.xlu0 %v4616_v6, %s4892_s23 }
  0x29   : > { %4662 = vrot.lane.b32.xlu1 %v4621_v7, %s4893_s24  ;;  %4657 = vrot.lane.b32.xlu0 %v4616_v6, %s4893_s24 }
  0x2d   : > { %4672 = vrot.lane.b32.xlu1 %v4621_v7, %s4894_s25  ;;  %4667 = vrot.lane.b32.xlu0 %v4616_v6, %s4894_s25 }
  0x31   : > { %4682 = vrot.lane.b32.xlu1 %v4621_v7, %s4895_s26  ;;  %4677 = vrot.lane.b32.xlu0 %v4616_v6, %s4895_s26 }
  0x87   : > { %v5011_v18 = vpop.permute.xlu1 %4617  ;;  %v4608_v19 = vpop.permute.xlu0 %4607 }
  0x88   : > { %v4620_v27 = vunpack.i.h.bf16 %v5011_v18  ;;  %v4619_v28 = vunpack.i.l.bf16 %v5011_v18  ;;  %v4610_v31 = vunpack.i.h.bf16 %v4608_v19  ;;  %v4609_v32 = vunpack.i.l.bf16 %v4608_v19 }
  0x8b   : > { %v4623_v33 = vpop.permute.xlu1 %4622  ;;  %v4613_v34 = vpop.permute.xlu0 %4612 }
  0x8c   : > { %v4625_v37 = vunpack.i.h.bf16 %v4623_v33  ;;  %v4624_v38 = vunpack.i.l.bf16 %v4623_v33  ;;  %v4615_v39 = vunpack.i.h.bf16 %v4613_v34  ;;  %v4614_v40 = vunpack.i.l.bf16 %v4613_v34 }
  0x8e   : > { %v427_v45 = vsel %vm426_vm1, %v4619_v28, %v4624_v38  ;;  %v428_v46 = vsel %vm426_vm1, %v4620_v27, %v4625_v37  ;;  %v456_v47 = vsel %vm455_vm2, %v4609_v32, %v4614_v40  ;;  %v457_v48 = vsel %vm455_vm2, %v4610_v31, %v4615_v39 }
  0x8f   : > { %v4633_v49 = vpop.permute.xlu1 %4632  ;;  %v4628_v50 = vpop.permute.xlu0 %4627  ;;  %v440_v51 = vmul.f32 %v5022_v22, %v427_v45  ;;  %v442_v52 = vmul.f32 %v5022_v22, %v428_v46  ;;  %v469_v53 = vmul.f32 %v5029_v24, %v456_v47  ;;  %v471_v54 = vmul.f32 %v5029_v24, %v457_v48  ;;  %v4768_v48 = vld [vmem:[%s6272_s3 + $0x8] sm:$0xff]  }
  0x90   : > { %v4635_v55 = vunpack.i.h.bf16 %v4633_v49  ;;  %v4634_v56 = vunpack.i.l.bf16 %v4633_v49  ;;  %v4630_v57 = vunpack.i.h.bf16 %v4628_v50  ;;  %v4629_v58 = vunpack.i.l.bf16 %v4628_v50 }
  0x91   : > { %v446_v59 = vpack.c.bf16 %v442_v52, %v440_v51  ;;  %v476_v60 = vpack.c.bf16 %v471_v54, %v469_v53  ;;  %v458_v61 = vsel %vm455_vm2, %v4614_v40, %v4609_v32  ;;  %v459_v62 = vsel %vm455_vm2, %v4615_v39, %v4610_v31 }
  0x92   : > { %v590_v63 = vsel %vm588_vm0, %v4630_v57, %v4635_v55  ;;  %v592_v2 = vsel %vm588_vm0, %v4635_v55, %v4630_v57  ;;  %v589_v3 = vsel %vm588_vm0, %v4629_v58, %v4634_v56  ;;  %v591_v4 = vsel %vm588_vm0, %v4634_v56, %v4629_v58 }
  0x93   : > { %v603_v5 = vmul.f32 %v5026_v23, %v592_v2  ;;  %v601_v6 = vmul.f32 %v5026_v23, %v591_v4  ;;  %v4643_v7 = vpop.permute.xlu1 %4642  ;;  %551 = vmatprep.subr.bf16.mxu1 %v446_v59  ;;  %v4638_v11 = vpop.permute.xlu0 %4637  ;;  %500 = vmatprep.subr.bf16.mxu0 %v476_v60  ;;  %v468_v14 = vmul.f32 %v5036_v29, %v458_v61  ;;  %v1003_v55 = vsub.s32 7, %v4999_v12  ;;  %v4769_v60 = vld [vmem:[%s6272_s3] sm:$0xff]  }
  0x94   : > { %v4645_v15 = vunpack.i.h.bf16 %v4643_v7  ;;  %v4644_v17 = vunpack.i.l.bf16 %v4643_v7  ;;  %v4640_v18 = vunpack.i.h.bf16 %v4638_v11  ;;  %v4639_v19 = vunpack.i.l.bf16 %v4638_v11 }
  0x95   : > { %v470_v21 = vmul.f32 %v5036_v29, %v459_v62  ;;  %v429_v25 = vsel %vm426_vm1, %v4624_v38, %v4619_v28  ;;  %v430_v31 = vsel %vm426_vm1, %v4625_v37, %v4620_v27  ;;  %v602_v32 = vmul.f32 %v5046_v36, %v589_v3 }
  0x96   : > { %v675_v33 = vsel %vm673_vm3, %v4640_v18, %v4645_v15  ;;  %v677_v34 = vsel %vm673_vm3, %v4645_v15, %v4640_v18  ;;  %v674_v39 = vsel %vm673_vm3, %v4639_v19, %v4644_v17  ;;  %v676_v40 = vsel %vm673_vm3, %v4644_v17, %v4639_v19 }
  0x97   : > { %v688_v45 = vmul.f32 %v5043_v35, %v677_v34  ;;  %v686_v28 = vmul.f32 %v5043_v35, %v676_v40  ;;  %v475_v38 = vpack.c.bf16 %v470_v21, %v468_v14  ;;  %v439_v27 = vmul.f32 %v5039_v30, %v429_v25  ;;  %v4653_v37 = vpop.permute.xlu1 %4652  ;;  %v4648_v46 = vpop.permute.xlu0 %4647  ;;  %v4770_v40 = vld [vmem:[%s6272_s3 + $0x10] sm:$0xff]  }
  0x98   : > { %v441_v47 = vmul.f32 %v5039_v30, %v430_v31  ;;  %v604_v49 = vmul.f32 %v5046_v36, %v590_v63  ;;  %v4655_v50 = vunpack.i.h.bf16 %v4653_v37  ;;  %v4654_v51 = vunpack.i.l.bf16 %v4653_v37 }
  0x99   : > { %501 = vmatpush1.bf16.msra.mxu0 %v475_v38  ;;  %v4650_v52 = vunpack.i.h.bf16 %v4648_v46  ;;  %v4649_v53 = vunpack.i.l.bf16 %v4648_v46  ;;  %v687_v54 = vmul.f32 %v5052_v42, %v674_v39  ;;  %v608_v58 = vpack.c.bf16 %v603_v5, %v601_v6 }
  0x9a   : > { %v445_v56 = vpack.c.bf16 %v441_v47, %v439_v27  ;;  %v609_v57 = vpack.c.bf16 %v604_v49, %v602_v32  ;;  %v689_v59 = vmul.f32 %v5052_v42, %v675_v33  ;;  %v693_v6 = vpack.c.bf16 %v688_v45, %v686_v28 }
  0x9b   : > { %v828_v61 = vsel %vm826_vm5, %v4650_v52, %v4655_v50  ;;  %v830_v62 = vsel %vm826_vm5, %v4655_v50, %v4650_v52  ;;  %v827_v63 = vsel %vm826_vm5, %v4649_v53, %v4654_v51  ;;  %v829_v2 = vsel %vm826_vm5, %v4654_v51, %v4649_v53  ;;  %v4663_v3 = vpop.permute.xlu1 %4662  ;;  %v4658_v4 = vpop.permute.xlu0 %4657  ;;  %v4771_v51 = vld [vmem:[%s6272_s3 + $0x18] sm:$0xff]  }
  0x9c   : > { %552 = vmatpush1.bf16.msra.mxu1 %v445_v56  ;;  %4334 = vmatmul.mubr.msk.bf16.vlgmr.msra.gmra.mxu0 %vm482_vm4, %v4768_v48  ;;  %v694_v5 = vpack.c.bf16 %v689_v59, %v687_v54  ;;  %v4665_v7 = vunpack.i.h.bf16 %v4663_v3  ;;  %v5131_v11 = vrot.slane %v5008_v16, %v918_v26  ;;  %v4664_v14 = vunpack.i.l.bf16 %v4663_v3  ;;  %v4774_v3 = vld [vmem:[%s6272_s3 + $0x20] sm:$0xff]  }
  0x9d   : > { %632 = vmatprep.subr.bf16.mxu0 %v609_v57  ;;  %650 = vmatprep.mubr.bf16.mxu0 %v6280_v8  ;;  %v4660_v15 = vunpack.i.h.bf16 %v4658_v4  ;;  %v4659_v17 = vunpack.i.l.bf16 %v4658_v4  ;;  %v840_v18 = vmul.f32 %v5060_v44, %v829_v2  ;;  %v841_v19 = vmul.f32 %v5049_v41, %v828_v61 }
  0x9e   : > { %6327 = vst [vmem:[#allocation10_spill] sm:$0xff] %v5131_v11  ;;  %v839_v21 = vmul.f32 %v5049_v41, %v827_v63  ;;  %633 = vmatpush1.bf16.msra.mxu0 %v608_v58  ;;  %717 = vmatprep.subr.bf16.mxu1 %v694_v5  ;;  %v842_v25 = vmul.f32 %v5060_v44, %v830_v62  ;;  %v5187_v63 = vld [vmem:[%s6271_s2 + $0x18] ss:$0 sm:$0xff] }
  0x9f   : > { %4336 = vmatmul.mubr.msk.bf16.vlgmr.msra.gmra.mxu1 %vm482_vm4, %v4769_v60  ;;  %v915_v12 = vsel %vm911_vm6, %v4665_v7, %v4660_v15  ;;  %v914_v26 = vsel %vm911_vm6, %v4664_v14, %v4659_v17  ;;  %v4673_v31 = vpop.permute.xlu1 %4672  ;;  %v4668_v32 = vpop.permute.xlu0 %4667  ;;  %v5145_v33 = vrot.slane %v5008_v16, %v1003_v55  ;;  %v913_v34 = vsel %vm911_vm6, %v4660_v15, %v4665_v7 }
  0xa0   : > { %718 = vmatpush1.bf16.msra.mxu1 %v693_v6  ;;  %735 = vmatprep.mubr.bf16.mxu1 %v6280_v8  ;;  %v912_v39 = vsel %vm911_vm6, %v4659_v17, %v4664_v14  ;;  %v4675_v45 = vunpack.i.h.bf16 %v4673_v31  ;;  %v4674_v28 = vunpack.i.l.bf16 %v4673_v31  ;;  %v4670_v38 = vunpack.i.h.bf16 %v4668_v32  ;;  %v4363_v14 = vld [vmem:[%s6271_s2 + $0x10] ss:$0 sm:$0xff] }
  0xa1   : > { %6328 = vst [vmem:[#allocation11_spill] sm:$0xff] %v5145_v33  ;;  %v4669_v27 = vunpack.i.l.bf16 %v4668_v32  ;;  %785 = vmatprep.subr.bf16.mxu0 %v4349_v9  ;;  %v847_v16 = vpack.c.bf16 %v842_v25, %v840_v18  ;;  %v925_v37 = vmul.f32 %v5131_v11, %v914_v26  ;;  %v5160_v46 = vrot.slane %v5016_v20, %v1003_v55  ;;  %v4775_v18 = vld [vmem:[%s6272_s3 + $0x28] sm:$0xff]   ;;  %v4776_v26 = vld [vmem:[%s6272_s3 + $0x30] sm:$0xff]   ;;  %v4777_v32 = vld [vmem:[%s6272_s3 + $0x38] sm:$0xff]  }
  0xa2   : > { %v846_v47 = vpack.c.bf16 %v841_v19, %v839_v21  ;;  %v927_v48 = vmul.f32 %v5131_v11, %v915_v12  ;;  %v926_v49 = vmul.f32 %v5057_v43, %v913_v34  ;;  %v924_v50 = vmul.f32 %v5057_v43, %v912_v39  ;;  %v4778_v34 = vld [vmem:[%s6272_s3 + $0x40] sm:$0xff]  }
  0xa3   : > { %6329 = vst [vmem:[#allocation12_spill] sm:$0xff] %v5160_v46  ;;  %v1000_v9 = vsel %vm996_vm7, %v4675_v45, %v4670_v38  ;;  %v999_v20 = vsel %vm996_vm7, %v4674_v28, %v4669_v27  ;;  %870 = vmatprep.subr.bf16.mxu1 %v847_v16  ;;  %v4683_v52 = vpop.permute.xlu1 %4682  ;;  %v4678_v53 = vpop.permute.xlu0 %4677  ;;  %v998_v54 = vsel %vm996_vm7, %v4670_v38, %v4675_v45 }
  0xa4   : > { %4340 = vmatmul.mubr.msk.bf16.vlgmr.msra.gmra.mxu0 %vm482_vm4, %v4770_v40  ;;  %v997_v55 = vsel %vm996_vm7, %v4669_v27, %v4674_v28  ;;  %v4685_v56 = vunpack.i.h.bf16 %v4683_v52  ;;  %v4684_v57 = vunpack.i.l.bf16 %v4683_v52  ;;  %v4680_v58 = vunpack.i.h.bf16 %v4678_v53 }
  0xa5   : > { %786 = vmatpush1.bf16.msra.mxu0 %v4348_v10  ;;  %803 = vmatprep.mubr.bf16.mxu0 %v6280_v8  ;;  %v4679_v59 = vunpack.i.l.bf16 %v4678_v53  ;;  %v932_v60 = vpack.c.bf16 %v927_v48, %v925_v37  ;;  %v1010_v61 = vmul.f32 %v5145_v33, %v999_v20  ;;  %v1012_v62 = vmul.f32 %v5145_v33, %v1000_v9 }
  0xa6   : > { %v1085_v0 = vsel %vm1081_vm8, %v4685_v56, %v4680_v58  ;;  %v1011_v10 = vmul.f32 %v5160_v46, %v998_v54  ;;  %v1009_v2 = vmul.f32 %v5160_v46, %v997_v55  ;;  %v931_v5 = vpack.c.bf16 %v926_v49, %v924_v50 }
  0xa7   : > { %4344 = vmatmul.mubr.msk.bf16.vlgmr.msra.gmra.mxu1 %vm482_vm4, %v4771_v51  ;;  %v1084_v1 = vsel %vm1081_vm8, %v4684_v57, %v4679_v59  ;;  %v1017_v4 = vpack.c.bf16 %v1012_v62, %v1010_v61  ;;  %955 = vmatprep.subr.bf16.mxu0 %v932_v60  ;;  %v1097_v7 = vmul.f32 %v5187_v63, %v1085_v0 }
  0xa8   : > { %871 = vmatpush1.bf16.msra.mxu1 %v846_v47  ;;  %888 = vmatprep.mubr.bf16.mxu1 %v6280_v8  ;;  %v1095_v6 = vmul.f32 %v5187_v63, %v1084_v1  ;;  %v1083_v15 = vsel %vm1081_vm8, %v4680_v58, %v4685_v56  ;;  %v1082_v17 = vsel %vm1081_vm8, %v4679_v59, %v4684_v57 }
  0xa9   : > { %1040 = vmatprep.subr.bf16.mxu1 %v1017_v4  ;;  %v1016_v21 = vpack.c.bf16 %v1011_v10, %v1009_v2  ;;  %v1096_v25 = vmul.f32 %v4363_v14, %v1083_v15  ;;  %v1094_v12 = vmul.f32 %v4363_v14, %v1082_v17 }
  0xaa   : > { %v1102_v19 = vpack.c.bf16 %v1097_v7, %v1095_v6 }
  0xab   : > { %v1101_v31 = vpack.c.bf16 %v1096_v25, %v1094_v12 }
  0xac   : > { %4350 = vmatmul.mubr.msk.bf16.vlgmr.msra.gmra.mxu0 %vm482_vm4, %v4774_v3 }
  0xad   : > { %956 = vmatpush1.bf16.msra.mxu0 %v931_v5  ;;  %973 = vmatprep.mubr.bf16.mxu0 %v6280_v8 }
  0xae   : > { %1125 = vmatprep.subr.bf16.mxu0 %v1102_v19 }
  0xaf   : > { %4354 = vmatmul.mubr.msk.bf16.vlgmr.msra.gmra.mxu1 %vm482_vm4, %v4775_v18 }
  0xb0   : > { %1041 = vmatpush1.bf16.msra.mxu1 %v1016_v21  ;;  %1058 = vmatprep.mubr.bf16.mxu1 %v6280_v8 }
  0xb4   : > { %4358 = vmatmul.mubr.msk.bf16.vlgmr.msra.gmra.mxu0 %vm482_vm4, %v4776_v26 }
  0xb5   : > { %1126 = vmatpush1.bf16.msra.mxu0 %v1101_v31  ;;  %1143 = vmatprep.mubr.bf16.mxu0 %v6280_v8 }
  0xb7   : > { %4362 = vmatmul.mubr.msk.bf16.vlgmr.msra.gmra.mxu1 %vm482_vm4, %v4777_v32 }
  0xb8   : > { %1250 = vmatprep.mubr.bf16.mxu1 %v6280_v8 }
  0xbc   : > { %4368 = vmatmul.mubr.msk.bf16.vlgmr.msra.gmra.mxu0 %vm482_vm4, %v4778_v34 }
  0xbd   : > { %1319 = vmatprep.mubr.bf16.mxu0 %v6280_v8 }
 0x15c   : > { %v520_v39 = vpop.f32.mrf.mxu0 }
 0x15e   : > { %v522_v40 = vpop.f32.mrf.mxu0 }
 0x15f   : > { %v571_v45 = vpop.f32.mrf.mxu1 }
 0x160   : > { %v524_v28 = vpop.f32.mrf.mxu0  ;;  %v572_v51 = vadd.f32 %v571_v45, %v520_v39 }
 0x161   : > { %v573_v38 = vpop.f32.mrf.mxu1 }
 0x162   : > { %v526_v27 = vpop.f32.mrf.mxu0  ;;  %v574_v55 = vadd.f32 %v573_v38, %v522_v40 }
 0x163   : > { %v575_v16 = vpop.f32.mrf.mxu1 }
 0x164   : > { %v652_v37 = vpop.f32.mrf.mxu0  ;;  %v576_v56 = vadd.f32 %v575_v16, %v524_v28  ;;  %v5236_v16 = vld [vmem:[%s377_s28] sm:$0xff] }
 0x165   : > { %v577_v47 = vpop.f32.mrf.mxu1  ;;  %v661_v52 = vadd.f32 %v652_v37, %v572_v51 }
 0x166   : > { %v654_v48 = vpop.f32.mrf.mxu0  ;;  %v578_v1 = vadd.f32 %v577_v47, %v526_v27  ;;  %v5238_v47 = vld [vmem:[%s377_s28 + $0x8] sm:$0xff] }
 0x167   : > { %v737_v49 = vpop.f32.mrf.mxu1  ;;  %v662_v60 = vadd.f32 %v654_v48, %v574_v55 }
 0x168   : > { %v656_v50 = vpop.f32.mrf.mxu0  ;;  %v746_v59 = vadd.f32 %v737_v49, %v661_v52 }
 0x169   : > { %v739_v9 = vpop.f32.mrf.mxu1  ;;  %v663_v61 = vadd.f32 %v656_v50, %v576_v56 }
 0x16a   : > { %v658_v20 = vpop.f32.mrf.mxu0  ;;  %v747_v4 = vadd.f32 %v739_v9, %v662_v60  ;;  %v396_v9 = vunpack.c.l.bf16 %v5236_v16 }
 0x16b   : > { %v741_v53 = vpop.f32.mrf.mxu1  ;;  %v664_v6 = vadd.f32 %v658_v20, %v578_v1 }
 0x16c   : > { %v805_v54 = vpop.f32.mrf.mxu0  ;;  %v748_v5 = vadd.f32 %v741_v53, %v663_v61 }
 0x16d   : > { %v743_v57 = vpop.f32.mrf.mxu1  ;;  %v814_v10 = vadd.f32 %v805_v54, %v746_v59  ;;  %v398_v54 = vunpack.c.l.bf16 %v5238_v47 }
 0x16e   : > { %v807_v58 = vpop.f32.mrf.mxu0  ;;  %v749_v25 = vadd.f32 %v743_v57, %v664_v6 }
 0x16f   : > { %v890_v62 = vpop.f32.mrf.mxu1  ;;  %v815_v17 = vadd.f32 %v807_v58, %v747_v4  ;;  %v4686_v61 = vpack.i.bf16 %v398_v54, %v396_v9 }
 0x170   : > { %v809_v0 = vpop.f32.mrf.mxu0  ;;  %v899_v15 = vadd.f32 %v890_v62, %v814_v10  ;;  %v397_v62 = vunpack.c.h.bf16 %v5236_v16 }
 0x171   : > { %v892_v2 = vpop.f32.mrf.mxu1  ;;  %v816_v18 = vadd.f32 %v809_v0, %v748_v5  ;;  %v399_v0 = vunpack.c.h.bf16 %v5238_v47 }
 0x172   : > { %v811_v3 = vpop.f32.mrf.mxu0  ;;  %v900_v32 = vadd.f32 %v892_v2, %v815_v17 }
 0x173   : > { %v894_v7 = vpop.f32.mrf.mxu1  ;;  %v817_v39 = vadd.f32 %v811_v3, %v749_v25  ;;  %v4691_v10 = vpack.i.bf16 %v399_v0, %v397_v62 }
 0x174   : > { %v975_v14 = vpop.f32.mrf.mxu0  ;;  %v901_v34 = vadd.f32 %v894_v7, %v816_v18 }
 0x175   : > { %v896_v19 = vpop.f32.mrf.mxu1  ;;  %v984_v12 = vadd.f32 %v975_v14, %v899_v15 }
 0x176   : > { %v977_v21 = vpop.f32.mrf.mxu0  ;;  %v902_v48 = vadd.f32 %v896_v19, %v817_v39 }
 0x177   : > { %v1060_v26 = vpop.f32.mrf.mxu1  ;;  %v985_v38 = vadd.f32 %v977_v21, %v900_v32 }
 0x178   : > { %v979_v31 = vpop.f32.mrf.mxu0  ;;  %v1069_v28 = vadd.f32 %v1060_v26, %v984_v12 }
 0x179   : > { %v1062_v40 = vpop.f32.mrf.mxu1  ;;  %v986_v27 = vadd.f32 %v979_v31, %v901_v34 }
 0x17a   : > { %v981_v45 = vpop.f32.mrf.mxu0  ;;  %v1070_v20 = vadd.f32 %v1062_v40, %v985_v38 }
 0x17b   : > { %v1064_v50 = vpop.f32.mrf.mxu1  ;;  %v987_v53 = vadd.f32 %v981_v45, %v902_v48 }
 0x17c   : > { %v1145_v37 = vpop.f32.mrf.mxu0  ;;  %v1071_v52 = vadd.f32 %v1064_v50, %v986_v27  ;;  %v4779_v27 = vld [vmem:[%s6274_s5] sm:$0xff]  }
 0x17d   : > { %v5240_v49 = vadd.f32 %v1145_v37, %v1069_v28  ;;  %v1066_v58 = vpop.f32.mrf.mxu1 }
 0x17e   : > { %v1147_v51 = vpop.f32.mrf.mxu0  ;;  %v1072_v60 = vadd.f32 %v1066_v58, %v987_v53 }
 0x17f   : > { %1180 = vrot.lane.b32.xlu0 %v5240_v49, %s4887_s19  ;;  %v5246_v56 = vadd.f32 %v1147_v51, %v1070_v20 }
 0x180   : > { %v1149_v55 = vpop.f32.mrf.mxu0 }
 0x181   : > { %v5248_v57 = vadd.f32 %v1149_v55, %v1071_v52 }
 0x182   : > { %v1151_v59 = vpop.f32.mrf.mxu0 }
 0x183   : > { %1184 = vrot.lane.b32.xlu0 %v5246_v56, %s4887_s19  ;;  %1182 = vrot.lane.b32.xlu1 %v5248_v57, %s4887_s19  ;;  %v5256_v1 = vadd.f32 %v1151_v59, %v1072_v60 }
 0x187   : > { %1186 = vrot.lane.b32.xlu1 %v5256_v1, %s4887_s19  ;;  %4687 = vrot.lane.b32.xlu0 %v4686_v61, %s4887_s19 }
 0x18b   : > { %4692 = vrot.lane.b32.xlu1 %v4691_v10, %s4887_s19  ;;  %4697 = vrot.lane.b32.xlu0 %v4686_v61, %s4888_s20 }
 0x18f   : > { %4702 = vrot.lane.b32.xlu1 %v4691_v10, %s4888_s20  ;;  %1440 = vrot.lane.b32.xlu0 %v5240_v49, %s4888_s20 }
 0x193   : > { %1442 = vrot.lane.b32.xlu1 %v5248_v57, %s4888_s20  ;;  %1444 = vrot.lane.b32.xlu0 %v5246_v56, %s4888_s20 }
 0x197   : > { %1446 = vrot.lane.b32.xlu1 %v5256_v1, %s4888_s20  ;;  %4707 = vrot.lane.b32.xlu0 %v4686_v61, %s4889_s21 }
 0x19b   : > { %4712 = vrot.lane.b32.xlu1 %v4691_v10, %s4889_s21  ;;  %1640 = vrot.lane.b32.xlu0 %v5240_v49, %s4889_s21 }
 0x19f   : > { %1642 = vrot.lane.b32.xlu1 %v5248_v57, %s4889_s21  ;;  %1644 = vrot.lane.b32.xlu0 %v5246_v56, %s4889_s21 }
 0x1a3   : > { %1646 = vrot.lane.b32.xlu1 %v5256_v1, %s4889_s21  ;;  %4717 = vrot.lane.b32.xlu0 %v4686_v61, %s4891_s22 }
 0x1a7   : > { %4722 = vrot.lane.b32.xlu1 %v4691_v10, %s4891_s22  ;;  %1840 = vrot.lane.b32.xlu0 %v5240_v49, %s4891_s22 }
 0x1ab   : > { %1842 = vrot.lane.b32.xlu1 %v5248_v57, %s4891_s22  ;;  %1844 = vrot.lane.b32.xlu0 %v5246_v56, %s4891_s22 }
 0x1af   : > { %1846 = vrot.lane.b32.xlu1 %v5256_v1, %s4891_s22  ;;  %4727 = vrot.lane.b32.xlu0 %v4686_v61, %s4892_s23 }
 0x1b3   : > { %4732 = vrot.lane.b32.xlu1 %v4691_v10, %s4892_s23  ;;  %2216 = vrot.lane.b32.xlu0 %v5240_v49, %s4892_s23 }
 0x1b7   : > { %2218 = vrot.lane.b32.xlu1 %v5248_v57, %s4892_s23  ;;  %2220 = vrot.lane.b32.xlu0 %v5246_v56, %s4892_s23 }
 0x1bb   : > { %2222 = vrot.lane.b32.xlu1 %v5256_v1, %s4892_s23  ;;  %4737 = vrot.lane.b32.xlu0 %v4686_v61, %s4893_s24 }
 0x1bf   : > { %4742 = vrot.lane.b32.xlu1 %v4691_v10, %s4893_s24  ;;  %2416 = vrot.lane.b32.xlu0 %v5240_v49, %s4893_s24 }
 0x1c3   : > { %2418 = vrot.lane.b32.xlu1 %v5248_v57, %s4893_s24  ;;  %2420 = vrot.lane.b32.xlu0 %v5246_v56, %s4893_s24 }
 0x1c7   : > { %2422 = vrot.lane.b32.xlu1 %v5256_v1, %s4893_s24  ;;  %4747 = vrot.lane.b32.xlu0 %v4686_v61, %s4894_s25 }
 0x1cb   : > { %4752 = vrot.lane.b32.xlu1 %v4691_v10, %s4894_s25  ;;  %2616 = vrot.lane.b32.xlu0 %v5240_v49, %s4894_s25 }
 0x1cf   : > { %2618 = vrot.lane.b32.xlu1 %v5248_v57, %s4894_s25  ;;  %2620 = vrot.lane.b32.xlu0 %v5246_v56, %s4894_s25 }
 0x1d3   : > { %2622 = vrot.lane.b32.xlu1 %v5256_v1, %s4894_s25  ;;  %4757 = vrot.lane.b32.xlu0 %v4686_v61, %s4895_s26 }
 0x1d7   : > { %4762 = vrot.lane.b32.xlu1 %v4691_v10, %s4895_s26  ;;  %2816 = vrot.lane.b32.xlu0 %v5240_v49, %s4895_s26 }
 0x1db   : > { %2818 = vrot.lane.b32.xlu1 %v5248_v57, %s4895_s26  ;;  %2820 = vrot.lane.b32.xlu0 %v5246_v56, %s4895_s26 }
 0x1df   : > { %2822 = vrot.lane.b32.xlu1 %v5256_v1, %s4895_s26 }
 0x1f1   : > { %v1181_v2 = vpop.permute.xlu0 %1180 }
 0x1f5   : > { %v1185_v3 = vpop.permute.xlu0 %1184  ;;  %v1183_v4 = vpop.permute.xlu1 %1182 }
 0x1f6   : > { %v1188_v5 = vsel %vm426_vm1, %v1181_v2, %v1185_v3  ;;  %v1190_v6 = vsel %vm426_vm1, %v1185_v3, %v1181_v2 }
 0x1f7   : > { %v1192_v18 = vmul.f32 %v1190_v6, %v5039_v30  ;;  %v1193_v19 = vmul.f32 %v1188_v5, %v5022_v22 }
 0x1f9   : > { %v1187_v7 = vpop.permute.xlu1 %1186  ;;  %v4688_v14 = vpop.permute.xlu0 %4687 }
 0x1fa   : > { %v1189_v15 = vsel %vm426_vm1, %v1183_v4, %v1187_v7  ;;  %v1191_v17 = vsel %vm426_vm1, %v1187_v7, %v1183_v4  ;;  %v4690_v12 = vunpack.i.h.bf16 %v4688_v14  ;;  %v4689_v26 = vunpack.i.l.bf16 %v4688_v14  ;;  %v4780_v7 = vld [vmem:[%s6273_s4] sm:$0xff]  }
 0x1fb   : > { %v1194_v21 = vmul.f32 %v1191_v17, %v5039_v30  ;;  %v1195_v25 = vmul.f32 %v1189_v15, %v5022_v22  ;;  %v4781_v17 = vld [vmem:[%s6274_s5 + $0x8] sm:$0xff]  }
 0x1fd   : > { %v1200_v31 = vpack.c.bf16 %v1194_v21, %v1192_v18  ;;  %v4693_v32 = vpop.permute.xlu1 %4692  ;;  %v4698_v34 = vpop.permute.xlu0 %4697  ;;  %v1201_v39 = vpack.c.bf16 %v1195_v25, %v1193_v19 }
 0x1fe   : > { %v4695_v40 = vunpack.i.h.bf16 %v4693_v32  ;;  %v4694_v45 = vunpack.i.l.bf16 %v4693_v32  ;;  %v4700_v28 = vunpack.i.h.bf16 %v4698_v34  ;;  %v4699_v38 = vunpack.i.l.bf16 %v4698_v34 }
 0x1ff   : > { %1232 = vmatprep.subr.bf16.mxu1 %v1201_v39 }
 0x200   : > { %v1166_v37 = vsel %vm426_vm1, %v4689_v26, %v4694_v45  ;;  %v1167_v48 = vsel %vm426_vm1, %v4690_v12, %v4695_v40  ;;  %v1168_v50 = vsel %vm426_vm1, %v4694_v45, %v4689_v26  ;;  %v1169_v51 = vsel %vm426_vm1, %v4695_v40, %v4690_v12  ;;  %1233 = vmatpush1.bf16.msra.mxu1 %v1200_v31 }
 0x201   : > { %v1170_v9 = vmul.f32 %v1168_v50, %v5039_v30  ;;  %v1172_v20 = vmul.f32 %v1169_v51, %v5039_v30  ;;  %v4703_v52 = vpop.permute.xlu1 %4702  ;;  %v1441_v53 = vpop.permute.xlu0 %1440  ;;  %v1171_v54 = vmul.f32 %v1166_v37, %v5022_v22  ;;  %v1173_v55 = vmul.f32 %v1167_v48, %v5022_v22  ;;  %v4782_v51 = vld [vmem:[%s6273_s4 + $0x8] sm:$0xff]  }
 0x202   : > { %v4705_v58 = vunpack.i.h.bf16 %v4703_v52  ;;  %v4704_v59 = vunpack.i.l.bf16 %v4703_v52  ;;  %v4783_v52 = vld [vmem:[%s6273_s4 + $0x10] sm:$0xff]  }
 0x203   : > { %4371 = vmatmul.mubr.msk.bf16.vlgmr.msra.gmra.mxu1 %vm482_vm4, %v4779_v27  ;;  %v5360_v60 = vpack.c.bf16 %v1173_v55, %v1171_v54  ;;  %v5362_v61 = vpack.c.bf16 %v1172_v20, %v1170_v9 }
 0x204   : > { %v1348_v62 = vsel %vm455_vm2, %v4699_v38, %v4704_v59  ;;  %v1349_v0 = vsel %vm455_vm2, %v4700_v28, %v4705_v58  ;;  %v1350_v10 = vsel %vm455_vm2, %v4704_v59, %v4699_v38  ;;  %v1351_v2 = vsel %vm455_vm2, %v4705_v58, %v4700_v28  ;;  %1260 = vmatprep.mubr.bf16.mxu1 %v6280_v8 }
 0x205   : > { %v1352_v3 = vmul.f32 %v1350_v10, %v5036_v29  ;;  %v1354_v4 = vmul.f32 %v1351_v2, %v5036_v29  ;;  %v1443_v5 = vpop.permute.xlu1 %1442  ;;  %v1445_v6 = vpop.permute.xlu0 %1444  ;;  %1301 = vmatprep.subr.bf16.mxu0 %v5360_v60  ;;  %v1353_v14 = vmul.f32 %v1348_v62, %v5029_v24  ;;  %v1355_v15 = vmul.f32 %v1349_v0, %v5029_v24 }
 0x206   : > { %1302 = vmatpush1.bf16.msra.mxu0 %v5362_v61  ;;  %v1448_v21 = vsel %vm455_vm2, %v1441_v53, %v1445_v6  ;;  %v1450_v25 = vsel %vm455_vm2, %v1445_v6, %v1441_v53 }
 0x207   : > { %v5385_v18 = vpack.c.bf16 %v1355_v15, %v1353_v14  ;;  %v5387_v19 = vpack.c.bf16 %v1354_v4, %v1352_v3  ;;  %v1452_v34 = vmul.f32 %v1450_v25, %v5036_v29  ;;  %v1453_v39 = vmul.f32 %v1448_v21, %v5029_v24 }
 0x209   : > { %6330 = vst [vmem:[#allocation13_spill] sm:$0xff] %v5387_v19  ;;  %v1447_v12 = vpop.permute.xlu1 %1446  ;;  %v4708_v26 = vpop.permute.xlu0 %4707  ;;  %4375 = vmatmul.mubr.msk.bf16.vlgmr.msra.gmra.mxu0 %vm482_vm4, %v4780_v7  ;;  %1393 = vmatprep.subr.bf16.mxu1 %v5385_v18 }
 0x20a   : > { %v1449_v31 = vsel %vm455_vm2, %v1443_v5, %v1447_v12  ;;  %v1451_v32 = vsel %vm455_vm2, %v1447_v12, %v1443_v5  ;;  %1394 = vmatpush1.bf16.msra.mxu1 %v5387_v19  ;;  %1329 = vmatprep.mubr.bf16.mxu0 %v6280_v8  ;;  %v4710_v28 = vunpack.i.h.bf16 %v4708_v26  ;;  %v4709_v38 = vunpack.i.l.bf16 %v4708_v26 }
 0x20b   : > { %v1454_v40 = vmul.f32 %v1451_v32, %v5036_v29  ;;  %v1455_v45 = vmul.f32 %v1449_v31, %v5029_v24  ;;  %4372 = vmatmul.mubr.msk.bf16.gmra.mxu1 %vm482_vm4, %v4781_v17  ;;  %v4784_v17 = vld [vmem:[%s6274_s5 + $0x10] sm:$0xff]  }
 0x20c   : > { %1411 = vmatprep.mubr.bf16.mxu1 %v6280_v8 }
 0x20d   : > { %v1461_v27 = vpack.c.bf16 %v1454_v40, %v1452_v34  ;;  %v4713_v37 = vpop.permute.xlu1 %4712  ;;  %v1641_v48 = vpop.permute.xlu0 %1640  ;;  %v1462_v50 = vpack.c.bf16 %v1455_v45, %v1453_v39  ;;  %v4785_v34 = vld [vmem:[%s6273_s4 + $0x18] sm:$0xff]  }
 0x20e   : > { %v4715_v9 = vunpack.i.h.bf16 %v4713_v37  ;;  %v4714_v20 = vunpack.i.l.bf16 %v4713_v37 }
 0x20f   : > { %1493 = vmatprep.subr.bf16.mxu0 %v1462_v50 }
 0x210   : > { %v1548_v53 = vsel %vm588_vm0, %v4709_v38, %v4714_v20  ;;  %v1549_v54 = vsel %vm588_vm0, %v4710_v28, %v4715_v9  ;;  %v1550_v55 = vsel %vm588_vm0, %v4714_v20, %v4709_v38  ;;  %v1551_v58 = vsel %vm588_vm0, %v4715_v9, %v4710_v28  ;;  %1494 = vmatpush1.bf16.msra.mxu0 %v1461_v27 }
 0x211   : > { %v1552_v59 = vmul.f32 %v1550_v55, %v5026_v23  ;;  %v1554_v62 = vmul.f32 %v1551_v58, %v5026_v23  ;;  %v1643_v0 = vpop.permute.xlu1 %1642  ;;  %v1645_v10 = vpop.permute.xlu0 %1644  ;;  %4376 = vmatmul.mubr.msk.bf16.gmra.mxu0 %vm482_vm4, %v4782_v51  ;;  %v1553_v2 = vmul.f32 %v1548_v53, %v5046_v36  ;;  %v1555_v3 = vmul.f32 %v1549_v54, %v5046_v36  ;;  %v4786_v58 = vld [vmem:[%s6274_s5 + $0x18] sm:$0xff]  }
 0x212   : > { %1511 = vmatprep.mubr.bf16.mxu0 %v6280_v8  ;;  %v1648_v6 = vsel %vm588_vm0, %v1641_v48, %v1645_v10  ;;  %v1650_v7 = vsel %vm588_vm0, %v1645_v10, %v1641_v48 }
 0x213   : > { %4383 = vmatmul.mubr.msk.bf16.vlgmr.msra.gmra.mxu1 %vm482_vm4, %v4783_v52  ;;  %v5428_v4 = vpack.c.bf16 %v1555_v3, %v1553_v2  ;;  %v5430_v5 = vpack.c.bf16 %v1554_v62, %v1552_v59  ;;  %v1652_v12 = vmul.f32 %v1650_v7, %v5026_v23  ;;  %v1653_v26 = vmul.f32 %v1648_v6, %v5046_v36 }
 0x214   : > { %1421 = vmatprep.mubr.bf16.mxu1 %v6280_v8 }
 0x215   : > { %6331 = vst [vmem:[#allocation14_spill] sm:$0xff] %v5428_v4  ;;  %6332 = vst [vmem:[#allocation15_spill] sm:$0xff] %v5430_v5  ;;  %v1647_v14 = vpop.permute.xlu1 %1646  ;;  %v4718_v15 = vpop.permute.xlu0 %4717  ;;  %1593 = vmatprep.subr.bf16.mxu1 %v5428_v4 }
 0x216   : > { %v1649_v21 = vsel %vm588_vm0, %v1643_v0, %v1647_v14  ;;  %v1651_v25 = vsel %vm588_vm0, %v1647_v14, %v1643_v0  ;;  %1594 = vmatpush1.bf16.msra.mxu1 %v5430_v5  ;;  %v4720_v39 = vunpack.i.h.bf16 %v4718_v15  ;;  %v4719_v40 = vunpack.i.l.bf16 %v4718_v15  ;;  %v4787_v0 = vld [vmem:[%s6273_s4 + $0x20] sm:$0xff]  }
 0x217   : > { %v1654_v31 = vmul.f32 %v1651_v25, %v5026_v23  ;;  %v1655_v32 = vmul.f32 %v1649_v21, %v5046_v36  ;;  %v5487_v14 = vcombine.high %v5236_v16, %v5238_v47 }
 0x219   : > { %v1661_v45 = vpack.c.bf16 %v1654_v31, %v1652_v12  ;;  %v4723_v28 = vpop.permute.xlu1 %4722  ;;  %v1841_v38 = vpop.permute.xlu0 %1840  ;;  %4391 = vmatmul.mubr.msk.bf16.vlgmr.msra.gmra.mxu0 %vm482_vm4, %v4784_v17  ;;  %v1662_v27 = vpack.c.bf16 %v1655_v32, %v1653_v26  ;;  %6335 = vst [vmem:[#allocation18_spill] sm:$0xff] %v5487_v14 }
 0x21a   : > { %v4725_v37 = vunpack.i.h.bf16 %v4723_v28  ;;  %v4724_v48 = vunpack.i.l.bf16 %v4723_v28  ;;  %1521 = vmatprep.mubr.bf16.mxu0 %v6280_v8 }
 0x21b   : > { %4384 = vmatmul.mubr.msk.bf16.gmra.mxu1 %vm482_vm4, %v4785_v34  ;;  %1693 = vmatprep.subr.bf16.mxu0 %v1662_v27 }
 0x21c   : > { %v1748_v50 = vsel %vm673_vm3, %v4719_v40, %v4724_v48  ;;  %v1749_v51 = vsel %vm673_vm3, %v4720_v39, %v4725_v37  ;;  %v1750_v9 = vsel %vm673_vm3, %v4724_v48, %v4719_v40  ;;  %v1751_v20 = vsel %vm673_vm3, %v4725_v37, %v4720_v39  ;;  %1694 = vmatpush1.bf16.msra.mxu0 %v1661_v45  ;;  %v4788_v39 = vld [vmem:[%s6274_s5 + $0x20] sm:$0xff]   ;;  %v4789_v37 = vld [vmem:[%s6273_s4 + $0x28] sm:$0xff]  }
 0x21d   : > { %v1752_v52 = vmul.f32 %v1750_v9, %v5043_v35  ;;  %v1754_v53 = vmul.f32 %v1751_v20, %v5043_v35  ;;  %v1843_v54 = vpop.permute.xlu1 %1842  ;;  %v1845_v55 = vpop.permute.xlu0 %1844  ;;  %1611 = vmatprep.mubr.bf16.mxu1 %v6280_v8  ;;  %v1753_v59 = vmul.f32 %v1748_v50, %v5052_v42  ;;  %v1755_v62 = vmul.f32 %v1749_v51, %v5052_v42 }
 0x21e   : > { %v1848_v2 = vsel %vm673_vm3, %v1841_v38, %v1845_v55  ;;  %v1850_v21 = vsel %vm673_vm3, %v1845_v55, %v1841_v38  ;;  %v2038_v51 = vpack.c.bf16 %v5256_v1, %v5246_v56 }
 0x21f   : > { %v5475_v10 = vpack.c.bf16 %v1755_v62, %v1753_v59  ;;  %v5479_v3 = vpack.c.bf16 %v1754_v53, %v1752_v52  ;;  %v1853_v25 = vmul.f32 %v1848_v2, %v5052_v42  ;;  %v1852_v40 = vmul.f32 %v1850_v21, %v5043_v35  ;;  %v4791_v59 = vld [vmem:[%s6273_s4 + $0x30] sm:$0xff]  }
 0x220   : > { %v5539_v2 = vcombine.low %v5236_v16, %v5238_v47  ;;  %v4792_v16 = vld [vmem:[%s6274_s5 + $0x30] sm:$0xff]  }
 0x221   : > { %6333 = vst [vmem:[#allocation16_spill] sm:$0xff] %v5475_v10  ;;  %6334 = vst [vmem:[#allocation17_spill] sm:$0xff] %v5479_v3  ;;  %v1847_v6 = vpop.permute.xlu1 %1846  ;;  %v5481_v7 = vpop.permute.xlu0 %4727  ;;  %4392 = vmatmul.mubr.msk.bf16.gmra.mxu0 %vm482_vm4, %v4786_v58  ;;  %1793 = vmatprep.subr.bf16.mxu1 %v5475_v10 }
 0x222   : > { %v1849_v15 = vsel %vm673_vm3, %v1843_v54, %v1847_v6  ;;  %v1851_v17 = vsel %vm673_vm3, %v1847_v6, %v1843_v54  ;;  %1711 = vmatprep.mubr.bf16.mxu0 %v6280_v8  ;;  %v4730_v45 = vunpack.i.h.bf16 %v5481_v7  ;;  %v4729_v28 = vunpack.i.l.bf16 %v5481_v7  ;;  %v4790_v54 = vld [vmem:[%s6274_s5 + $0x28] sm:$0xff]   ;;  %6336 = vst [vmem:[#allocation19_spill] sm:$0xff] %v5539_v2 }
 0x223   : > { %v1855_v12 = vmul.f32 %v1849_v15, %v5052_v42  ;;  %4399 = vmatmul.mubr.msk.bf16.vlgmr.msra.gmra.mxu1 %vm482_vm4, %v4787_v0  ;;  %v1854_v26 = vmul.f32 %v1851_v17, %v5043_v35 }
 0x224   : > { %1621 = vmatprep.mubr.bf16.mxu1 %v6280_v8  ;;  %1794 = vmatpush1.bf16.msra.mxu1 %v5479_v3 }
 0x225   : > { %v4733_v31 = vpop.permute.xlu1 %4732  ;;  %v5502_v32 = vpop.permute.xlu0 %2216  ;;  %v1862_v34 = vpack.c.bf16 %v1855_v12, %v1853_v25  ;;  %1985 = vmatprep.subr.bf16.mxu1 %v5487_v14  ;;  %v1861_v48 = vpack.c.bf16 %v1854_v26, %v1852_v40  ;;  %v2037_v40 = vpack.c.bf16 %v5248_v57, %v5240_v49 }
 0x226   : > { %v4735_v38 = vunpack.i.h.bf16 %v4733_v31  ;;  %v4734_v27 = vunpack.i.l.bf16 %v4733_v31 }
 0x227   : > { %1893 = vmatprep.subr.bf16.mxu0 %v1862_v34 }
 0x228   : > { %v2126_v9 = vsel %vm826_vm5, %v4734_v27, %v4729_v28  ;;  %v2127_v20 = vsel %vm826_vm5, %v4735_v38, %v4730_v45 }
 0x229   : > { %v2219_v50 = vpop.permute.xlu1 %2218  ;;  %4407 = vmatmul.mubr.msk.bf16.vlgmr.msra.gmra.mxu0 %vm482_vm4, %v4788_v39  ;;  %v2221_v52 = vpop.permute.xlu0 %2220  ;;  %v2129_v55 = vmul.f32 %v2126_v9, %v5060_v44  ;;  %v2131_v58 = vmul.f32 %v2127_v20, %v5060_v44  ;;  %v4793_v39 = vld [vmem:[%s6273_s4 + $0x38] sm:$0xff]  }
 0x22a   : > { %1894 = vmatpush1.bf16.msra.mxu0 %v1861_v48  ;;  %1721 = vmatprep.mubr.bf16.mxu0 %v6280_v8  ;;  %v2226_v15 = vsel %vm826_vm5, %v2221_v52, %v5502_v32  ;;  %v2125_v48 = vsel %vm826_vm5, %v4730_v45, %v4735_v38 }
 0x22b   : > { %2069 = vmatprep.subr.bf16.mxu0 %v2038_v51  ;;  %4400 = vmatmul.mubr.msk.bf16.gmra.mxu1 %vm482_vm4, %v4789_v37  ;;  %v5544_v7 = vpack.c.bf16 %v2131_v58, %v2129_v55  ;;  %v2229_v31 = vmul.f32 %v2226_v15, %v5060_v44  ;;  %v2124_v37 = vsel %vm826_vm5, %v4729_v28, %v4734_v27  ;;  %v4796_v27 = vld [vmem:[%s6274_s5 + $0x38] sm:$0xff]  }
 0x22c   : > { %1811 = vmatprep.mubr.bf16.mxu1 %v6280_v8  ;;  %v2128_v28 = vmul.f32 %v2124_v37, %v5049_v41  ;;  %v2130_v45 = vmul.f32 %v2125_v48, %v5049_v41 }
 0x22d   : > { %v2223_v53 = vpop.permute.xlu1 %2222  ;;  %v5532_v62 = vpop.permute.xlu0 %4737  ;;  %6337 = vst [vmem:[#allocation20_spill] sm:$0xff] %v5544_v7 }
 0x22e   : > { %v2227_v6 = vsel %vm826_vm5, %v2223_v53, %v2219_v50  ;;  %v4740_v47 = vunpack.i.h.bf16 %v5532_v62  ;;  %v4739_v25 = vunpack.i.l.bf16 %v5532_v62  ;;  %v5593_v62 = vpack.c.bf16 %v2130_v45, %v2128_v28  ;;  %v4799_v28 = vld [vmem:[%s6273_s4 + $0x48] sm:$0xff]  }
 0x22f   : > { %v2231_v17 = vmul.f32 %v2227_v6, %v5060_v44 }
 0x230   : > { %6338 = vst [vmem:[#allocation21_spill] sm:$0xff] %v5593_v62 }
 0x231   : > { %v5534_v0 = vpop.permute.xlu1 %4742  ;;  %4408 = vmatmul.mubr.msk.bf16.gmra.mxu0 %vm482_vm4, %v4790_v54  ;;  %v5564_v34 = vpop.permute.xlu0 %2416  ;;  %v2238_v51 = vpack.c.bf16 %v2231_v17, %v2229_v31  ;;  %v2224_v17 = vsel %vm826_vm5, %v5502_v32, %v2221_v52 }
 0x232   : > { %1911 = vmatprep.mubr.bf16.mxu0 %v6280_v8  ;;  %v4745_v12 = vunpack.i.h.bf16 %v5534_v0  ;;  %v4744_v26 = vunpack.i.l.bf16 %v5534_v0  ;;  %v2225_v0 = vsel %vm826_vm5, %v2219_v50, %v2223_v53  ;;  %v2228_v32 = vmul.f32 %v2224_v17, %v5049_v41 }
 0x233   : > { %4415 = vmatmul.mubr.msk.bf16.vlgmr.msra.gmra.mxu1 %vm482_vm4, %v4791_v59  ;;  %v4797_v59 = vld [vmem:[%s6273_s4 + $0x40] sm:$0xff]   ;;  %v2230_v50 = vmul.f32 %v2225_v0, %v5049_v41 }
 0x234   : > { %1821 = vmatprep.mubr.bf16.mxu1 %v6280_v8  ;;  %1986 = vmatpush1.bf16.msra.mxu1 %v5539_v2  ;;  %v2326_v9 = vsel %vm911_vm6, %v4744_v26, %v4739_v25  ;;  %v2327_v20 = vsel %vm911_vm6, %v4745_v12, %v4740_v47 }
 0x235   : > { %v5552_v21 = vpop.permute.xlu1 %2418  ;;  %2169 = vmatprep.subr.bf16.mxu1 %v5544_v7  ;;  %v2421_v38 = vpop.permute.xlu0 %2420  ;;  %v2329_v55 = vmul.f32 %v2326_v9, %v5131_v11  ;;  %v2331_v58 = vmul.f32 %v2327_v20, %v5131_v11  ;;  %v2237_v45 = vpack.c.bf16 %v2230_v50, %v2228_v32  ;;  %v4801_v50 = vld [vmem:[%s6273_s4 + $0x50] sm:$0xff]   ;;  %v410_v32 = vld [vmem:[%s6277_s8] sm:$0xff] }
 0x236   : > { %v2426_v53 = vsel %vm911_vm6, %v2421_v38, %v5564_v34  ;;  %2918 = vperm.xlu0 %4766, %v410_v32  }
 0x237   : > { %v5600_v15 = vpack.c.bf16 %v2331_v58, %v2329_v55  ;;  %v2429_v9 = vmul.f32 %v2426_v53, %v5131_v11  ;;  %v2325_v55 = vsel %vm911_vm6, %v4740_v47, %v4745_v12 }
 0x238   : > { %v2330_v47 = vmul.f32 %v2325_v55, %v5057_v43 }
 0x239   : > { %4423 = vmatmul.mubr.msk.bf16.vlgmr.msra.gmra.mxu0 %vm482_vm4, %v4792_v16  ;;  %v2423_v54 = vpop.permute.xlu1 %2422  ;;  %6339 = vst [vmem:[#allocation22_spill] sm:$0xff] %v5600_v15  ;;  %v5609_v31 = vpop.permute.xlu0 %4747 }
 0x23a   : > { %2070 = vmatpush1.bf16.msra.mxu0 %v2037_v40  ;;  %1921 = vmatprep.mubr.bf16.mxu0 %v6280_v8  ;;  %v2427_v16 = vsel %vm911_vm6, %v2423_v54, %v5552_v21  ;;  %v4750_v40 = vunpack.i.h.bf16 %v5609_v31  ;;  %v4749_v37 = vunpack.i.l.bf16 %v5609_v31 }
 0x23b   : > { %2269 = vmatprep.subr.bf16.mxu0 %v2238_v51  ;;  %4416 = vmatmul.mubr.msk.bf16.gmra.mxu1 %vm482_vm4, %v4793_v39  ;;  %v2431_v52 = vmul.f32 %v2427_v16, %v5131_v11  ;;  %v4798_v39 = vld [vmem:[%s6274_s5 + $0x40] sm:$0xff]  }
 0x23c   : > { %2003 = vmatprep.mubr.bf16.mxu1 %v6280_v8 }
 0x23d   : > { %v5597_v6 = vpop.permute.xlu1 %4752  ;;  %v5638_v58 = vpop.permute.xlu0 %2616 }
 0x23e   : > { %v4755_v48 = vunpack.i.h.bf16 %v5597_v6  ;;  %v4754_v51 = vunpack.i.l.bf16 %v5597_v6 }
 0x240   : > { %v2526_v0 = vsel %vm996_vm7, %v4754_v51, %v4749_v37  ;;  %v2527_v6 = vsel %vm996_vm7, %v4755_v48, %v4750_v40  ;;  %v2525_v32 = vsel %vm996_vm7, %v4750_v40, %v4755_v48  ;;  %v4804_v48 = vld [vmem:[%s6274_s5 + $0x58] sm:$0xff]  }
 0x241   : > { %4424 = vmatmul.mubr.msk.bf16.gmra.mxu0 %vm482_vm4, %v4796_v27  ;;  %v5629_v20 = vpop.permute.xlu1 %2618  ;;  %v2324_v27 = vsel %vm911_vm6, %v4739_v25, %v4744_v26  ;;  %v4800_v26 = vld [vmem:[%s6274_s5 + $0x48] sm:$0xff]   ;;  %v2529_v17 = vmul.f32 %v2526_v0, %v5145_v33  ;;  %v2531_v16 = vmul.f32 %v2527_v6, %v5145_v33  ;;  %v2621_v31 = vpop.permute.xlu0 %2620  ;;  %v2530_v40 = vmul.f32 %v2525_v32, %v5160_v46 }
 0x242   : > { %2087 = vmatprep.mubr.bf16.mxu0 %v6280_v8  ;;  %v2328_v25 = vmul.f32 %v2324_v27, %v5057_v43 }
 0x243   : > { %4433 = vmatmul.mubr.msk.bf16.vlgmr.msra.gmra.mxu1 %vm482_vm4, %v4797_v59  ;;  %v2438_v59 = vpack.c.bf16 %v2431_v52, %v2429_v9  ;;  %v2425_v52 = vsel %vm911_vm6, %v5552_v21, %v2423_v54  ;;  %v2424_v9 = vsel %vm911_vm6, %v5564_v34, %v2421_v38  ;;  %v2626_v54 = vsel %vm996_vm7, %v2621_v31, %v5638_v58  ;;  %v411_v34 = vld [vmem:[%s6277_s8 + $0x8] sm:$0xff] }
 0x244   : > { %2013 = vmatprep.mubr.bf16.mxu1 %v6280_v8  ;;  %2170 = vmatpush1.bf16.msra.mxu1 %v5593_v62  ;;  %v5658_v53 = vpack.c.bf16 %v2330_v47, %v2328_v25  ;;  %v2430_v21 = vmul.f32 %v2425_v52, %v5057_v43  ;;  %v2428_v38 = vmul.f32 %v2424_v9, %v5057_v43 }
 0x245   : > { %2369 = vmatprep.subr.bf16.mxu1 %v5600_v15  ;;  %v2623_v12 = vpop.permute.xlu1 %2622  ;;  %v4758_v55 = vpop.permute.xlu0 %4757  ;;  %2923 = vperm.xlu1 %4767, %v411_v34  }
 0x246   : > { %6340 = vst [vmem:[#allocation23_spill] sm:$0xff] %v5658_v53  ;;  %v4760_v0 = vunpack.i.h.bf16 %v4758_v55  ;;  %v4759_v6 = vunpack.i.l.bf16 %v4758_v55  ;;  %v2625_v55 = vsel %vm996_vm7, %v5629_v20, %v2623_v12 }
 0x249   : > { %4441 = vmatmul.mubr.msk.bf16.vlgmr.msra.gmra.mxu0 %vm482_vm4, %v4798_v39  ;;  %v5667_v39 = vpack.c.bf16 %v2531_v16, %v2529_v17  ;;  %v4803_v17 = vld [vmem:[%s6273_s4 + $0x58] sm:$0xff]   ;;  %v2437_v16 = vpack.c.bf16 %v2430_v21, %v2428_v38  ;;  %v2817_v21 = vpop.permute.xlu0 %2816  ;;  %v4805_v38 = vld [vmem:[%s6273_s4 + $0x60] sm:$0xff]  }
 0x24a   : > { %2270 = vmatpush1.bf16.msra.mxu0 %v2237_v45  ;;  %2097 = vmatprep.mubr.bf16.mxu0 %v6280_v8  ;;  %v5676_v45 = vpop.permute.xlu1 %4762 }
 0x24b   : > { %2469 = vmatprep.subr.bf16.mxu0 %v2438_v59  ;;  %4434 = vmatmul.mubr.msk.bf16.gmra.mxu1 %vm482_vm4, %v4799_v28  ;;  %6341 = vst [vmem:[#allocation24_spill] sm:$0xff] %v5667_v39  ;;  %v2627_v28 = vsel %vm996_vm7, %v2623_v12, %v5629_v20  ;;  %v4802_v59 = vld [vmem:[%s6274_s5 + $0x50] sm:$0xff]   ;;  %v4765_v25 = vunpack.i.h.bf16 %v5676_v45  ;;  %v4764_v47 = vunpack.i.l.bf16 %v5676_v45  ;;  %v4875_v12 = vld [vmem:[%s6271_s2 + $0x18] ss:$0 sm:$0xff] }
 0x24c   : > { %2187 = vmatprep.mubr.bf16.mxu1 %v6280_v8  ;;  %v2631_v27 = vmul.f32 %v2627_v28, %v5145_v33 }
 0x24d   : > { %v2726_v28 = vsel %vm1081_vm8, %v4764_v47, %v4759_v6  ;;  %v2727_v45 = vsel %vm1081_vm8, %v4765_v25, %v4760_v0 }
 0x24e   : > { %v2819_v52 = vpop.permute.xlu1 %2818 }
 0x251   : > { %4442 = vmatmul.mubr.msk.bf16.gmra.mxu0 %vm482_vm4, %v4800_v26  ;;  %v2629_v26 = vmul.f32 %v2626_v54, %v5145_v33  ;;  %v2731_v54 = vmul.f32 %v5187_v63, %v2727_v45  ;;  %v2724_v45 = vsel %vm1081_vm8, %v4759_v6, %v4764_v47  ;;  %v4809_v6 = vld [vmem:[%s6273_s4 + $0x70] sm:$0xff]  }
 0x252   : > { %2287 = vmatprep.mubr.bf16.mxu0 %v6280_v8  ;;  %v2823_v34 = vpop.permute.xlu1 %2822 }
 0x253   : > { %4449 = vmatmul.mubr.msk.bf16.vlgmr.msra.gmra.mxu1 %vm482_vm4, %v4801_v50  ;;  %v2524_v50 = vsel %vm996_vm7, %v4749_v37, %v4754_v51  ;;  %v2638_v9 = vpack.c.bf16 %v2631_v27, %v2629_v26  ;;  %v2729_v51 = vmul.f32 %v5187_v63, %v2726_v28  ;;  %v2624_v63 = vsel %vm996_vm7, %v5638_v58, %v2621_v31  ;;  %v4806_v58 = vld [vmem:[%s6274_s5 + $0x60] sm:$0xff]  }
 0x254   : > { %2197 = vmatprep.mubr.bf16.mxu1 %v6280_v8  ;;  %2370 = vmatpush1.bf16.msra.mxu1 %v5658_v53  ;;  %v2528_v37 = vmul.f32 %v2524_v50, %v5160_v46  ;;  %v2628_v31 = vmul.f32 %v2624_v63, %v5160_v46  ;;  %v2825_v47 = vsel %vm1081_vm8, %v2819_v52, %v2823_v34 }
 0x255   : > { %2569 = vmatprep.subr.bf16.mxu1 %v5667_v39  ;;  %v5728_v26 = vpack.c.bf16 %v2731_v54, %v2729_v51 }
 0x256   : > { %v5722_v27 = vpack.c.bf16 %v2530_v40, %v2528_v37  ;;  %v2725_v37 = vsel %vm1081_vm8, %v4760_v0, %v4765_v25  ;;  %v4808_v0 = vld [vmem:[%s6274_s5 + $0x68] sm:$0xff]  }
 0x257   : > { %6343 = vst [vmem:[#allocation26_spill] sm:$0xff] %v5728_v26 }
 0x258   : > { %6342 = vst [vmem:[#allocation25_spill] sm:$0xff] %v5722_v27 }
 0x259   : > { %4457 = vmatmul.mubr.msk.bf16.vlgmr.msra.gmra.mxu0 %vm482_vm4, %v4802_v59  ;;  %v2821_v59 = vpop.permute.xlu0 %2820 }
 0x25a   : > { %2470 = vmatpush1.bf16.msra.mxu0 %v2437_v16  ;;  %2297 = vmatprep.mubr.bf16.mxu0 %v6280_v8  ;;  %v2630_v16 = vmul.f32 %v2625_v55, %v5160_v46  ;;  %v2826_v20 = vsel %vm1081_vm8, %v2821_v59, %v2817_v21 }
 0x25b   : > { %2669 = vmatprep.subr.bf16.mxu0 %v2638_v9  ;;  %4450 = vmatmul.mubr.msk.bf16.gmra.mxu1 %vm482_vm4, %v4803_v17  ;;  %v2827_v17 = vsel %vm1081_vm8, %v2823_v34, %v2819_v52  ;;  %v2829_v32 = vmul.f32 %v4875_v12, %v2826_v20  ;;  %v4807_v9 = vld [vmem:[%s6273_s4 + $0x68] sm:$0xff]   ;;  %v4811_v52 = vld [vmem:[%s6273_s4 + $0x78] sm:$0xff]  }
 0x25c   : > { %2387 = vmatprep.mubr.bf16.mxu1 %v6280_v8  ;;  %v2831_v50 = vmul.f32 %v4875_v12, %v2827_v17  ;;  %v2637_v28 = vpack.c.bf16 %v2630_v16, %v2628_v31  ;;  %v4810_v17 = vld [vmem:[%s6274_s5 + $0x70] sm:$0xff]   ;;  %v4815_v16 = vld [vmem:[%s6273_s4 + $0x88] sm:$0xff]  }
 0x25d   : > { %v4816_v20 = vld [vmem:[%s6274_s5 + $0x88] sm:$0xff]  }
 0x25e   : > { %v2838_v40 = vpack.c.bf16 %v2831_v50, %v2829_v32 }
 0x261   : > { %4458 = vmatmul.mubr.msk.bf16.gmra.mxu0 %vm482_vm4, %v4804_v48  ;;  %v4876_v48 = vld [vmem:[%s6271_s2 + $0x10] ss:$0 sm:$0xff] }
 0x262   : > { %2487 = vmatprep.mubr.bf16.mxu0 %v6280_v8  ;;  %v2728_v51 = vmul.f32 %v4876_v48, %v2724_v45  ;;  %v2730_v54 = vmul.f32 %v4876_v48, %v2725_v37  ;;  %v2830_v55 = vmul.f32 %v4876_v48, %v2825_v47 }
 0x263   : > { %4465 = vmatmul.mubr.msk.bf16.vlgmr.msra.gmra.mxu1 %vm482_vm4, %v4805_v38  ;;  %v2824_v38 = vsel %vm1081_vm8, %v2817_v21, %v2821_v59  ;;  %v4812_v21 = vld [vmem:[%s6274_s5 + $0x78] sm:$0xff]   ;;  %v4813_v59 = vld [vmem:[%s6273_s4 + $0x80] sm:$0xff]  }
 0x264   : > { %2397 = vmatprep.mubr.bf16.mxu1 %v6280_v8  ;;  %2570 = vmatpush1.bf16.msra.mxu1 %v5722_v27  ;;  %v5770_v25 = vpack.c.bf16 %v2730_v54, %v2728_v51  ;;  %v2828_v63 = vmul.f32 %v4876_v48, %v2824_v38 }
 0x265   : > { %2769 = vmatprep.subr.bf16.mxu1 %v5728_v26 }
 0x266   : > { %6344 = vst [vmem:[#allocation27_spill] sm:$0xff] %v5770_v25  ;;  %v2837_v34 = vpack.c.bf16 %v2830_v55, %v2828_v63 }
 0x269   : > { %4473 = vmatmul.mubr.msk.bf16.vlgmr.msra.gmra.mxu0 %vm482_vm4, %v4806_v58 }
 0x26a   : > { %2670 = vmatpush1.bf16.msra.mxu0 %v2637_v28  ;;  %2497 = vmatprep.mubr.bf16.mxu0 %v6280_v8 }
 0x26b   : > { %2869 = vmatprep.subr.bf16.mxu0 %v2838_v40  ;;  %4466 = vmatmul.mubr.msk.bf16.gmra.mxu1 %vm482_vm4, %v4807_v9 }
 0x26c   : > { %2587 = vmatprep.mubr.bf16.mxu1 %v6280_v8 }
 0x271   : > { %4474 = vmatmul.mubr.msk.bf16.gmra.mxu0 %vm482_vm4, %v4808_v0 }
 0x272   : > { %2687 = vmatprep.mubr.bf16.mxu0 %v6280_v8 }
 0x273   : > { %4481 = vmatmul.mubr.msk.bf16.vlgmr.msra.gmra.mxu1 %vm482_vm4, %v4809_v6 }
 0x274   : > { %2597 = vmatprep.mubr.bf16.mxu1 %v6280_v8  ;;  %2770 = vmatpush1.bf16.msra.mxu1 %v5770_v25 }
 0x279   : > { %4489 = vmatmul.mubr.msk.bf16.vlgmr.msra.gmra.mxu0 %vm482_vm4, %v4810_v17 }
 0x27a   : > { %2870 = vmatpush1.bf16.msra.mxu0 %v2837_v34  ;;  %2697 = vmatprep.mubr.bf16.mxu0 %v6280_v8 }
 0x27b   : > { %3091 = vmatprep.subr.bf16.mxu0 %v5360_v60  ;;  %4482 = vmatmul.mubr.msk.bf16.gmra.mxu1 %vm482_vm4, %v4811_v52  ;;  %v4814_v60 = vld [vmem:[%s6274_s5 + $0x80] sm:$0xff]  }
 0x27c   : > { %2787 = vmatprep.mubr.bf16.mxu1 %v6280_v8 }
 0x281   : > { %4490 = vmatmul.mubr.msk.bf16.gmra.mxu0 %vm482_vm4, %v4812_v21 }
 0x282   : > { %2887 = vmatprep.mubr.bf16.mxu0 %v6280_v8 }
 0x283   : > { %4497 = vmatmul.mubr.msk.bf16.vlgmr.msra.gmra.mxu1 %vm482_vm4, %v4813_v59 }
 0x284   : > { %2797 = vmatprep.mubr.bf16.mxu1 %v6280_v8 }
 0x289   : > { %4505 = vmatmul.mubr.msk.bf16.vlgmr.msra.gmra.mxu0 %vm482_vm4, %v4814_v60 }
 0x28a   : > { %3092 = vmatpush1.bf16.msra.mxu0 %v5362_v61  ;;  %2897 = vmatprep.mubr.bf16.mxu0 %v6280_v8 }
 0x28b   : > { %4498 = vmatmul.mubr.msk.bf16.gmra.mxu1 %vm482_vm4, %v4815_v16 }
 0x28c   : > { %3058 = vmatprep.mubr.bf16.mxu1 %v6280_v8 }
 0x291   : > { %4506 = vmatmul.mubr.msk.bf16.gmra.mxu0 %vm482_vm4, %v4816_v20 }
 0x292   : > { %3109 = vmatprep.mubr.bf16.mxu0 %v6280_v8 }
 0x2c3   : > { %v1252_v12 = vpop.f32.mrf.mxu1 }
 0x2c5   : > { %v1254_v50 = vpop.f32.mrf.mxu1 }
 0x2c7   : > { %v1256_v58 = vpop.f32.mrf.mxu1 }
 0x2c9   : > { %v1258_v31 = vpop.f32.mrf.mxu1  ;;  %v1321_v32 = vpop.f32.mrf.mxu0 }
 0x2ca   : > { %v1322_v61 = vadd.f32 %v1321_v32, %v1252_v12 }
 0x2cb   : > { %v1262_v9 = vpop.f32.mrf.mxu1  ;;  %v1323_v28 = vpop.f32.mrf.mxu0 }
 0x2cc   : > { %v1324_v45 = vadd.f32 %v1323_v28, %v1254_v50 }
 0x2cd   : > { %v1264_v37 = vpop.f32.mrf.mxu1  ;;  %v1325_v40 = vpop.f32.mrf.mxu0 }
 0x2ce   : > { %v1326_v48 = vadd.f32 %v1325_v40, %v1256_v58 }
 0x2cf   : > { %v1266_v51 = vpop.f32.mrf.mxu1  ;;  %v1327_v54 = vpop.f32.mrf.mxu0 }
 0x2d0   : > { %v1328_v0 = vadd.f32 %v1327_v54, %v1258_v31 }
 0x2d1   : > { %v1268_v6 = vpop.f32.mrf.mxu1  ;;  %v1331_v47 = vpop.f32.mrf.mxu0 }
 0x2d2   : > { %v1332_v38 = vadd.f32 %v1331_v47, %v1262_v9 }
 0x2d3   : > { %v1333_v55 = vpop.f32.mrf.mxu0  ;;  %v1413_v17 = vpop.f32.mrf.mxu1 }
 0x2d4   : > { %v1334_v63 = vadd.f32 %v1333_v55, %v1264_v37  ;;  %v1432_v52 = vadd.f32 %v1413_v17, %v1322_v61 }
 0x2d5   : > { %v1335_v34 = vpop.f32.mrf.mxu0  ;;  %v1415_v21 = vpop.f32.mrf.mxu1 }
 0x2d6   : > { %v1336_v59 = vadd.f32 %v1335_v34, %v1266_v51  ;;  %v1433_v60 = vadd.f32 %v1415_v21, %v1324_v45 }
 0x2d7   : > { %v1337_v16 = vpop.f32.mrf.mxu0  ;;  %v1417_v20 = vpop.f32.mrf.mxu1 }
 0x2d8   : > { %v1338_v12 = vadd.f32 %v1337_v16, %v1268_v6  ;;  %v1434_v50 = vadd.f32 %v1417_v20, %v1326_v48 }
 0x2d9   : > { %v1419_v32 = vpop.f32.mrf.mxu1  ;;  %v1513_v58 = vpop.f32.mrf.mxu0 }
 0x2da   : > { %v1435_v28 = vadd.f32 %v1419_v32, %v1328_v0  ;;  %v1532_v40 = vadd.f32 %v1513_v58, %v1432_v52 }
 0x2db   : > { %v1423_v31 = vpop.f32.mrf.mxu1  ;;  %v1515_v54 = vpop.f32.mrf.mxu0 }
 0x2dc   : > { %v1436_v8 = vadd.f32 %v1423_v31, %v1332_v38  ;;  %v1533_v9 = vadd.f32 %v1515_v54, %v1433_v60 }
 0x2dd   : > { %v1425_v47 = vpop.f32.mrf.mxu1  ;;  %v1517_v25 = vpop.f32.mrf.mxu0 }
 0x2de   : > { %v1437_v37 = vadd.f32 %v1425_v47, %v1334_v63  ;;  %v1534_v61 = vadd.f32 %v1517_v25, %v1434_v50 }
 0x2df   : > { %v1427_v55 = vpop.f32.mrf.mxu1  ;;  %v1519_v17 = vpop.f32.mrf.mxu0 }
 0x2e0   : > { %v1438_v51 = vadd.f32 %v1427_v55, %v1336_v59  ;;  %v1535_v45 = vadd.f32 %v1519_v17, %v1435_v28 }
 0x2e1   : > { %v1429_v34 = vpop.f32.mrf.mxu1  ;;  %v1523_v21 = vpop.f32.mrf.mxu0 }
 0x2e2   : > { %v1439_v6 = vadd.f32 %v1429_v34, %v1338_v12  ;;  %v1536_v48 = vadd.f32 %v1523_v21, %v1436_v8 }
 0x2e3   : > { %v1525_v16 = vpop.f32.mrf.mxu0  ;;  %v1613_v20 = vpop.f32.mrf.mxu1 }
 0x2e4   : > { %v1537_v0 = vadd.f32 %v1525_v16, %v1437_v37  ;;  %v1632_v52 = vadd.f32 %v1613_v20, %v1532_v40 }
 0x2e5   : > { %v1527_v32 = vpop.f32.mrf.mxu0  ;;  %v1615_v58 = vpop.f32.mrf.mxu1 }
 0x2e6   : > { %v1538_v38 = vadd.f32 %v1527_v32, %v1438_v51  ;;  %v1633_v60 = vadd.f32 %v1615_v58, %v1533_v9 }
 0x2e7   : > { %v1529_v31 = vpop.f32.mrf.mxu0  ;;  %v1617_v54 = vpop.f32.mrf.mxu1 }
 0x2e8   : > { %v1539_v63 = vadd.f32 %v1529_v31, %v1439_v6  ;;  %v1634_v25 = vadd.f32 %v1617_v54, %v1534_v61 }
 0x2e9   : > { %v1619_v50 = vpop.f32.mrf.mxu1  ;;  %v1713_v47 = vpop.f32.mrf.mxu0 }
 0x2ea   : > { %v1635_v59 = vadd.f32 %v1619_v50, %v1535_v45  ;;  %v5818_v28 = vadd.f32 %v1713_v47, %v1632_v52 }
 0x2eb   : > { %v1623_v55 = vpop.f32.mrf.mxu1  ;;  %v1715_v12 = vpop.f32.mrf.mxu0 }
 0x2ec   : > { %v1636_v8 = vadd.f32 %v1623_v55, %v1536_v48  ;;  %v5820_v17 = vadd.f32 %v1715_v12, %v1633_v60 }
 0x2ed   : > { %v1625_v37 = vpop.f32.mrf.mxu1  ;;  %v1717_v40 = vpop.f32.mrf.mxu0 }
 0x2ee   : > { %v1637_v34 = vadd.f32 %v1625_v37, %v1537_v0  ;;  %v5822_v21 = vadd.f32 %v1717_v40, %v1634_v25 }
 0x2ef   : > { %v1627_v9 = vpop.f32.mrf.mxu1  ;;  %v1719_v51 = vpop.f32.mrf.mxu0 }
 0x2f0   : > { %v1638_v16 = vadd.f32 %v1627_v9, %v1538_v38  ;;  %v5824_v6 = vadd.f32 %v1719_v51, %v1635_v59 }
 0x2f1   : > { %v1629_v61 = vpop.f32.mrf.mxu1  ;;  %v1723_v20 = vpop.f32.mrf.mxu0 }
 0x2f2   : > { %v1639_v45 = vadd.f32 %v1629_v61, %v1539_v63  ;;  %v1736_v52 = vadd.f32 %v1723_v20, %v1636_v8 }
 0x2f3   : > { %v1725_v32 = vpop.f32.mrf.mxu0  ;;  %v5826_v58 = vpop.f32.mrf.mxu1 }
 0x2f4   : > { %v1737_v48 = vadd.f32 %v1725_v32, %v1637_v34  ;;  %v1832_v4 = vadd.f32 %v5826_v58, %v5818_v28 }
 0x2f5   : > { %v1727_v60 = vpop.f32.mrf.mxu0  ;;  %v5828_v31 = vpop.f32.mrf.mxu1 }
 0x2f6   : > { %v1738_v54 = vadd.f32 %v1727_v60, %v1638_v16 }
 0x2f7   : > { %v1729_v0 = vpop.f32.mrf.mxu0  ;;  %v5830_v25 = vpop.f32.mrf.mxu1 }
 0x2f8   : > { %v1739_v50 = vadd.f32 %v1729_v0, %v1639_v45 }
 0x2f9   : > { %v5832_v47 = vpop.f32.mrf.mxu1  ;;  %v5834_v38 = vpop.f32.mrf.mxu0 }
 0x2fb   : > { %v1823_v59 = vpop.f32.mrf.mxu1  ;;  %v5836_v55 = vpop.f32.mrf.mxu0 }
 0x2fc   : > { %v1836_v63 = vadd.f32 %v1823_v59, %v1736_v52 }
 0x2fd   : > { %v1825_v12 = vpop.f32.mrf.mxu1  ;;  %v5838_v8 = vpop.f32.mrf.mxu0 }
 0x2fe   : > { %v1837_v37 = vadd.f32 %v1825_v12, %v1737_v48 }
 0x2ff   : > { %v1827_v40 = vpop.f32.mrf.mxu1  ;;  %v5840_v34 = vpop.f32.mrf.mxu0 }
 0x300   : > { %v1838_v9 = vadd.f32 %v1827_v40, %v1738_v54 }
 0x301   : > { %v1829_v51 = vpop.f32.mrf.mxu1  ;;  %v1923_v16 = vpop.f32.mrf.mxu0 }
 0x302   : > { %v1839_v61 = vadd.f32 %v1829_v51, %v1739_v50  ;;  %v1936_v20 = vadd.f32 %v1923_v16, %v1836_v63 }
 0x303   : > { %v1925_v45 = vpop.f32.mrf.mxu0  ;;  %v5842_v32 = vpop.f32.mrf.mxu1 }
 0x304   : > { %v1937_v60 = vadd.f32 %v1925_v45, %v1837_v37 }
 0x305   : > { %v1927_v0 = vpop.f32.mrf.mxu0  ;;  %v5844_v26 = vpop.f32.mrf.mxu1 }
 0x306   : > { %v1938_v52 = vadd.f32 %v1927_v0, %v1838_v9 }
 0x307   : > { %v1929_v59 = vpop.f32.mrf.mxu0  ;;  %v5846_v27 = vpop.f32.mrf.mxu1 }
 0x308   : > { %v1939_v48 = vadd.f32 %v1929_v59, %v1839_v61 }
 0x309   : > { %v5848_v12 = vpop.f32.mrf.mxu1  ;;  %v5850_v46 = vpop.f32.mrf.mxu0 }
 0x30b   : > { %v2015_v54 = vpop.f32.mrf.mxu1  ;;  %v5852_v40 = vpop.f32.mrf.mxu0 }
 0x30c   : > { %v2028_v50 = vadd.f32 %v2015_v54, %v1936_v20 }
 0x30d   : > { %v2017_v63 = vpop.f32.mrf.mxu1  ;;  %v5854_v51 = vpop.f32.mrf.mxu0 }
 0x30e   : > { %v2029_v37 = vadd.f32 %v2017_v63, %v1937_v60 }
 0x30f   : > { %v2019_v16 = vpop.f32.mrf.mxu1  ;;  %v5856_v45 = vpop.f32.mrf.mxu0 }
 0x310   : > { %v2030_v9 = vadd.f32 %v2019_v16, %v1938_v52 }
 0x311   : > { %v2021_v0 = vpop.f32.mrf.mxu1  ;;  %v2099_v39 = vpop.f32.mrf.mxu0 }
 0x312   : > { %v2031_v53 = vadd.f32 %v2021_v0, %v1939_v48  ;;  %v2112_v61 = vadd.f32 %v2099_v39, %v2028_v50 }
 0x313   : > { %v2101_v59 = vpop.f32.mrf.mxu0  ;;  %v5858_v33 = vpop.f32.mrf.mxu1 }
 0x314   : > { %v2113_v43 = vadd.f32 %v2101_v59, %v2029_v37 }
 0x315   : > { %v2103_v15 = vpop.f32.mrf.mxu0  ;;  %v5860_v62 = vpop.f32.mrf.mxu1 }
 0x316   : > { %v2114_v20 = vadd.f32 %v2103_v15, %v2030_v9 }
 0x317   : > { %v2105_v54 = vpop.f32.mrf.mxu0  ;;  %v5862_v11 = vpop.f32.mrf.mxu1 }
 0x318   : > { %v2115_v60 = vadd.f32 %v2105_v54, %v2031_v53 }
 0x319   : > { %v5864_v63 = vpop.f32.mrf.mxu1  ;;  %v5866_v41 = vpop.f32.mrf.mxu0 }
 0x31b   : > { %v2199_v52 = vpop.f32.mrf.mxu1  ;;  %v5868_v16 = vpop.f32.mrf.mxu0 }
 0x31c   : > { %v2212_v39 = vadd.f32 %v2199_v52, %v2112_v61 }
 0x31d   : > { %v2201_v48 = vpop.f32.mrf.mxu1  ;;  %v5870_v50 = vpop.f32.mrf.mxu0 }
 0x31e   : > { %v2213_v37 = vadd.f32 %v2201_v48, %v2113_v43 }
 0x31f   : > { %v2203_v0 = vpop.f32.mrf.mxu1  ;;  %v5872_v59 = vpop.f32.mrf.mxu0 }
 0x320   : > { %v2214_v15 = vadd.f32 %v2203_v0, %v2114_v20 }
 0x321   : > { %v2205_v9 = vpop.f32.mrf.mxu1  ;;  %v2299_v7 = vpop.f32.mrf.mxu0 }
 0x322   : > { %v2215_v2 = vadd.f32 %v2205_v9, %v2115_v60  ;;  %v2312_v53 = vadd.f32 %v2299_v7, %v2212_v39 }
 0x323   : > { %v2301_v54 = vpop.f32.mrf.mxu0  ;;  %v2389_v44 = vpop.f32.mrf.mxu1 }
 0x324   : > { %v2313_v14 = vadd.f32 %v2301_v54, %v2213_v37 }
 0x325   : > { %v2303_v3 = vpop.f32.mrf.mxu0  ;;  %v5874_v42 = vpop.f32.mrf.mxu1 }
 0x326   : > { %v2314_v35 = vadd.f32 %v2303_v3, %v2214_v15 }
 0x327   : > { %v2305_v61 = vpop.f32.mrf.mxu0  ;;  %v5876_v52 = vpop.f32.mrf.mxu1 }
 0x328   : > { %v2315_v10 = vadd.f32 %v2305_v61, %v2215_v2 }
 0x329   : > { %v5878_v43 = vpop.f32.mrf.mxu1  ;;  %v2489_v48 = vpop.f32.mrf.mxu0 }
 0x32b   : > { %v2399_v5 = vpop.f32.mrf.mxu1  ;;  %v5880_v20 = vpop.f32.mrf.mxu0 }
 0x32c   : > { %v2412_v0 = vadd.f32 %v2399_v5, %v2312_v53  ;;  %v1833_v53 = vadd.f32 %v5828_v31, %v5820_v17 }
 0x32d   : > { %v2401_v60 = vpop.f32.mrf.mxu1  ;;  %v5882_v7 = vpop.f32.mrf.mxu0 }
 0x32e   : > { %v2413_v39 = vadd.f32 %v2401_v60, %v2313_v14  ;;  %v1932_v14 = vadd.f32 %v5834_v38, %v1832_v4 }
 0x32f   : > { %v2403_v37 = vpop.f32.mrf.mxu1  ;;  %v5884_v9 = vpop.f32.mrf.mxu0 }
 0x330   : > { %v2414_v54 = vadd.f32 %v2403_v37, %v2314_v35  ;;  %v1834_v35 = vadd.f32 %v5830_v25, %v5822_v21 }
 0x331   : > { %v2405_v3 = vpop.f32.mrf.mxu1  ;;  %v2499_v15 = vpop.f32.mrf.mxu0 }
 0x332   : > { %v2415_v36 = vadd.f32 %v2405_v3, %v2315_v10  ;;  %v2512_v23 = vadd.f32 %v2499_v15, %v2412_v0  ;;  %v1933_v0 = vadd.f32 %v5836_v55, %v1833_v53  ;;  %v2024_v3 = vadd.f32 %v5842_v32, %v1932_v14 }
 0x333   : > { %v2501_v2 = vpop.f32.mrf.mxu0  ;;  %v2589_v61 = vpop.f32.mrf.mxu1  ;;  %v1934_v28 = vadd.f32 %v5838_v8, %v1834_v35 }
 0x334   : > { %v2513_v19 = vadd.f32 %v2501_v2, %v2413_v39  ;;  %v2025_v2 = vadd.f32 %v5844_v26, %v1933_v0  ;;  %v2108_v17 = vadd.f32 %v5850_v46, %v2024_v3 }
 0x335   : > { %v2503_v24 = vpop.f32.mrf.mxu0  ;;  %v2591_v5 = vpop.f32.mrf.mxu1  ;;  %v2026_v4 = vadd.f32 %v5846_v27, %v1934_v28 }
 0x336   : > { %v2514_v60 = vadd.f32 %v2503_v24, %v2414_v54  ;;  %v1835_v24 = vadd.f32 %v5832_v47, %v5824_v6  ;;  %v2109_v25 = vadd.f32 %v5852_v40, %v2025_v2  ;;  %v2208_v38 = vadd.f32 %v5858_v33, %v2108_v17 }
 0x337   : > { %v2505_v37 = vpop.f32.mrf.mxu0  ;;  %v2593_v10 = vpop.f32.mrf.mxu1  ;;  %v2110_v8 = vadd.f32 %v5854_v51, %v2026_v4 }
 0x338   : > { %v2515_v15 = vadd.f32 %v2505_v37, %v2415_v36  ;;  %v1935_v55 = vadd.f32 %v5840_v34, %v1835_v24  ;;  %v2209_v46 = vadd.f32 %v5860_v62, %v2109_v25  ;;  %v2308_v54 = vadd.f32 %v5866_v41, %v2208_v38  ;;  %v2919_v38 = vpop.permute.xlu0 %2918 }
 0x339   : > { %v2595_v58 = vpop.f32.mrf.mxu1  ;;  %v2689_v39 = vpop.f32.mrf.mxu0  ;;  %v2210_v47 = vadd.f32 %v5862_v11, %v2110_v8 }
 0x33a   : > { %v2027_v27 = vadd.f32 %v5848_v12, %v1935_v55  ;;  %v2309_v33 = vadd.f32 %v5868_v16, %v2209_v46 }
 0x33b   : > { %v2599_v21 = vpop.f32.mrf.mxu1  ;;  %v2691_v31 = vpop.f32.mrf.mxu0  ;;  %v2310_v51 = vadd.f32 %v5870_v50, %v2210_v47 }
 0x33c   : > { %v2612_v36 = vadd.f32 %v2599_v21, %v2512_v23  ;;  %v2408_v23 = vadd.f32 %v2389_v44, %v2308_v54  ;;  %v2111_v34 = vadd.f32 %v5856_v45, %v2027_v27  ;;  %v2409_v62 = vadd.f32 %v5874_v42, %v2309_v33 }
 0x33d   : > { %v2601_v32 = vpop.f32.mrf.mxu1  ;;  %v2693_v26 = vpop.f32.mrf.mxu0  ;;  %v2410_v16 = vadd.f32 %v5876_v52, %v2310_v51 }
 0x33e   : > { %v2613_v6 = vadd.f32 %v2601_v32, %v2513_v19  ;;  %v2508_v41 = vadd.f32 %v2489_v48, %v2408_v23  ;;  %v2211_v11 = vadd.f32 %v5864_v63, %v2111_v34  ;;  %v2509_v44 = vadd.f32 %v5880_v20, %v2409_v62 }
 0x33f   : > { %v2603_v53 = vpop.f32.mrf.mxu1  ;;  %v2695_v40 = vpop.f32.mrf.mxu0  ;;  %v2510_v42 = vadd.f32 %v5882_v7, %v2410_v16 }
 0x340   : > { %v2614_v14 = vadd.f32 %v2603_v53, %v2514_v60  ;;  %v2608_v60 = vadd.f32 %v2589_v61, %v2508_v41  ;;  %v2311_v50 = vadd.f32 %v5872_v59, %v2211_v11  ;;  %v2609_v48 = vadd.f32 %v2591_v5, %v2509_v44 }
 0x341   : > { %v2605_v35 = vpop.f32.mrf.mxu1  ;;  %v2699_v37 = vpop.f32.mrf.mxu0  ;;  %v2610_v4 = vadd.f32 %v2593_v10, %v2510_v42 }
 0x342   : > { %v2615_v19 = vadd.f32 %v2605_v35, %v2515_v15  ;;  %v5913_v0 = vadd.f32 %v2699_v37, %v2612_v36  ;;  %v2708_v15 = vadd.f32 %v2689_v39, %v2608_v60  ;;  %v2411_v63 = vadd.f32 %v5878_v43, %v2311_v50 }
 0x343   : > { %v2701_v12 = vpop.f32.mrf.mxu0  ;;  %v2789_v3 = vpop.f32.mrf.mxu1  ;;  %v2709_v52 = vadd.f32 %v2691_v31, %v2609_v48  ;;  %v2710_v36 = vadd.f32 %v2693_v26, %v2610_v4  ;;  %v413_v4 = vld [vmem:[%s6277_s8 + $0x18] sm:$0xff] }
 0x344   : > { %v5918_v45 = vadd.f32 %v2701_v12, %v2613_v6  ;;  %v2808_v21 = vadd.f32 %v2789_v3, %v2708_v15  ;;  %v2511_v25 = vadd.f32 %v5884_v9, %v2411_v63  ;;  %v2924_v31 = vpop.permute.xlu1 %2923  ;;  %v6345_v15 = vmov 0  }
 0x345   : > { %v2703_v28 = vpop.f32.mrf.mxu0  ;;  %v2791_v2 = vpop.f32.mrf.mxu1 }
 0x346   : > { %v5922_v17 = vadd.f32 %v2703_v28, %v2614_v14  ;;  %v2809_v55 = vadd.f32 %v2791_v2, %v2709_v52  ;;  %v2611_v5 = vadd.f32 %v2595_v58, %v2511_v25  ;;  %v4818_v28 = vld [vmem:[%s6275_s6] sm:$0xff]  }
 0x347   : > { %v2705_v24 = vpop.f32.mrf.mxu0  ;;  %v2793_v61 = vpop.f32.mrf.mxu1  ;;  %4518 = vmatmul.mubr.msk.bf16.vlgmr.msra.gmra.mxu0 %vm482_vm4, %v4818_v28  ;;  %v414_v52 = vld [vmem:[%s6277_s8 + $0x20] sm:$0xff] }
 0x348   : > { %v5925_v20 = vadd.f32 %v2705_v24, %v2615_v19  ;;  %v2810_v8 = vadd.f32 %v2793_v61, %v2710_v36  ;;  %v2711_v54 = vadd.f32 %v2695_v40, %v2611_v5  ;;  %3239 = vmatprep.mubr.bf16.mxu0 %v6345_v15  ;;  %v412_v24 = vld [vmem:[%s6277_s8 + $0x10] sm:$0xff] }
 0x349   : > { %v2889_v59 = vpop.f32.mrf.mxu0  ;;  %v2795_v32 = vpop.f32.mrf.mxu1 }
 0x34a   : > { %v2908_v7 = vadd.f32 %v2889_v59, %v2808_v21  ;;  %v2811_v53 = vadd.f32 %v2795_v32, %v2711_v54  ;;  %v415_v21 = vld [vmem:[%s6277_s8 + $0x28] sm:$0xff] }
 0x34b   : > { %v2891_v39 = vpop.f32.mrf.mxu0 }
 0x34c   : > { %v2926_v46 = vadd.f32 %v2919_v38, %v2908_v7  ;;  %v2909_v43 = vadd.f32 %v2891_v39, %v2809_v55 }
 0x34d   : > { %v2893_v10 = vpop.f32.mrf.mxu0 }
 0x34e   : > { %v4507_v6 = vmul.f32 -1.442695, %v2926_v46  ;;  %v2927_v27 = vadd.f32 %v2919_v38, %v2909_v43  ;;  %v2910_v47 = vadd.f32 %v2893_v10, %v2810_v8 }
 0x34f   : > { %v2895_v33 = vpop.f32.mrf.mxu0 }
 0x350   : > { %4835 = vpow2.f32 %v4507_v6  ;;  %v4508_v9 = vmul.f32 -1.442695, %v2927_v27  ;;  %v2928_v23 = vadd.f32 %v2924_v31, %v2910_v47  ;;  %v2911_v26 = vadd.f32 %v2895_v33, %v2811_v53  ;;  %v4817_v27 = vld [vmem:[%s6276_s7] sm:$0xff]  }
 0x352   : > { %4837 = vpow2.f32 %v4508_v9  ;;  %v4509_v14 = vmul.f32 -1.442695, %v2928_v23  ;;  %v2929_v58 = vadd.f32 %v2924_v31, %v2911_v26  ;;  %v6346_v26 = vld [vmem:[#allocation3_spill] sm:$0xff] }
 0x354   : > { %4839 = vpow2.f32 %v4509_v14  ;;  %v4510_v34 = vmul.f32 -1.442695, %v2929_v58 }
 0x356   : > { %4841 = vpow2.f32 %v4510_v34 }
 0x35d   : > { %v4836_v40 = vpop.eup %4835 }
 0x35e   : > { %v2942_v51 = vadd.f32 1.0, %v4836_v40  ;;  %v6347_v40 = vld [vmem:[#allocation13_spill] sm:$0xff] }
 0x35f   : > { %v4838_v35 = vpop.eup %4837 }
 0x360   : > { %4843 = vrcp.f32 %v2942_v51  ;;  %v2943_v37 = vadd.f32 1.0, %v4838_v35  ;;  %v6348_v35 = vld [vmem:[#allocation14_spill] sm:$0xff] }
 0x361   : > { %v4840_v62 = vpop.eup %4839 }
 0x362   : > { %4845 = vrcp.f32 %v2943_v37  ;;  %v2944_v41 = vadd.f32 1.0, %v4840_v62 }
 0x363   : > { %v4842_v19 = vpop.eup %4841 }
 0x364   : > { %4847 = vrcp.f32 %v2944_v41  ;;  %v2945_v11 = vadd.f32 1.0, %v4842_v19  ;;  %v4820_v19 = vld [vmem:[%s6276_s7 + $0x8] sm:$0xff]  }
 0x366   : > { %4849 = vrcp.f32 %v2945_v11 }
 0x36d   : > { %v4844_v12 = vpop.eup %4843 }
 0x36e   : > { %v5935_v3 = vmul.f32 %v4844_v12, %v5240_v49 }
 0x36f   : > { %v4846_v16 = vpop.eup %4845 }
 0x370   : > { %v5938_v44 = vmul.f32 %v4846_v16, %v5246_v56  ;;  %2998 = vrot.lane.b32.xlu1 %v5935_v3, %s4887_s19  ;;  %4214 = vst [vmem:[%s392_s11] sm:$0xff] %v5935_v3 }
 0x371   : > { %v4848_v60 = vpop.eup %4847 }
 0x372   : > { %v5944_v50 = vmul.f32 %v4848_v60, %v5248_v57  ;;  %4215 = vst [vmem:[%s392_s11 + $0x8] sm:$0xff] %v5938_v44  ;;  %v6349_v60 = vld [vmem:[#allocation2_spill] sm:$0xff] }
 0x373   : > { %v4850_v2 = vpop.eup %4849 }
 0x374   : > { %3000 = vrot.lane.b32.xlu0 %v5944_v50, %s4887_s19  ;;  %3002 = vrot.lane.b32.xlu1 %v5938_v44, %s4887_s19  ;;  %v3583_v42 = vpack.c.bf16 %v5944_v50, %v5935_v3  ;;  %4216 = vst [vmem:[%s392_s11 + $0x10] sm:$0xff] %v5944_v50  ;;  %v5958_v48 = vmul.f32 %v4850_v2, %v5256_v1 }
 0x376   : > { %v3584_v63 = vpack.c.bf16 %v5958_v48, %v5938_v44  ;;  %4217 = vst [vmem:[%s392_s11 + $0x18] sm:$0xff] %v5958_v48  ;;  %s387_s11 = scalar_lea.vmem %s6278_s9, %s4587_s15 }
 0x378   : > { %3004 = vrot.lane.b32.xlu0 %v5958_v48, %s4887_s19  ;;  %3178 = vrot.lane.b32.xlu1 %v5935_v3, %s4888_s20 }
 0x37c   : > { %3180 = vrot.lane.b32.xlu0 %v5944_v50, %s4888_s20  ;;  %3182 = vrot.lane.b32.xlu1 %v5938_v44, %s4888_s20 }
 0x380   : > { %3184 = vrot.lane.b32.xlu0 %v5958_v48, %s4888_s20  ;;  %3312 = vrot.lane.b32.xlu1 %v5935_v3, %s4889_s21 }
 0x384   : > { %3314 = vrot.lane.b32.xlu0 %v5944_v50, %s4889_s21  ;;  %3316 = vrot.lane.b32.xlu1 %v5938_v44, %s4889_s21 }
 0x388   : > { %3318 = vrot.lane.b32.xlu0 %v5958_v48, %s4889_s21  ;;  %3446 = vrot.lane.b32.xlu1 %v5935_v3, %s4891_s22 }
 0x38c   : > { %3448 = vrot.lane.b32.xlu0 %v5944_v50, %s4891_s22  ;;  %3450 = vrot.lane.b32.xlu1 %v5938_v44, %s4891_s22 }
 0x390   : > { %3452 = vrot.lane.b32.xlu0 %v5958_v48, %s4891_s22  ;;  %3698 = vrot.lane.b32.xlu1 %v5935_v3, %s4892_s23 }
 0x394   : > { %3700 = vrot.lane.b32.xlu0 %v5944_v50, %s4892_s23  ;;  %3702 = vrot.lane.b32.xlu1 %v5938_v44, %s4892_s23 }
 0x398   : > { %3704 = vrot.lane.b32.xlu0 %v5958_v48, %s4892_s23  ;;  %3832 = vrot.lane.b32.xlu1 %v5935_v3, %s4893_s24 }
 0x39c   : > { %3834 = vrot.lane.b32.xlu0 %v5944_v50, %s4893_s24  ;;  %3836 = vrot.lane.b32.xlu1 %v5938_v44, %s4893_s24 }
 0x3a0   : > { %3838 = vrot.lane.b32.xlu0 %v5958_v48, %s4893_s24  ;;  %3966 = vrot.lane.b32.xlu1 %v5935_v3, %s4894_s25 }
 0x3a4   : > { %3968 = vrot.lane.b32.xlu0 %v5944_v50, %s4894_s25  ;;  %3970 = vrot.lane.b32.xlu1 %v5938_v44, %s4894_s25 }
 0x3a8   : > { %3972 = vrot.lane.b32.xlu0 %v5958_v48, %s4894_s25  ;;  %4100 = vrot.lane.b32.xlu1 %v5935_v3, %s4895_s26  ;;  %v4825_v3 = vld [vmem:[%s6275_s6 + $0x20] sm:$0xff]  }
 0x3ac   : > { %4102 = vrot.lane.b32.xlu0 %v5944_v50, %s4895_s26  ;;  %4104 = vrot.lane.b32.xlu1 %v5938_v44, %s4895_s26  ;;  %v4826_v50 = vld [vmem:[%s6276_s7 + $0x20] sm:$0xff]  }
 0x3b0   : > { %4106 = vrot.lane.b32.xlu0 %v5958_v48, %s4895_s26  ;;  %2956 = vperm.xlu1 %4767, %v412_v24   ;;  %v6359_v48 = vld [vmem:[#allocation20_spill] sm:$0xff] }
 0x3b4   : > { %2961 = vperm.xlu0 %4766, %v413_v4   ;;  %4178 = vperm.xlu1 %4767, %v414_v52   ;;  %v6350_v4 = vld [vmem:[#allocation5_spill] sm:$0xff] }
 0x3b8   : > { %4183 = vperm.xlu0 %4766, %v415_v21  }
 0x3e2   : > { %v2999_v61 = vpop.permute.xlu1 %2998 }
 0x3e6   : > { %v3001_v25 = vpop.permute.xlu0 %3000  ;;  %v3003_v59 = vpop.permute.xlu1 %3002 }
 0x3e7   : > { %v3006_v38 = vsel %vm426_vm1, %v2999_v61, %v3003_v59  ;;  %v3008_v36 = vsel %vm426_vm1, %v3003_v59, %v2999_v61 }
 0x3e8   : > { %v3010_v8 = vmul.f32 %v3008_v36, %v5039_v30  ;;  %v3011_v32 = vmul.f32 %v3006_v38, %v5022_v22  ;;  %v6352_v38 = vld [vmem:[#allocation16_spill] sm:$0xff] }
 0x3ea   : > { %v3005_v55 = vpop.permute.xlu0 %3004  ;;  %v3179_v7 = vpop.permute.xlu1 %3178 }
 0x3eb   : > { %v3007_v5 = vsel %vm426_vm1, %v3001_v25, %v3005_v55  ;;  %v3009_v39 = vsel %vm426_vm1, %v3005_v55, %v3001_v25  ;;  %v6351_v25 = vld [vmem:[#allocation15_spill] sm:$0xff] }
 0x3ec   : > { %v3012_v46 = vmul.f32 %v3009_v39, %v5039_v30  ;;  %v3013_v43 = vmul.f32 %v3007_v5, %v5022_v22  ;;  %v4821_v39 = vld [vmem:[%s6275_s6 + $0x10] sm:$0xff]  }
 0x3ee   : > { %v3016_v54 = vpack.c.bf16 %v3012_v46, %v3010_v8  ;;  %v3181_v10 = vpop.permute.xlu0 %3180  ;;  %v3183_v31 = vpop.permute.xlu1 %3182  ;;  %v3017_v6 = vpack.c.bf16 %v3013_v43, %v3011_v32  ;;  %v4822_v8 = vld [vmem:[%s6276_s7 + $0x10] sm:$0xff]  }
 0x3ef   : > { %v3186_v47 = vsel %vm455_vm2, %v3179_v7, %v3183_v31  ;;  %v3188_v53 = vsel %vm455_vm2, %v3183_v31, %v3179_v7 }
 0x3f0   : > { %3040 = vmatprep.subr.bf16.mxu1 %v3017_v6  ;;  %v3190_v23 = vmul.f32 %v3188_v53, %v5036_v29  ;;  %v3191_v14 = vmul.f32 %v3186_v47, %v6346_v26 }
 0x3f1   : > { %3041 = vmatpush1.bf16.msra.mxu1 %v3016_v54  ;;  %v6353_v54 = vld [vmem:[#allocation4_spill] sm:$0xff] }
 0x3f2   : > { %v3185_v33 = vpop.permute.xlu0 %3184  ;;  %3145 = vmatprep.subr.bf16.mxu1 %v5385_v18  ;;  %v3313_v22 = vpop.permute.xlu1 %3312 }
 0x3f3   : > { %v3187_v30 = vsel %vm455_vm2, %v3181_v10, %v3185_v33  ;;  %v3189_v9 = vsel %vm455_vm2, %v3185_v33, %v3181_v10 }
 0x3f4   : > { %v3192_v58 = vmul.f32 %v3189_v9, %v5036_v29  ;;  %v3193_v34 = vmul.f32 %v3187_v30, %v6346_v26  ;;  %4516 = vmatmul.mubr.msk.bf16.vlgmr.msra.gmra.mxu1 %vm482_vm4, %v4817_v27  ;;  %v4819_v29 = vld [vmem:[%s6275_s6 + $0x8] sm:$0xff]  }
 0x3f5   : > { %3146 = vmatpush1.bf16.msra.mxu1 %v6347_v40  ;;  %3163 = vmatprep.mubr.bf16.mxu1 %v6345_v15  ;;  %v6354_v27 = vld [vmem:[#allocation7_spill] sm:$0xff] }
 0x3f6   : > { %v3197_v18 = vpack.c.bf16 %v3192_v58, %v3190_v23  ;;  %v3315_v51 = vpop.permute.xlu0 %3314  ;;  %3279 = vmatprep.subr.bf16.mxu1 %v6348_v35  ;;  %v3317_v37 = vpop.permute.xlu1 %3316  ;;  %v3198_v62 = vpack.c.bf16 %v3193_v34, %v3191_v14  ;;  %v6356_v14 = vld [vmem:[#allocation18_spill] sm:$0xff]  ;;  %v4823_v58 = vld [vmem:[%s6275_s6 + $0x18] sm:$0xff]  }
 0x3f7   : > { %v3322_v41 = vsel %vm588_vm0, %v3317_v37, %v3313_v22  ;;  %v3320_v11 = vsel %vm588_vm0, %v3313_v22, %v3317_v37  ;;  %v6355_v22 = vld [vmem:[#allocation17_spill] sm:$0xff] }
 0x3f8   : > { %3221 = vmatprep.subr.bf16.mxu0 %v3198_v62  ;;  %v3324_v28 = vmul.f32 %v3322_v41, %v6349_v60  ;;  %v3325_v52 = vmul.f32 %v3320_v11, %v6350_v4  ;;  %v4824_v34 = vld [vmem:[%s6276_s7 + $0x18] sm:$0xff]  }
 0x3f9   : > { %3222 = vmatpush1.bf16.msra.mxu0 %v3197_v18  ;;  %v6357_v37 = vld [vmem:[#allocation9_spill] sm:$0xff] }
 0x3fa   : > { %v3319_v12 = vpop.permute.xlu0 %3318  ;;  %v3447_v16 = vpop.permute.xlu1 %3446 }
 0x3fb   : > { %v3321_v2 = vsel %vm588_vm0, %v3315_v51, %v3319_v12  ;;  %v3323_v24 = vsel %vm588_vm0, %v3319_v12, %v3315_v51 }
 0x3fc   : > { %v3326_v21 = vmul.f32 %v3323_v24, %v6349_v60  ;;  %v3327_v61 = vmul.f32 %v3321_v2, %v6350_v4  ;;  %4522 = vmatmul.mubr.msk.bf16.vlgmr.msra.gmra.mxu1 %vm482_vm4, %v4819_v29  ;;  %4526 = vmatmul.mubr.msk.bf16.vlgmr.msra.gmra.mxu0 %vm482_vm4, %v4820_v19  ;;  %v6358_v19 = vld [vmem:[#allocation19_spill] sm:$0xff] }
 0x3fd   : > { %3280 = vmatpush1.bf16.msra.mxu1 %v6351_v25  ;;  %3297 = vmatprep.mubr.bf16.mxu1 %v6345_v15 }
 0x3fe   : > { %v3331_v59 = vpack.c.bf16 %v3326_v21, %v3324_v28  ;;  %3413 = vmatprep.subr.bf16.mxu1 %v6352_v38  ;;  %v3449_v36 = vpop.permute.xlu0 %3448  ;;  %v3451_v55 = vpop.permute.xlu1 %3450  ;;  %v3332_v7 = vpack.c.bf16 %v3327_v61, %v3325_v52  ;;  %3373 = vmatprep.mubr.bf16.mxu0 %v6345_v15  ;;  %v6361_v21 = vld [vmem:[#allocation10_spill] sm:$0xff]  ;;  %v6362_v38 = vld [vmem:[#allocation21_spill] sm:$0xff] }
 0x3ff   : > { %v3456_v5 = vsel %vm673_vm3, %v3451_v55, %v3447_v16  ;;  %v3454_v32 = vsel %vm673_vm3, %v3447_v16, %v3451_v55  ;;  %v6360_v16 = vld [vmem:[#allocation6_spill] sm:$0xff] }
 0x400   : > { %3355 = vmatprep.subr.bf16.mxu0 %v3332_v7  ;;  %v3458_v10 = vmul.f32 %v3456_v5, %v6353_v54  ;;  %v3459_v47 = vmul.f32 %v3454_v32, %v6354_v27  ;;  %v6363_v55 = vld [vmem:[#allocation22_spill] sm:$0xff] }
 0x401   : > { %3356 = vmatpush1.bf16.msra.mxu0 %v3331_v59 }
 0x402   : > { %v3453_v46 = vpop.permute.xlu0 %3452  ;;  %v3699_v43 = vpop.permute.xlu1 %3698 }
 0x403   : > { %v3455_v31 = vsel %vm673_vm3, %v3449_v36, %v3453_v46  ;;  %v3457_v6 = vsel %vm673_vm3, %v3453_v46, %v3449_v36  ;;  %v4827_v46 = vld [vmem:[%s6275_s6 + $0x28] sm:$0xff]  }
 0x404   : > { %v3460_v53 = vmul.f32 %v3457_v6, %v6353_v54  ;;  %v3461_v33 = vmul.f32 %v3455_v31, %v6354_v27  ;;  %4530 = vmatmul.mubr.msk.bf16.vlgmr.msra.gmra.mxu1 %vm482_vm4, %v4821_v39  ;;  %4534 = vmatmul.mubr.msk.bf16.vlgmr.msra.gmra.mxu0 %vm482_vm4, %v4822_v8  ;;  %v6364_v8 = vld [vmem:[#allocation8_spill] sm:$0xff] }
 0x405   : > { %3414 = vmatpush1.bf16.msra.mxu1 %v6355_v22  ;;  %3431 = vmatprep.mubr.bf16.mxu1 %v6345_v15 }
 0x406   : > { %v3465_v30 = vpack.c.bf16 %v3460_v53, %v3458_v10  ;;  %v3701_v9 = vpop.permute.xlu0 %3700  ;;  %v3703_v23 = vpop.permute.xlu1 %3702  ;;  %v3466_v26 = vpack.c.bf16 %v3461_v33, %v3459_v47  ;;  %3507 = vmatprep.mubr.bf16.mxu0 %v6345_v15  ;;  %3547 = vmatprep.subr.bf16.mxu1 %v6356_v14  ;;  %v6365_v53 = vld [vmem:[#allocation11_spill] sm:$0xff] }
 0x407   : > { %v3708_v40 = vsel %vm826_vm5, %v3703_v23, %v3699_v43  ;;  %v3706_v44 = vsel %vm826_vm5, %v3699_v43, %v3703_v23  ;;  %v4828_v43 = vld [vmem:[%s6276_s7 + $0x28] sm:$0xff]  }
 0x408   : > { %3489 = vmatprep.subr.bf16.mxu0 %v3466_v26  ;;  %v3711_v62 = vmul.f32 %v3708_v40, %v6357_v37  ;;  %v6367_v26 = vld [vmem:[#allocation24_spill] sm:$0xff] }
 0x409   : > { %3490 = vmatpush1.bf16.msra.mxu0 %v3465_v30  ;;  %v6368_v40 = vld [vmem:[#allocation12_spill] sm:$0xff] }
 0x40a   : > { %v3705_v18 = vpop.permute.xlu0 %3704  ;;  %3607 = vmatprep.subr.bf16.mxu0 %v3584_v63  ;;  %v3833_v51 = vpop.permute.xlu1 %3832 }
 0x40b   : > { %v3709_v35 = vsel %vm826_vm5, %v3705_v18, %v3701_v9  ;;  %v3707_v41 = vsel %vm826_vm5, %v3701_v9, %v3705_v18  ;;  %v6366_v9 = vld [vmem:[#allocation23_spill] sm:$0xff] }
 0x40c   : > { %v3713_v29 = vmul.f32 %v3709_v35, %v6357_v37  ;;  %4538 = vmatmul.mubr.msk.bf16.vlgmr.msra.gmra.mxu1 %vm482_vm4, %v4823_v58  ;;  %4542 = vmatmul.mubr.msk.bf16.vlgmr.msra.gmra.mxu0 %vm482_vm4, %v4824_v34  ;;  %v3712_v60 = vmul.f32 %v3707_v41, %v6360_v16  ;;  %v4830_v35 = vld [vmem:[%s6276_s7 + $0x30] sm:$0xff]  }
 0x40d   : > { %3548 = vmatpush1.bf16.msra.mxu1 %v6358_v19  ;;  %3608 = vmatpush1.bf16.msra.mxu0 %v3583_v42  ;;  %v3710_v42 = vmul.f32 %v3706_v44, %v6360_v16  ;;  %v4877_v44 = vld [vmem:[%s6271_s2 + $0x18] ss:$0 sm:$0xff] }
 0x40e   : > { %3665 = vmatprep.subr.bf16.mxu1 %v6359_v48  ;;  %v3835_v63 = vpop.permute.xlu0 %3834  ;;  %v3837_v11 = vpop.permute.xlu1 %3836  ;;  %v3718_v12 = vpack.c.bf16 %v3713_v29, %v3711_v62  ;;  %3565 = vmatprep.mubr.bf16.mxu1 %v6345_v15 }
 0x40f   : > { %3625 = vmatprep.mubr.bf16.mxu0 %v6345_v15  ;;  %v3842_v28 = vsel %vm911_vm6, %v3837_v11, %v3833_v51  ;;  %v3717_v4 = vpack.c.bf16 %v3712_v60, %v3710_v42  ;;  %v3840_v36 = vsel %vm911_vm6, %v3833_v51, %v3837_v11  ;;  %v4829_v51 = vld [vmem:[%s6275_s6 + $0x30] sm:$0xff]   ;;  %v6370_v60 = vld [vmem:[#allocation26_spill] sm:$0xff] }
 0x410   : > { %3741 = vmatprep.subr.bf16.mxu0 %v3718_v12  ;;  %v3845_v61 = vmul.f32 %v3842_v28, %v6361_v21  ;;  %v3844_v54 = vmul.f32 %v3840_v36, %v6364_v8  ;;  %v6369_v12 = vld [vmem:[#allocation25_spill] sm:$0xff] }
 0x411   : > { %v4831_v28 = vld [vmem:[%s6275_s6 + $0x38] sm:$0xff]  }
 0x412   : > { %v3839_v2 = vpop.permute.xlu0 %3838  ;;  %v3967_v24 = vpop.permute.xlu1 %3966 }
 0x413   : > { %v3843_v52 = vsel %vm911_vm6, %v3839_v2, %v3835_v63  ;;  %v3841_v25 = vsel %vm911_vm6, %v3835_v63, %v3839_v2 }
 0x414   : > { %v3847_v59 = vmul.f32 %v3843_v52, %v6361_v21  ;;  %4546 = vmatmul.mubr.msk.bf16.vlgmr.msra.gmra.mxu1 %vm482_vm4, %v4825_v3  ;;  %4550 = vmatmul.mubr.msk.bf16.vlgmr.msra.gmra.mxu0 %vm482_vm4, %v4826_v50  ;;  %v3846_v32 = vmul.f32 %v3841_v25, %v6364_v8  ;;  %v4878_v50 = vld [vmem:[%s6271_s2 + $0x10] ss:$0 sm:$0xff]  ;;  %v4833_v52 = vld [vmem:[%s6275_s6 + $0x40] sm:$0xff]  }
 0x415   : > { %3666 = vmatpush1.bf16.msra.mxu1 %v6362_v38  ;;  %3742 = vmatpush1.bf16.msra.mxu0 %v3717_v4  ;;  %v6371_v4 = vld [vmem:[#allocation27_spill] sm:$0xff]  ;;  %v4834_v21 = vld [vmem:[%s6276_s7 + $0x40] sm:$0xff]  }
 0x416   : > { %3799 = vmatprep.subr.bf16.mxu1 %v6363_v55  ;;  %v3969_v7 = vpop.permute.xlu0 %3968  ;;  %v3971_v5 = vpop.permute.xlu1 %3970  ;;  %v3852_v39 = vpack.c.bf16 %v3847_v59, %v3845_v61  ;;  %3683 = vmatprep.mubr.bf16.mxu1 %v6345_v15  ;;  %v3851_v27 = vpack.c.bf16 %v3846_v32, %v3844_v54 }
 0x417   : > { %3759 = vmatprep.mubr.bf16.mxu0 %v6345_v15  ;;  %v3976_v10 = vsel %vm996_vm7, %v3971_v5, %v3967_v24  ;;  %v3974_v23 = vsel %vm996_vm7, %v3967_v24, %v3971_v5  ;;  %v6238_v61 = vpop.f32.mrf.mxu0  ;;  %v2799_v59 = vpop.f32.mrf.mxu1 }
 0x418   : > { %3875 = vmatprep.subr.bf16.mxu0 %v3852_v39  ;;  %v3979_v33 = vmul.f32 %v3976_v10, %v6365_v53  ;;  %v3978_v37 = vmul.f32 %v3974_v23, %v6368_v40 }
 0x419   : > { %v6240_v25 = vpop.f32.mrf.mxu0 }
 0x41a   : > { %v3973_v31 = vpop.permute.xlu0 %3972  ;;  %v4101_v6 = vpop.permute.xlu1 %4100 }
 0x41b   : > { %v3977_v47 = vsel %vm996_vm7, %v3973_v31, %v3969_v7  ;;  %v3975_v22 = vsel %vm996_vm7, %v3969_v7, %v3973_v31  ;;  %v6242_v38 = vpop.f32.mrf.mxu0 }
 0x41c   : > { %v3981_v30 = vmul.f32 %v3977_v47, %v6365_v53  ;;  %4554 = vmatmul.mubr.msk.bf16.vlgmr.msra.gmra.mxu1 %vm482_vm4, %v4827_v46  ;;  %4558 = vmatmul.mubr.msk.bf16.vlgmr.msra.gmra.mxu0 %vm482_vm4, %v4828_v43  ;;  %v3980_v18 = vmul.f32 %v3975_v22, %v6368_v40 }
 0x41d   : > { %3800 = vmatpush1.bf16.msra.mxu1 %v6366_v9  ;;  %3876 = vmatpush1.bf16.msra.mxu0 %v3851_v27  ;;  %v6244_v36 = vpop.f32.mrf.mxu0 }
 0x41e   : > { %3933 = vmatprep.subr.bf16.mxu1 %v6367_v26  ;;  %v4103_v14 = vpop.permute.xlu0 %4102  ;;  %v4105_v58 = vpop.permute.xlu1 %4104  ;;  %v3986_v34 = vpack.c.bf16 %v3981_v30, %v3979_v33  ;;  %3817 = vmatprep.mubr.bf16.mxu1 %v6345_v15  ;;  %v3985_v29 = vpack.c.bf16 %v3980_v18, %v3978_v37 }
 0x41f   : > { %3893 = vmatprep.mubr.bf16.mxu0 %v6345_v15  ;;  %v4110_v62 = vsel %vm1081_vm8, %v4105_v58, %v4101_v6  ;;  %v4108_v16 = vsel %vm1081_vm8, %v4101_v6, %v4105_v58  ;;  %v3111_v7 = vpop.f32.mrf.mxu0 }
 0x420   : > { %4009 = vmatprep.subr.bf16.mxu0 %v3986_v34  ;;  %v4113_v48 = vmul.f32 %v4877_v44, %v4110_v62  ;;  %v4112_v2 = vmul.f32 %v4878_v50, %v4108_v16 }
 0x421   : > { %v3113_v39 = vpop.f32.mrf.mxu0 }
 0x422   : > { %v4107_v41 = vpop.permute.xlu0 %4106 }
 0x423   : > { %v4111_v19 = vsel %vm1081_vm8, %v4107_v41, %v4103_v14  ;;  %v4109_v63 = vsel %vm1081_vm8, %v4103_v14, %v4107_v41  ;;  %v3115_v46 = vpop.f32.mrf.mxu0 }
 0x424   : > { %v4115_v11 = vmul.f32 %v4877_v44, %v4111_v19  ;;  %4562 = vmatmul.mubr.msk.bf16.vlgmr.msra.gmra.mxu1 %vm482_vm4, %v4829_v51  ;;  %4566 = vmatmul.mubr.msk.bf16.vlgmr.msra.gmra.mxu0 %vm482_vm4, %v4830_v35  ;;  %v4114_v42 = vmul.f32 %v4878_v50, %v4109_v63 }
 0x425   : > { %3934 = vmatpush1.bf16.msra.mxu1 %v6369_v12  ;;  %4010 = vmatpush1.bf16.msra.mxu0 %v3985_v29  ;;  %v3117_v10 = vpop.f32.mrf.mxu0 }
 0x426   : > { %4067 = vmatprep.subr.bf16.mxu1 %v6370_v60  ;;  %v4120_v3 = vpack.c.bf16 %v4115_v11, %v4113_v48  ;;  %3951 = vmatprep.mubr.bf16.mxu1 %v6345_v15  ;;  %v4119_v24 = vpack.c.bf16 %v4114_v42, %v4112_v2 }
 0x427   : > { %4027 = vmatprep.mubr.bf16.mxu0 %v6345_v15 }
 0x428   : > { %4143 = vmatprep.subr.bf16.mxu0 %v4120_v3 }
 0x42c   : > { %4570 = vmatmul.mubr.msk.bf16.vlgmr.msra.gmra.mxu1 %vm482_vm4, %v4831_v28  ;;  %4574 = vmatmul.mubr.msk.bf16.vlgmr.msra.gmra.mxu0 %vm482_vm4, %v4832_v13 }
 0x42d   : > { %4068 = vmatpush1.bf16.msra.mxu1 %v6371_v4  ;;  %4144 = vmatpush1.bf16.msra.mxu0 %v4119_v24 }
 0x42e   : > { %4085 = vmatprep.mubr.bf16.mxu1 %v6345_v15  ;;  %4161 = vmatprep.mubr.bf16.mxu0 %v6345_v15  ;;  %v2801_v15 = vpop.f32.mrf.mxu1 }
 0x430   : > { %v2803_v55 = vpop.f32.mrf.mxu1 }
 0x432   : > { %v6246_v5 = vpop.f32.mrf.mxu1 }
 0x434   : > { %4578 = vmatmul.mubr.msk.bf16.vlgmr.msra.gmra.mxu1 %vm482_vm4, %v4833_v52  ;;  %4582 = vmatmul.mubr.msk.bf16.vlgmr.msra.gmra.mxu0 %vm482_vm4, %v4834_v21  ;;  %v2812_v21 = vadd.f32 %v2799_v59, %v5913_v0  ;;  %v2962_v59 = vpop.permute.xlu0 %2961 }
 0x4b4   : > { %v3060_v8 = vpop.f32.mrf.mxu1 }
 0x4b5   : > { %v3112_v40 = vadd.f32 %v3111_v7, %v3060_v8  ;;  %v2957_v7 = vpop.permute.xlu1 %2956 }
 0x4b6   : > { %v3062_v32 = vpop.f32.mrf.mxu1 }
 0x4b7   : > { %v3114_v35 = vadd.f32 %v3113_v39, %v3062_v32 }
 0x4b8   : > { %v3064_v43 = vpop.f32.mrf.mxu1 }
 0x4b9   : > { %v3116_v29 = vadd.f32 %v3115_v46, %v3064_v43  ;;  %v2813_v46 = vadd.f32 %v2801_v15, %v5918_v45  ;;  %v2815_v45 = vadd.f32 %v6246_v5, %v5925_v20 }
 0x4ba   : > { %v3066_v54 = vpop.f32.mrf.mxu1 }
 0x4bb   : > { %v3118_v63 = vadd.f32 %v3117_v10, %v3066_v54  ;;  %v2912_v10 = vadd.f32 %v6238_v61, %v2812_v21 }
 0x4bc   : > { %v3165_v31 = vpop.f32.mrf.mxu1  ;;  %v3241_v6 = vpop.f32.mrf.mxu0 }
 0x4bd   : > { %v3174_v37 = vadd.f32 %v3165_v31, %v3112_v40  ;;  %v2964_v0 = vadd.f32 %v2957_v7, %v2912_v10 }
 0x4be   : > { %v3167_v27 = vpop.f32.mrf.mxu1  ;;  %v3243_v47 = vpop.f32.mrf.mxu0 }
 0x4bf   : > { %v3175_v19 = vadd.f32 %v3167_v27, %v3114_v35  ;;  %v3250_v11 = vadd.f32 %v3241_v6, %v3174_v37  ;;  %v4511_v35 = vmul.f32 -1.442695, %v2964_v0 }
 0x4c0   : > { %v3169_v53 = vpop.f32.mrf.mxu1  ;;  %v3245_v33 = vpop.f32.mrf.mxu0 }
 0x4c1   : > { %v3176_v12 = vadd.f32 %v3169_v53, %v3116_v29  ;;  %v3251_v3 = vadd.f32 %v3243_v47, %v3175_v19  ;;  %v2814_v47 = vadd.f32 %v2803_v55, %v5922_v17  ;;  %v2915_v17 = vadd.f32 %v6244_v36, %v2815_v45 }
 0x4c2   : > { %v3171_v22 = vpop.f32.mrf.mxu1  ;;  %v3247_v30 = vpop.f32.mrf.mxu0  ;;  %4851 = vpow2.f32 %v4511_v35 }
 0x4c3   : > { %v3177_v50 = vadd.f32 %v3171_v22, %v3118_v63  ;;  %v3252_v2 = vadd.f32 %v3245_v33, %v3176_v12  ;;  %v2913_v22 = vadd.f32 %v6240_v25, %v2813_v46  ;;  %v2914_v15 = vadd.f32 %v6242_v38, %v2814_v47 }
 0x4c4   : > { %v3299_v9 = vpop.f32.mrf.mxu1  ;;  %v3375_v23 = vpop.f32.mrf.mxu0  ;;  %v2967_v29 = vadd.f32 %v2962_v59, %v2915_v17 }
 0x4c5   : > { %v3308_v42 = vadd.f32 %v3299_v9, %v3250_v11  ;;  %v3253_v39 = vadd.f32 %v3247_v30, %v3177_v50  ;;  %v2966_v55 = vadd.f32 %v2962_v59, %v2914_v15 }
 0x4c6   : > { %v3301_v26 = vpop.f32.mrf.mxu1  ;;  %v3377_v14 = vpop.f32.mrf.mxu0 }
 0x4c7   : > { %v3309_v24 = vadd.f32 %v3301_v26, %v3251_v3  ;;  %v3384_v8 = vadd.f32 %v3375_v23, %v3308_v42  ;;  %v2965_v26 = vadd.f32 %v2957_v7, %v2913_v22  ;;  %v4513_v63 = vmul.f32 -1.442695, %v2966_v55 }
 0x4c8   : > { %v3303_v58 = vpop.f32.mrf.mxu1  ;;  %v3379_v34 = vpop.f32.mrf.mxu0 }
 0x4c9   : > { %v3310_v32 = vadd.f32 %v3303_v58, %v3252_v2  ;;  %v3385_v31 = vadd.f32 %v3377_v14, %v3309_v24  ;;  %v4512_v5 = vmul.f32 -1.442695, %v2965_v26 }
 0x4ca   : > { %v3305_v18 = vpop.f32.mrf.mxu1  ;;  %v3381_v51 = vpop.f32.mrf.mxu0 }
 0x4cb   : > { %v3311_v6 = vadd.f32 %v3305_v18, %v3253_v39  ;;  %v3386_v30 = vadd.f32 %v3379_v34, %v3310_v32  ;;  %4853 = vpow2.f32 %v4512_v5 }
 0x4cc   : > { %v3433_v62 = vpop.f32.mrf.mxu1  ;;  %v3509_v41 = vpop.f32.mrf.mxu0  ;;  %4855 = vpow2.f32 %v4513_v63 }
 0x4cd   : > { %v3442_v27 = vadd.f32 %v3433_v62, %v3384_v8  ;;  %v3387_v14 = vadd.f32 %v3381_v51, %v3311_v6 }
 0x4ce   : > { %v3435_v44 = vpop.f32.mrf.mxu1  ;;  %v3511_v48 = vpop.f32.mrf.mxu0 }
 0x4cf   : > { %v3443_v9 = vadd.f32 %v3435_v44, %v3385_v31  ;;  %v3518_v58 = vadd.f32 %v3509_v41, %v3442_v27  ;;  %v4852_v59 = vpop.eup %4851 }
 0x4d0   : > { %v3437_v16 = vpop.f32.mrf.mxu1  ;;  %v3513_v60 = vpop.f32.mrf.mxu0 }
 0x4d1   : > { %v3444_v40 = vadd.f32 %v3437_v16, %v3386_v30  ;;  %v3519_v37 = vadd.f32 %v3511_v48, %v3443_v9  ;;  %v4514_v16 = vmul.f32 -1.442695, %v2967_v29 }
 0x4d2   : > { %v3439_v28 = vpop.f32.mrf.mxu1  ;;  %v3515_v13 = vpop.f32.mrf.mxu0 }
 0x4d3   : > { %v3445_v34 = vadd.f32 %v3439_v28, %v3387_v14  ;;  %v3520_v38 = vadd.f32 %v3513_v60, %v3444_v40  ;;  %4857 = vpow2.f32 %v4514_v16  ;;  %v2980_v40 = vadd.f32 1.0, %v4852_v59 }
 0x4d4   : > { %v3567_v4 = vpop.f32.mrf.mxu1  ;;  %v3627_v52 = vpop.f32.mrf.mxu0 }
 0x4d5   : > { %v3576_v62 = vadd.f32 %v3567_v4, %v3518_v58  ;;  %v3521_v41 = vadd.f32 %v3515_v13, %v3445_v34  ;;  %4859 = vrcp.f32 %v2980_v40 }
 0x4d6   : > { %v3569_v43 = vpop.f32.mrf.mxu1  ;;  %v3629_v54 = vpop.f32.mrf.mxu0 }
 0x4d7   : > { %v3577_v44 = vadd.f32 %v3569_v43, %v3519_v37  ;;  %v3636_v12 = vadd.f32 %v3627_v52, %v3576_v62 }
 0x4d8   : > { %v3571_v53 = vpop.f32.mrf.mxu1  ;;  %v3631_v33 = vpop.f32.mrf.mxu0 }
 0x4d9   : > { %v3578_v36 = vadd.f32 %v3571_v53, %v3520_v38  ;;  %v3637_v48 = vadd.f32 %v3629_v54, %v3577_v44 }
 0x4da   : > { %v3573_v23 = vpop.f32.mrf.mxu1  ;;  %v3633_v61 = vpop.f32.mrf.mxu0 }
 0x4db   : > { %v3579_v42 = vadd.f32 %v3573_v23, %v3521_v41  ;;  %v3638_v4 = vadd.f32 %v3631_v33, %v3578_v36 }
 0x4dc   : > { %v3685_v18 = vpop.f32.mrf.mxu1  ;;  %v3761_v25 = vpop.f32.mrf.mxu0 }
 0x4dd   : > { %v3694_v28 = vadd.f32 %v3685_v18, %v3636_v12  ;;  %v3639_v39 = vadd.f32 %v3633_v61, %v3579_v42  ;;  %v4854_v61 = vpop.eup %4853  ;;  %v4179_v12 = vpop.permute.xlu1 %4178 }
 0x4de   : > { %v3687_v19 = vpop.f32.mrf.mxu1  ;;  %v3763_v20 = vpop.f32.mrf.mxu0  ;;  %v2981_v37 = vadd.f32 1.0, %v4854_v61 }
 0x4df   : > { %v3695_v60 = vadd.f32 %v3687_v19, %v3637_v48  ;;  %v3770_v8 = vadd.f32 %v3761_v25, %v3694_v28  ;;  %v4856_v58 = vpop.eup %4855 }
 0x4e0   : > { %v3689_v11 = vpop.f32.mrf.mxu1  ;;  %v3765_v51 = vpop.f32.mrf.mxu0  ;;  %v2982_v19 = vadd.f32 1.0, %v4856_v58  ;;  %4861 = vrcp.f32 %v2981_v37 }
 0x4e1   : > { %v3696_v13 = vadd.f32 %v3689_v11, %v3638_v4  ;;  %v3771_v46 = vadd.f32 %v3763_v20, %v3695_v60  ;;  %v4858_v35 = vpop.eup %4857 }
 0x4e2   : > { %v3691_v3 = vpop.f32.mrf.mxu1  ;;  %v3767_v50 = vpop.f32.mrf.mxu0  ;;  %v2983_v11 = vadd.f32 1.0, %v4858_v35  ;;  %4863 = vrcp.f32 %v2982_v19 }
 0x4e3   : > { %v3697_v43 = vadd.f32 %v3691_v3, %v3639_v39  ;;  %v3772_v6 = vadd.f32 %v3765_v51, %v3696_v13  ;;  %v4184_v39 = vpop.permute.xlu0 %4183 }
 0x4e4   : > { %v3819_v2 = vpop.f32.mrf.mxu1  ;;  %v3895_v24 = vpop.f32.mrf.mxu0  ;;  %4865 = vrcp.f32 %v2983_v11 }
 0x4e5   : > { %v3828_v10 = vadd.f32 %v3819_v2, %v3770_v8  ;;  %v3773_v22 = vadd.f32 %v3767_v50, %v3697_v43 }
 0x4e6   : > { %v3821_v21 = vpop.f32.mrf.mxu1  ;;  %v3897_v7 = vpop.f32.mrf.mxu0 }
 0x4e7   : > { %v3829_v27 = vadd.f32 %v3821_v21, %v3771_v46  ;;  %v3904_v33 = vadd.f32 %v3895_v24, %v3828_v10  ;;  %v4860_v46 = vpop.eup %4859 }
 0x4e8   : > { %v3823_v52 = vpop.f32.mrf.mxu1  ;;  %v3899_v32 = vpop.f32.mrf.mxu0 }
 0x4e9   : > { %v3830_v0 = vadd.f32 %v3823_v52, %v3772_v6  ;;  %v3905_v45 = vadd.f32 %v3897_v7, %v3829_v27 }
 0x4ea   : > { %v3825_v31 = vpop.f32.mrf.mxu1  ;;  %v3901_v54 = vpop.f32.mrf.mxu0 }
 0x4eb   : > { %v3831_v15 = vadd.f32 %v3825_v31, %v3773_v22  ;;  %v3906_v17 = vadd.f32 %v3899_v32, %v3830_v0  ;;  %v4194_v31 = vsub.f32 1.0, %v4860_v46 }
 0x4ec   : > { %v3953_v47 = vpop.f32.mrf.mxu1  ;;  %v4029_v53 = vpop.f32.mrf.mxu0 }
 0x4ed   : > { %v3962_v23 = vadd.f32 %v3953_v47, %v3904_v33  ;;  %v3907_v34 = vadd.f32 %v3901_v54, %v3831_v15  ;;  %v4862_v43 = vpop.eup %4861 }
 0x4ee   : > { %v3955_v30 = vpop.f32.mrf.mxu1  ;;  %v4031_v9 = vpop.f32.mrf.mxu0  ;;  %v4195_v6 = vsub.f32 1.0, %v4862_v43 }
 0x4ef   : > { %v3963_v55 = vadd.f32 %v3955_v30, %v3905_v45  ;;  %v4038_v62 = vadd.f32 %v4029_v53, %v3962_v23  ;;  %v4864_v10 = vpop.eup %4863  ;;  %v4198_v53 = vmul.f32 %v4194_v31, %v5240_v49 }
 0x4f0   : > { %v3957_v26 = vpop.f32.mrf.mxu1  ;;  %v4033_v14 = vpop.f32.mrf.mxu0  ;;  %v4196_v47 = vsub.f32 1.0, %v4864_v10  ;;  %v4199_v30 = vmul.f32 %v4195_v6, %v5246_v56 }
 0x4f1   : > { %v3964_v29 = vadd.f32 %v3957_v26, %v3906_v17  ;;  %v4039_v38 = vadd.f32 %v4031_v9, %v3963_v55  ;;  %v4866_v54 = vpop.eup %4865 }
 0x4f2   : > { %v3959_v18 = vpop.f32.mrf.mxu1  ;;  %v4035_v25 = vpop.f32.mrf.mxu0  ;;  %v4197_v0 = vsub.f32 1.0, %v4866_v54  ;;  %v4200_v23 = vmul.f32 %v4196_v47, %v5248_v57 }
 0x4f3   : > { %v3965_v44 = vadd.f32 %v3959_v18, %v3907_v34  ;;  %v4040_v36 = vadd.f32 %v4033_v14, %v3964_v29 }
 0x4f4   : > { %v4087_v20 = vpop.f32.mrf.mxu1  ;;  %v4163_v5 = vpop.f32.mrf.mxu0  ;;  %v4201_v14 = vmul.f32 %v4197_v0, %v5256_v1 }
 0x4f5   : > { %v4096_v63 = vadd.f32 %v4087_v20, %v4038_v62  ;;  %v4041_v42 = vadd.f32 %v4035_v25, %v3965_v44 }
 0x4f6   : > { %v4089_v51 = vpop.f32.mrf.mxu1  ;;  %v4165_v41 = vpop.f32.mrf.mxu0 }
 0x4f7   : > { %v4097_v16 = vadd.f32 %v4089_v51, %v4039_v38  ;;  %v4172_v3 = vadd.f32 %v4163_v5, %v4096_v63 }
 0x4f8   : > { %v4091_v50 = vpop.f32.mrf.mxu1  ;;  %v4167_v48 = vpop.f32.mrf.mxu0 }
 0x4f9   : > { %v4186_v28 = vadd.f32 %v4179_v12, %v4172_v3  ;;  %v4098_v2 = vadd.f32 %v4091_v50, %v4040_v36  ;;  %v4173_v24 = vadd.f32 %v4165_v41, %v4097_v16 }
 0x4fa   : > { %v4093_v4 = vpop.f32.mrf.mxu1  ;;  %v4169_v8 = vpop.f32.mrf.mxu0 }
 0x4fb   : > { %4867 = vtanh.f32 %v4186_v28  ;;  %v4187_v60 = vadd.f32 %v4179_v12, %v4173_v24  ;;  %v4099_v21 = vadd.f32 %v4093_v4, %v4041_v42  ;;  %v4174_v7 = vadd.f32 %v4167_v48, %v4098_v2 }
 0x4fd   : > { %4869 = vtanh.f32 %v4187_v60  ;;  %v4188_v13 = vadd.f32 %v4184_v39, %v4174_v7  ;;  %v4175_v52 = vadd.f32 %v4169_v8, %v4099_v21 }
 0x4ff   : > { %4871 = vtanh.f32 %v4188_v13  ;;  %v4189_v32 = vadd.f32 %v4184_v39, %v4175_v52 }
 0x501   : > { %4873 = vtanh.f32 %v4189_v32 }
 0x508   : > { %v4868_v27 = vpop.eup %4867 }
 0x509   : > { %v4202_v22 = vmul.f32 %v4868_v27, %v4860_v46 }
 0x50a   : > { %v4870_v33 = vpop.eup %4869 }
 0x50b   : > { %v4206_v59 = vadd.f32 %v4202_v22, %v4198_v53  ;;  %v4203_v9 = vmul.f32 %v4870_v33, %v4862_v43 }
 0x50c   : > { %v4872_v45 = vpop.eup %4871 }
 0x50d   : > { %4210 = vst [vmem:[%s387_s11] sm:$0xff] %v4206_v59  ;;  %v4207_v15 = vadd.f32 %v4203_v9, %v4199_v30  ;;  %v4204_v61 = vmul.f32 %v4872_v45, %v4864_v10 }
 0x50e   : > { %v4874_v26 = vpop.eup %4873 }
 0x50f   : > { %4211 = vst [vmem:[%s387_s11 + $0x8] sm:$0xff] %v4207_v15  ;;  %v4208_v49 = vadd.f32 %v4204_v61, %v4200_v23  ;;  %v4205_v58 = vmul.f32 %v4874_v26, %v4866_v54 }
 0x511   : > { %4212 = vst [vmem:[%s387_s11 + $0x10] sm:$0xff] %v4208_v49  ;;  %v4209_v40 = vadd.f32 %v4205_v58, %v4201_v14 }
 0x513   : > { %4213 = vst [vmem:[%s387_s11 + $0x18] sm:$0xff] %v4209_v40 }
 0x514 PF: > { %s21_s13 = sadd.s32 1, %s4885_s13  }
 0x515   : > { %p18_p4 = scmp.ge.s32.totalorder %s21_s13, 4  }
 0x517   :  { %20 = sbr.rel (!%p18_p4) target bundleno = 1 (0x1), region = 141 }

</bundles_post_ra>
